<compile_context>
chip_gen: v7x
topology: tpu7x:2x2x1
jax: 0.10.0
libtpu: 0.0.40
codegen_flags: <defaults>
</compile_context>

<pallas_src>
from collections import namedtuple

import jax
import jax.numpy as jnp
from jax import lax
from jax.experimental import pallas as pl
from jax.experimental.pallas import tpu as pltpu

INITRANGE = 0.04

Genotype = namedtuple("Genotype", ["recurrent", "concat"])

# Canonical DARTS RNN genotype (8 steps, concat over states 1..8).
DARTS_GENOTYPE = Genotype(
    recurrent=[
        ("relu", 0), ("relu", 1), ("tanh", 2), ("relu", 3),
        ("relu", 4), ("identity", 1), ("relu", 5), ("relu", 1),
    ],
    concat=list(range(1, 9)),
)

_ACT = {
    "tanh": jnp.tanh,
    "relu": lambda v: jnp.maximum(v, 0.0),
    "sigmoid": jax.nn.sigmoid,
    "identity": lambda v: v,
}


# ----------------------------------------------------------------------------
# Pallas kernel 1: both DARTSCell layers fused, time loop inside the kernel.
# ----------------------------------------------------------------------------
def _make_fused_rnn_kernel(genotype, T, ninp, nhid):
    steps = len(genotype.recurrent)
    concat = list(genotype.concat)
    inv_n = 1.0 / float(len(concat))

    def kernel(emb_ref, h0_ref,
               w0xc_ref, w0xh_ref, w0hc_ref, w0hh_ref, wsc_ref, wsh_ref,
               out_ref, h1f_ref, h2f_ref, mid_scr):
        # emb_ref : (T, B, ninp)   w0?c/h_ref : (2, ninp|nhid, nhid)
        # wsc/wsh : (2*steps, nhid, nhid)
        # out_ref : (T, B, nhid)   h1f/h2f : (B, nhid)
        # mid_scr : (T, B, nhid)   layer-1 output sequence (VMEM only)

        def cell(layer, x, h_prev):
            # s0 = h + sigmoid(x@W0xc + h@W0hc) * (tanh(x@W0xh + h@W0hh) - h)
            c0 = jax.nn.sigmoid(
                jnp.dot(x, w0xc_ref[layer], preferred_element_type=jnp.float32)
                + jnp.dot(h_prev, w0hc_ref[layer],
                          preferred_element_type=jnp.float32))
            h0 = jnp.tanh(
                jnp.dot(x, w0xh_ref[layer], preferred_element_type=jnp.float32)
                + jnp.dot(h_prev, w0hh_ref[layer],
                          preferred_element_type=jnp.float32))
            states = [h_prev + c0 * (h0 - h_prev)]
            for i, (name, pred) in enumerate(genotype.recurrent):
                sp = states[pred]
                wi = layer * steps + i
                c = jax.nn.sigmoid(
                    jnp.dot(sp, wsc_ref[wi], preferred_element_type=jnp.float32))
                hh = _ACT[name](
                    jnp.dot(sp, wsh_ref[wi], preferred_element_type=jnp.float32))
                states.append(sp + c * (hh - sp))
            acc = states[concat[0]]
            for i in concat[1:]:
                acc = acc + states[i]
            return acc * inv_n

        # ---- layer 1: recurrence over T, stash outputs in VMEM scratch ----
        def step1(t, h):
            h = cell(0, emb_ref[t], h)
            mid_scr[t] = h
            return h

        h1 = lax.fori_loop(0, T, step1, h0_ref[...])
        h1f_ref[...] = h1

        # ---- layer 2: init hidden = layer-1 FINAL hidden (PyTorch quirk) ----
        def step2(t, h):
            h = cell(1, mid_scr[t], h)
            out_ref[t] = h
            return h

        h2 = lax.fori_loop(0, T, step2, h1)
        h2f_ref[...] = h2

    return kernel


def _split_layer_weights(layers, ninp, nhid):
    """Split/stack both layers' weights into lane-aligned pieces."""
    steps = layers[0]["Ws"].shape[0]
    w0 = jnp.stack([l["W0"] for l in layers])            # (2, ninp+nhid, 2*nhid)
    ws = jnp.stack([l["Ws"] for l in layers])            # (2, steps, nhid, 2*nhid)
    w0xc = w0[:, :ninp, :nhid]                           # (2, ninp, nhid)
    w0xh = w0[:, :ninp, nhid:]
    w0hc = w0[:, ninp:, :nhid]                           # (2, nhid, nhid)
    w0hh = w0[:, ninp:, nhid:]
    wsc = ws[..., :nhid].reshape(2 * steps, nhid, nhid)  # (2*steps, nhid, nhid)
    wsh = ws[..., nhid:].reshape(2 * steps, nhid, nhid)
    return w0xc, w0xh, w0hc, w0hh, wsc, wsh


def darts_rnn_fused(emb, h0, layers, genotype):
    """emb: (T, B, ninp); h0: (B, nhid) -> (out (T,B,nhid), h1_final, h2_final)."""
    T, B, ninp = emb.shape
    nhid = h0.shape[-1]
    steps = len(genotype.recurrent)
    w0xc, w0xh, w0hc, w0hh, wsc, wsh = _split_layer_weights(layers, ninp, nhid)

    c2 = lambda *_: (0, 0)
    c3 = lambda *_: (0, 0, 0)

    out, h1f, h2f = pl.pallas_call(
        _make_fused_rnn_kernel(genotype, T, ninp, nhid),
        out_shape=(
            jax.ShapeDtypeStruct((T, B, nhid), jnp.float32),
            jax.ShapeDtypeStruct((B, nhid), jnp.float32),
            jax.ShapeDtypeStruct((B, nhid), jnp.float32),
        ),
        grid_spec=pltpu.PrefetchScalarGridSpec(
            num_scalar_prefetch=0,
            grid=(1,),
            in_specs=[
                pl.BlockSpec((T, B, ninp), c3),            # emb
                pl.BlockSpec((B, nhid), c2),               # h0
                pl.BlockSpec((2, ninp, nhid), c3),         # W0 x->c
                pl.BlockSpec((2, ninp, nhid), c3),         # W0 x->h
                pl.BlockSpec((2, nhid, nhid), c3),         # W0 h->c
                pl.BlockSpec((2, nhid, nhid), c3),         # W0 h->h
                pl.BlockSpec((2 * steps, nhid, nhid), c3), # Ws c-half
                pl.BlockSpec((2 * steps, nhid, nhid), c3), # Ws h-half
            ],
            out_specs=[
                pl.BlockSpec((T, B, nhid), c3),
                pl.BlockSpec((B, nhid), c2),
                pl.BlockSpec((B, nhid), c2),
            ],
            scratch_shapes=[pltpu.VMEM((T, B, nhid), jnp.float32)],
        ),
        compiler_params=pltpu.CompilerParams(
            dimension_semantics=("arbitrary",),
            vmem_limit_bytes=64 * 1024 * 1024,
        ),
    )(emb, h0, w0xc, w0xh, w0hc, w0hh, wsc, wsh)
    return out, h1f, h2f


# ----------------------------------------------------------------------------
# Pallas kernel 2: tied-weight decoder + log_softmax, row-tiled & parallel.
# ----------------------------------------------------------------------------
def _decoder_kernel(x_ref, w_ref, b_ref, out_ref):
    # logits = x @ W_dec^T + b, contraction done in-kernel (no transpose).
    logit = lax.dot_general(
        x_ref[...], w_ref[...],
        dimension_numbers=(((1,), (1,)), ((), ())),
        preferred_element_type=jnp.float32) + b_ref[...]
    m = jnp.max(logit, axis=-1, keepdims=True)
    z = logit - m
    lse = jnp.log(jnp.sum(jnp.exp(z), axis=-1, keepdims=True))
    out_ref[...] = z - lse


def _pick_row_block(n, max_rows=512):
    for cand in (512, 256, 128, 64, 32, 16, 8):
        if cand <= max_rows and n % cand == 0:
            return cand
    return n


def decoder_logsoftmax(x_flat, w_dec, b_dec):
    """x_flat: (N, ninp); w_dec: (ntoken, ninp); b_dec: (ntoken,) -> (N, ntoken)."""
    N, ninp = x_flat.shape
    ntoken = w_dec.shape[0]
    rb = _pick_row_block(N)
    b = b_dec.reshape(1, ntoken)
    return pl.pallas_call(
        _decoder_kernel,
        out_shape=jax.ShapeDtypeStruct((N, ntoken), jnp.float32),
        grid_spec=pltpu.PrefetchScalarGridSpec(
            num_scalar_prefetch=0,
            grid=(N // rb,),
            in_specs=[
                pl.BlockSpec((rb, ninp), lambda i: (i, 0)),
                pl.BlockSpec((ntoken, ninp), lambda i: (0, 0)),
                pl.BlockSpec((1, ntoken), lambda i: (0, 0)),
            ],
            out_specs=pl.BlockSpec((rb, ntoken), lambda i: (i, 0)),
        ),
        compiler_params=pltpu.CompilerParams(
            dimension_semantics=("parallel",),
            vmem_limit_bytes=64 * 1024 * 1024,
        ),
    )(x_flat, w_dec, b)


# ----------------------------------------------------------------------------
# Model: parameter init + forward.
# ----------------------------------------------------------------------------
def init_params(key, ntoken, ninp, nhid, genotype):
    assert ninp == nhid
    steps = len(genotype.recurrent)
    keys = jax.random.split(key, 1 + 2 * (1 + steps))
    u = lambda k, shape: jax.random.uniform(
        k, shape, jnp.float32, -INITRANGE, INITRANGE)
    params = {
        "emb": u(keys[0], (ntoken, ninp)),           # encoder.weight (tied decoder)
        "dec_b": jnp.zeros((ntoken,), jnp.float32),  # decoder.bias
        "layers": [],
    }
    ki = 1
    for _ in range(2):  # two DARTSCell layers
        w0 = u(keys[ki], (ninp + nhid, 2 * nhid)); ki += 1
        ws = jnp.stack([u(keys[ki + i], (nhid, 2 * nhid)) for i in range(steps)])
        ki += steps
        params["layers"].append({"W0": w0, "Ws": ws})
    return params


def rnn_model_forward(params, tokens, hidden, genotype):
    """tokens: (T, B) int32; hidden: list of one (1, B, nhid) array."""
    T, B = tokens.shape
    nhid = hidden[0].shape[-1]
    ntoken = params["emb"].shape[0]

    # embedded_dropout with dropout=0 (eval) == plain embedding lookup (glue).
    emb = jnp.take(params["emb"], tokens, axis=0)     # (T, B, ninp)
    h0 = hidden[0][0]                                 # (B, nhid)

    out, h1f, h2f = darts_rnn_fused(emb, h0, params["layers"], genotype)
    new_hidden = [h1f[None], h2f[None]]               # list of (1, B, nhid)

    log_prob = decoder_logsoftmax(out.reshape(T * B, nhid),
                                  params["emb"], params["dec_b"])
    return log_prob.reshape(T, B, ntoken), new_hidden


# ----------------------------------------------------------------------------
# Pure-JAX reference (for correctness check).
# ----------------------------------------------------------------------------
def _ref_cell(x, h_prev, w0, ws, genotype, nhid):
    ch0 = jnp.concatenate([x, h_prev], -1) @ w0
    c0 = jax.nn.sigmoid(ch0[:, :nhid]); h0 = jnp.tanh(ch0[:, nhid:])
    states = [h_prev + c0 * (h0 - h_prev)]
    for i, (name, pred) in enumerate(genotype.recurrent):
        sp = states[pred]
        ch = sp @ ws[i]
        c = jax.nn.sigmoid(ch[:, :nhid])
        hh = _ACT[name](ch[:, nhid:])
        states.append(sp + c * (hh - sp))
    return jnp.mean(jnp.stack([states[i] for i in genotype.concat], -1), -1)


def _ref_forward(params, tokens, hidden, genotype):
    T, B = tokens.shape
    nhid = hidden[0].shape[-1]
    ntoken = params["emb"].shape[0]
    emb = jnp.take(params["emb"], tokens, axis=0)
    raw_output, h = emb, hidden
    new_hidden = []
    for layer in params["layers"]:
        hh = h[0][0]
        outs = []
        for t in range(T):
            hh = _ref_cell(raw_output[t], hh, layer["W0"], layer["Ws"],
                           genotype, nhid)
            outs.append(hh)
        raw_output = jnp.stack(outs)
        new_hidden.append(raw_output[-1][None])
        h = new_hidden
    logit = raw_output.reshape(T * B, nhid) @ params["emb"].T + params["dec_b"]
    return jax.nn.log_softmax(logit, -1).reshape(T, B, ntoken), new_hidden


# ----------------------------------------------------------------------------
if __name__ == "__main__":
    # Small shapes consistent with the module: ninp == nhid == nhidlast.
    T, B = 10, 8
    ntoken, ninp, nhid = 128, 64, 64

    key = jax.random.PRNGKey(0)
    kp, kt = jax.random.split(key)
    params = init_params(kp, ntoken, ninp, nhid, DARTS_GENOTYPE)
    tokens = jax.random.randint(kt, (T, B), 0, ntoken, dtype=jnp.int32)
    hidden = [jnp.zeros((1, B, nhid), jnp.float32)]   # init_hidden(bsz)

    log_prob, new_hidden = rnn_model_forward(params, tokens, hidden,
                                             DARTS_GENOTYPE)
    log_prob = jax.block_until_ready(log_prob)
    new_hidden = [jax.block_until_ready(h) for h in new_hidden]

    # Sanity check against pure-JAX reference.
    ref_lp, ref_h = _ref_forward(params, tokens, hidden, DARTS_GENOTYPE)
    assert log_prob.shape == (T, B, ntoken)
    assert jnp.allclose(log_prob, ref_lp, atol=2e-4, rtol=2e-4)
    assert all(jnp.allclose(a, b, atol=2e-4, rtol=2e-4)
               for a, b in zip(new_hidden, ref_h))

    print("KERNEL_OK")
</pallas_src>

<mosaic_0001>
module attributes {stable_mosaic.version = 11 : i64} {
  func.func @kernel(%arg0: i32, %arg1: memref<10x8x64xf32, #tpu.memory_space<vmem>>, %arg2: memref<8x64xf32, #tpu.memory_space<vmem>>, %arg3: memref<2x64x64xf32, #tpu.memory_space<vmem>>, %arg4: memref<2x64x64xf32, #tpu.memory_space<vmem>>, %arg5: memref<2x64x64xf32, #tpu.memory_space<vmem>>, %arg6: memref<2x64x64xf32, #tpu.memory_space<vmem>>, %arg7: memref<16x64x64xf32, #tpu.memory_space<vmem>>, %arg8: memref<16x64x64xf32, #tpu.memory_space<vmem>>, %arg9: memref<10x8x64xf32, #tpu.memory_space<vmem>>, %arg10: memref<8x64xf32, #tpu.memory_space<vmem>>, %arg11: memref<8x64xf32, #tpu.memory_space<vmem>>, %arg12: memref<10x8x64xf32, #tpu.memory_space<vmem>>) attributes {dimension_semantics = [#tpu.dimension_semantics<arbitrary>], iteration_bounds = array<i64: 1>, scalar_prefetch = 0 : i64, scratch_operands = 1 : i64, tpu.core_type = #tpu.core_type<tc>, window_params = [{pipeline_mode = #tpu.pipeline_mode<synchronous>, transform_indices = @transform_0, window_bounds = array<i64: 10, 8, 64>}, {pipeline_mode = #tpu.pipeline_mode<synchronous>, transform_indices = @transform_1, window_bounds = array<i64: 8, 64>}, {pipeline_mode = #tpu.pipeline_mode<synchronous>, transform_indices = @transform_2, window_bounds = array<i64: 2, 64, 64>}, {pipeline_mode = #tpu.pipeline_mode<synchronous>, transform_indices = @transform_3, window_bounds = array<i64: 2, 64, 64>}, {pipeline_mode = #tpu.pipeline_mode<synchronous>, transform_indices = @transform_4, window_bounds = array<i64: 2, 64, 64>}, {pipeline_mode = #tpu.pipeline_mode<synchronous>, transform_indices = @transform_5, window_bounds = array<i64: 2, 64, 64>}, {pipeline_mode = #tpu.pipeline_mode<synchronous>, transform_indices = @transform_6, window_bounds = array<i64: 16, 64, 64>}, {pipeline_mode = #tpu.pipeline_mode<synchronous>, transform_indices = @transform_7, window_bounds = array<i64: 16, 64, 64>}, {pipeline_mode = #tpu.pipeline_mode<synchronous>, transform_indices = @transform_8, window_bounds = array<i64: 10, 8, 64>}, {pipeline_mode = #tpu.pipeline_mode<synchronous>, transform_indices = @transform_9, window_bounds = array<i64: 8, 64>}, {pipeline_mode = #tpu.pipeline_mode<synchronous>, transform_indices = @transform_10, window_bounds = array<i64: 8, 64>}]} {
    %c0 = arith.constant 0 : index
    %c0_0 = arith.constant 0 : index
    %0 = vector.load %arg2[%c0, %c0_0] : memref<8x64xf32, #tpu.memory_space<vmem>>, vector<8x64xf32>
    %c0_i32 = arith.constant 0 : i32
    %c10_i32 = arith.constant 10 : i32
    %1 = arith.addi %c0_i32, %c10_i32 : i32
    %c1_i32 = arith.constant 1 : i32
    %2 = scf.for %arg13 = %c0_i32 to %1 step %c1_i32 iter_args(%arg14 = %0) -> (vector<8x64xf32>)  : i32 {
      %7 = arith.index_cast %arg13 : i32 to index
      %c0_10 = arith.constant 0 : index
      %c0_11 = arith.constant 0 : index
      %8 = vector.load %arg1[%7, %c0_10, %c0_11] : memref<10x8x64xf32, #tpu.memory_space<vmem>>, vector<1x8x64xf32>
      %9 = vector.shape_cast %8 : vector<1x8x64xf32> to vector<8x64xf32>
      %c0_12 = arith.constant 0 : index
      %c0_13 = arith.constant 0 : index
      %c0_14 = arith.constant 0 : index
      %10 = vector.load %arg3[%c0_12, %c0_13, %c0_14] : memref<2x64x64xf32, #tpu.memory_space<vmem>>, vector<1x64x64xf32>
      %11 = vector.shape_cast %10 : vector<1x64x64xf32> to vector<64x64xf32>
      %cst = arith.constant dense<0.000000e+00> : vector<8x64xf32>
      %12 = tpu.matmul %9, %11, %cst {dimension_numbers = #tpu.dot_dimension_numbers<[1], [0], [0], [1], [0, 0, 1, 1], [], []>} : vector<8x64xf32>, vector<64x64xf32>, vector<8x64xf32> -> vector<8x64xf32>
      %c0_15 = arith.constant 0 : index
      %c0_16 = arith.constant 0 : index
      %c0_17 = arith.constant 0 : index
      %13 = vector.load %arg5[%c0_15, %c0_16, %c0_17] : memref<2x64x64xf32, #tpu.memory_space<vmem>>, vector<1x64x64xf32>
      %14 = vector.shape_cast %13 : vector<1x64x64xf32> to vector<64x64xf32>
      %cst_18 = arith.constant dense<0.000000e+00> : vector<8x64xf32>
      %15 = tpu.matmul %arg14, %14, %cst_18 {dimension_numbers = #tpu.dot_dimension_numbers<[1], [0], [0], [1], [0, 0, 1, 1], [], []>} : vector<8x64xf32>, vector<64x64xf32>, vector<8x64xf32> -> vector<8x64xf32>
      %16 = arith.addf %12, %15 : vector<8x64xf32>
      %17 = arith.negf %16 : vector<8x64xf32>
      %18 = math.exp %17 : vector<8x64xf32>
      %cst_19 = arith.constant 1.000000e+00 : f32
      %19 = vector.broadcast %cst_19 : f32 to vector<8x64xf32>
      %20 = arith.addf %19, %18 : vector<8x64xf32>
      %21 = arith.divf %19, %20 : vector<8x64xf32>
      %c0_20 = arith.constant 0 : index
      %c0_21 = arith.constant 0 : index
      %c0_22 = arith.constant 0 : index
      %22 = vector.load %arg4[%c0_20, %c0_21, %c0_22] : memref<2x64x64xf32, #tpu.memory_space<vmem>>, vector<1x64x64xf32>
      %23 = vector.shape_cast %22 : vector<1x64x64xf32> to vector<64x64xf32>
      %cst_23 = arith.constant dense<0.000000e+00> : vector<8x64xf32>
      %24 = tpu.matmul %9, %23, %cst_23 {dimension_numbers = #tpu.dot_dimension_numbers<[1], [0], [0], [1], [0, 0, 1, 1], [], []>} : vector<8x64xf32>, vector<64x64xf32>, vector<8x64xf32> -> vector<8x64xf32>
      %c0_24 = arith.constant 0 : index
      %c0_25 = arith.constant 0 : index
      %c0_26 = arith.constant 0 : index
      %25 = vector.load %arg6[%c0_24, %c0_25, %c0_26] : memref<2x64x64xf32, #tpu.memory_space<vmem>>, vector<1x64x64xf32>
      %26 = vector.shape_cast %25 : vector<1x64x64xf32> to vector<64x64xf32>
      %cst_27 = arith.constant dense<0.000000e+00> : vector<8x64xf32>
      %27 = tpu.matmul %arg14, %26, %cst_27 {dimension_numbers = #tpu.dot_dimension_numbers<[1], [0], [0], [1], [0, 0, 1, 1], [], []>} : vector<8x64xf32>, vector<64x64xf32>, vector<8x64xf32> -> vector<8x64xf32>
      %28 = arith.addf %24, %27 : vector<8x64xf32>
      %29 = math.tanh %28 : vector<8x64xf32>
      %30 = arith.subf %29, %arg14 : vector<8x64xf32>
      %31 = arith.mulf %21, %30 : vector<8x64xf32>
      %32 = arith.addf %arg14, %31 : vector<8x64xf32>
      %c0_28 = arith.constant 0 : index
      %c0_29 = arith.constant 0 : index
      %c0_30 = arith.constant 0 : index
      %33 = vector.load %arg7[%c0_28, %c0_29, %c0_30] : memref<16x64x64xf32, #tpu.memory_space<vmem>>, vector<1x64x64xf32>
      %34 = vector.shape_cast %33 : vector<1x64x64xf32> to vector<64x64xf32>
      %cst_31 = arith.constant dense<0.000000e+00> : vector<8x64xf32>
      %35 = tpu.matmul %32, %34, %cst_31 {dimension_numbers = #tpu.dot_dimension_numbers<[1], [0], [0], [1], [0, 0, 1, 1], [], []>} : vector<8x64xf32>, vector<64x64xf32>, vector<8x64xf32> -> vector<8x64xf32>
      %36 = arith.negf %35 : vector<8x64xf32>
      %37 = math.exp %36 : vector<8x64xf32>
      %cst_32 = arith.constant 1.000000e+00 : f32
      %38 = vector.broadcast %cst_32 : f32 to vector<8x64xf32>
      %39 = arith.addf %38, %37 : vector<8x64xf32>
      %40 = arith.divf %38, %39 : vector<8x64xf32>
      %c0_33 = arith.constant 0 : index
      %c0_34 = arith.constant 0 : index
      %c0_35 = arith.constant 0 : index
      %41 = vector.load %arg8[%c0_33, %c0_34, %c0_35] : memref<16x64x64xf32, #tpu.memory_space<vmem>>, vector<1x64x64xf32>
      %42 = vector.shape_cast %41 : vector<1x64x64xf32> to vector<64x64xf32>
      %cst_36 = arith.constant dense<0.000000e+00> : vector<8x64xf32>
      %43 = tpu.matmul %32, %42, %cst_36 {dimension_numbers = #tpu.dot_dimension_numbers<[1], [0], [0], [1], [0, 0, 1, 1], [], []>} : vector<8x64xf32>, vector<64x64xf32>, vector<8x64xf32> -> vector<8x64xf32>
      %cst_37 = arith.constant 0.000000e+00 : f32
      %44 = vector.broadcast %cst_37 : f32 to vector<8x64xf32>
      %45 = arith.maximumf %43, %44 : vector<8x64xf32>
      %46 = arith.subf %45, %32 : vector<8x64xf32>
      %47 = arith.mulf %40, %46 : vector<8x64xf32>
      %48 = arith.addf %32, %47 : vector<8x64xf32>
      %c1 = arith.constant 1 : index
      %c0_38 = arith.constant 0 : index
      %c0_39 = arith.constant 0 : index
      %49 = vector.load %arg7[%c1, %c0_38, %c0_39] : memref<16x64x64xf32, #tpu.memory_space<vmem>>, vector<1x64x64xf32>
      %50 = vector.shape_cast %49 : vector<1x64x64xf32> to vector<64x64xf32>
      %cst_40 = arith.constant dense<0.000000e+00> : vector<8x64xf32>
      %51 = tpu.matmul %48, %50, %cst_40 {dimension_numbers = #tpu.dot_dimension_numbers<[1], [0], [0], [1], [0, 0, 1, 1], [], []>} : vector<8x64xf32>, vector<64x64xf32>, vector<8x64xf32> -> vector<8x64xf32>
      %52 = arith.negf %51 : vector<8x64xf32>
      %53 = math.exp %52 : vector<8x64xf32>
      %cst_41 = arith.constant 1.000000e+00 : f32
      %54 = vector.broadcast %cst_41 : f32 to vector<8x64xf32>
      %55 = arith.addf %54, %53 : vector<8x64xf32>
      %56 = arith.divf %54, %55 : vector<8x64xf32>
      %c1_42 = arith.constant 1 : index
      %c0_43 = arith.constant 0 : index
      %c0_44 = arith.constant 0 : index
      %57 = vector.load %arg8[%c1_42, %c0_43, %c0_44] : memref<16x64x64xf32, #tpu.memory_space<vmem>>, vector<1x64x64xf32>
      %58 = vector.shape_cast %57 : vector<1x64x64xf32> to vector<64x64xf32>
      %cst_45 = arith.constant dense<0.000000e+00> : vector<8x64xf32>
      %59 = tpu.matmul %48, %58, %cst_45 {dimension_numbers = #tpu.dot_dimension_numbers<[1], [0], [0], [1], [0, 0, 1, 1], [], []>} : vector<8x64xf32>, vector<64x64xf32>, vector<8x64xf32> -> vector<8x64xf32>
      %cst_46 = arith.constant 0.000000e+00 : f32
      %60 = vector.broadcast %cst_46 : f32 to vector<8x64xf32>
      %61 = arith.maximumf %59, %60 : vector<8x64xf32>
      %62 = arith.subf %61, %48 : vector<8x64xf32>
      %63 = arith.mulf %56, %62 : vector<8x64xf32>
      %64 = arith.addf %48, %63 : vector<8x64xf32>
      %c2 = arith.constant 2 : index
      %c0_47 = arith.constant 0 : index
      %c0_48 = arith.constant 0 : index
      %65 = vector.load %arg7[%c2, %c0_47, %c0_48] : memref<16x64x64xf32, #tpu.memory_space<vmem>>, vector<1x64x64xf32>
      %66 = vector.shape_cast %65 : vector<1x64x64xf32> to vector<64x64xf32>
      %cst_49 = arith.constant dense<0.000000e+00> : vector<8x64xf32>
      %67 = tpu.matmul %64, %66, %cst_49 {dimension_numbers = #tpu.dot_dimension_numbers<[1], [0], [0], [1], [0, 0, 1, 1], [], []>} : vector<8x64xf32>, vector<64x64xf32>, vector<8x64xf32> -> vector<8x64xf32>
      %68 = arith.negf %67 : vector<8x64xf32>
      %69 = math.exp %68 : vector<8x64xf32>
      %cst_50 = arith.constant 1.000000e+00 : f32
      %70 = vector.broadcast %cst_50 : f32 to vector<8x64xf32>
      %71 = arith.addf %70, %69 : vector<8x64xf32>
      %72 = arith.divf %70, %71 : vector<8x64xf32>
      %c2_51 = arith.constant 2 : index
      %c0_52 = arith.constant 0 : index
      %c0_53 = arith.constant 0 : index
      %73 = vector.load %arg8[%c2_51, %c0_52, %c0_53] : memref<16x64x64xf32, #tpu.memory_space<vmem>>, vector<1x64x64xf32>
      %74 = vector.shape_cast %73 : vector<1x64x64xf32> to vector<64x64xf32>
      %cst_54 = arith.constant dense<0.000000e+00> : vector<8x64xf32>
      %75 = tpu.matmul %64, %74, %cst_54 {dimension_numbers = #tpu.dot_dimension_numbers<[1], [0], [0], [1], [0, 0, 1, 1], [], []>} : vector<8x64xf32>, vector<64x64xf32>, vector<8x64xf32> -> vector<8x64xf32>
      %76 = math.tanh %75 : vector<8x64xf32>
      %77 = arith.subf %76, %64 : vector<8x64xf32>
      %78 = arith.mulf %72, %77 : vector<8x64xf32>
      %79 = arith.addf %64, %78 : vector<8x64xf32>
      %c3 = arith.constant 3 : index
      %c0_55 = arith.constant 0 : index
      %c0_56 = arith.constant 0 : index
      %80 = vector.load %arg7[%c3, %c0_55, %c0_56] : memref<16x64x64xf32, #tpu.memory_space<vmem>>, vector<1x64x64xf32>
      %81 = vector.shape_cast %80 : vector<1x64x64xf32> to vector<64x64xf32>
      %cst_57 = arith.constant dense<0.000000e+00> : vector<8x64xf32>
      %82 = tpu.matmul %79, %81, %cst_57 {dimension_numbers = #tpu.dot_dimension_numbers<[1], [0], [0], [1], [0, 0, 1, 1], [], []>} : vector<8x64xf32>, vector<64x64xf32>, vector<8x64xf32> -> vector<8x64xf32>
      %83 = arith.negf %82 : vector<8x64xf32>
      %84 = math.exp %83 : vector<8x64xf32>
      %cst_58 = arith.constant 1.000000e+00 : f32
      %85 = vector.broadcast %cst_58 : f32 to vector<8x64xf32>
      %86 = arith.addf %85, %84 : vector<8x64xf32>
      %87 = arith.divf %85, %86 : vector<8x64xf32>
      %c3_59 = arith.constant 3 : index
      %c0_60 = arith.constant 0 : index
      %c0_61 = arith.constant 0 : index
      %88 = vector.load %arg8[%c3_59, %c0_60, %c0_61] : memref<16x64x64xf32, #tpu.memory_space<vmem>>, vector<1x64x64xf32>
      %89 = vector.shape_cast %88 : vector<1x64x64xf32> to vector<64x64xf32>
      %cst_62 = arith.constant dense<0.000000e+00> : vector<8x64xf32>
      %90 = tpu.matmul %79, %89, %cst_62 {dimension_numbers = #tpu.dot_dimension_numbers<[1], [0], [0], [1], [0, 0, 1, 1], [], []>} : vector<8x64xf32>, vector<64x64xf32>, vector<8x64xf32> -> vector<8x64xf32>
      %cst_63 = arith.constant 0.000000e+00 : f32
      %91 = vector.broadcast %cst_63 : f32 to vector<8x64xf32>
      %92 = arith.maximumf %90, %91 : vector<8x64xf32>
      %93 = arith.subf %92, %79 : vector<8x64xf32>
      %94 = arith.mulf %87, %93 : vector<8x64xf32>
      %95 = arith.addf %79, %94 : vector<8x64xf32>
      %c4 = arith.constant 4 : index
      %c0_64 = arith.constant 0 : index
      %c0_65 = arith.constant 0 : index
      %96 = vector.load %arg7[%c4, %c0_64, %c0_65] : memref<16x64x64xf32, #tpu.memory_space<vmem>>, vector<1x64x64xf32>
      %97 = vector.shape_cast %96 : vector<1x64x64xf32> to vector<64x64xf32>
      %cst_66 = arith.constant dense<0.000000e+00> : vector<8x64xf32>
      %98 = tpu.matmul %95, %97, %cst_66 {dimension_numbers = #tpu.dot_dimension_numbers<[1], [0], [0], [1], [0, 0, 1, 1], [], []>} : vector<8x64xf32>, vector<64x64xf32>, vector<8x64xf32> -> vector<8x64xf32>
      %99 = arith.negf %98 : vector<8x64xf32>
      %100 = math.exp %99 : vector<8x64xf32>
      %cst_67 = arith.constant 1.000000e+00 : f32
      %101 = vector.broadcast %cst_67 : f32 to vector<8x64xf32>
      %102 = arith.addf %101, %100 : vector<8x64xf32>
      %103 = arith.divf %101, %102 : vector<8x64xf32>
      %c4_68 = arith.constant 4 : index
      %c0_69 = arith.constant 0 : index
      %c0_70 = arith.constant 0 : index
      %104 = vector.load %arg8[%c4_68, %c0_69, %c0_70] : memref<16x64x64xf32, #tpu.memory_space<vmem>>, vector<1x64x64xf32>
      %105 = vector.shape_cast %104 : vector<1x64x64xf32> to vector<64x64xf32>
      %cst_71 = arith.constant dense<0.000000e+00> : vector<8x64xf32>
      %106 = tpu.matmul %95, %105, %cst_71 {dimension_numbers = #tpu.dot_dimension_numbers<[1], [0], [0], [1], [0, 0, 1, 1], [], []>} : vector<8x64xf32>, vector<64x64xf32>, vector<8x64xf32> -> vector<8x64xf32>
      %cst_72 = arith.constant 0.000000e+00 : f32
      %107 = vector.broadcast %cst_72 : f32 to vector<8x64xf32>
      %108 = arith.maximumf %106, %107 : vector<8x64xf32>
      %109 = arith.subf %108, %95 : vector<8x64xf32>
      %110 = arith.mulf %103, %109 : vector<8x64xf32>
      %111 = arith.addf %95, %110 : vector<8x64xf32>
      %c5 = arith.constant 5 : index
      %c0_73 = arith.constant 0 : index
      %c0_74 = arith.constant 0 : index
      %112 = vector.load %arg7[%c5, %c0_73, %c0_74] : memref<16x64x64xf32, #tpu.memory_space<vmem>>, vector<1x64x64xf32>
      %113 = vector.shape_cast %112 : vector<1x64x64xf32> to vector<64x64xf32>
      %cst_75 = arith.constant dense<0.000000e+00> : vector<8x64xf32>
      %114 = tpu.matmul %48, %113, %cst_75 {dimension_numbers = #tpu.dot_dimension_numbers<[1], [0], [0], [1], [0, 0, 1, 1], [], []>} : vector<8x64xf32>, vector<64x64xf32>, vector<8x64xf32> -> vector<8x64xf32>
      %115 = arith.negf %114 : vector<8x64xf32>
      %116 = math.exp %115 : vector<8x64xf32>
      %cst_76 = arith.constant 1.000000e+00 : f32
      %117 = vector.broadcast %cst_76 : f32 to vector<8x64xf32>
      %118 = arith.addf %117, %116 : vector<8x64xf32>
      %119 = arith.divf %117, %118 : vector<8x64xf32>
      %c5_77 = arith.constant 5 : index
      %c0_78 = arith.constant 0 : index
      %c0_79 = arith.constant 0 : index
      %120 = vector.load %arg8[%c5_77, %c0_78, %c0_79] : memref<16x64x64xf32, #tpu.memory_space<vmem>>, vector<1x64x64xf32>
      %121 = vector.shape_cast %120 : vector<1x64x64xf32> to vector<64x64xf32>
      %cst_80 = arith.constant dense<0.000000e+00> : vector<8x64xf32>
      %122 = tpu.matmul %48, %121, %cst_80 {dimension_numbers = #tpu.dot_dimension_numbers<[1], [0], [0], [1], [0, 0, 1, 1], [], []>} : vector<8x64xf32>, vector<64x64xf32>, vector<8x64xf32> -> vector<8x64xf32>
      %123 = arith.subf %122, %48 : vector<8x64xf32>
      %124 = arith.mulf %119, %123 : vector<8x64xf32>
      %125 = arith.addf %48, %124 : vector<8x64xf32>
      %c6 = arith.constant 6 : index
      %c0_81 = arith.constant 0 : index
      %c0_82 = arith.constant 0 : index
      %126 = vector.load %arg7[%c6, %c0_81, %c0_82] : memref<16x64x64xf32, #tpu.memory_space<vmem>>, vector<1x64x64xf32>
      %127 = vector.shape_cast %126 : vector<1x64x64xf32> to vector<64x64xf32>
      %cst_83 = arith.constant dense<0.000000e+00> : vector<8x64xf32>
      %128 = tpu.matmul %111, %127, %cst_83 {dimension_numbers = #tpu.dot_dimension_numbers<[1], [0], [0], [1], [0, 0, 1, 1], [], []>} : vector<8x64xf32>, vector<64x64xf32>, vector<8x64xf32> -> vector<8x64xf32>
      %129 = arith.negf %128 : vector<8x64xf32>
      %130 = math.exp %129 : vector<8x64xf32>
      %cst_84 = arith.constant 1.000000e+00 : f32
      %131 = vector.broadcast %cst_84 : f32 to vector<8x64xf32>
      %132 = arith.addf %131, %130 : vector<8x64xf32>
      %133 = arith.divf %131, %132 : vector<8x64xf32>
      %c6_85 = arith.constant 6 : index
      %c0_86 = arith.constant 0 : index
      %c0_87 = arith.constant 0 : index
      %134 = vector.load %arg8[%c6_85, %c0_86, %c0_87] : memref<16x64x64xf32, #tpu.memory_space<vmem>>, vector<1x64x64xf32>
      %135 = vector.shape_cast %134 : vector<1x64x64xf32> to vector<64x64xf32>
      %cst_88 = arith.constant dense<0.000000e+00> : vector<8x64xf32>
      %136 = tpu.matmul %111, %135, %cst_88 {dimension_numbers = #tpu.dot_dimension_numbers<[1], [0], [0], [1], [0, 0, 1, 1], [], []>} : vector<8x64xf32>, vector<64x64xf32>, vector<8x64xf32> -> vector<8x64xf32>
      %cst_89 = arith.constant 0.000000e+00 : f32
      %137 = vector.broadcast %cst_89 : f32 to vector<8x64xf32>
      %138 = arith.maximumf %136, %137 : vector<8x64xf32>
      %139 = arith.subf %138, %111 : vector<8x64xf32>
      %140 = arith.mulf %133, %139 : vector<8x64xf32>
      %141 = arith.addf %111, %140 : vector<8x64xf32>
      %c7 = arith.constant 7 : index
      %c0_90 = arith.constant 0 : index
      %c0_91 = arith.constant 0 : index
      %142 = vector.load %arg7[%c7, %c0_90, %c0_91] : memref<16x64x64xf32, #tpu.memory_space<vmem>>, vector<1x64x64xf32>
      %143 = vector.shape_cast %142 : vector<1x64x64xf32> to vector<64x64xf32>
      %cst_92 = arith.constant dense<0.000000e+00> : vector<8x64xf32>
      %144 = tpu.matmul %48, %143, %cst_92 {dimension_numbers = #tpu.dot_dimension_numbers<[1], [0], [0], [1], [0, 0, 1, 1], [], []>} : vector<8x64xf32>, vector<64x64xf32>, vector<8x64xf32> -> vector<8x64xf32>
      %145 = arith.negf %144 : vector<8x64xf32>
      %146 = math.exp %145 : vector<8x64xf32>
      %cst_93 = arith.constant 1.000000e+00 : f32
      %147 = vector.broadcast %cst_93 : f32 to vector<8x64xf32>
      %148 = arith.addf %147, %146 : vector<8x64xf32>
      %149 = arith.divf %147, %148 : vector<8x64xf32>
      %c7_94 = arith.constant 7 : index
      %c0_95 = arith.constant 0 : index
      %c0_96 = arith.constant 0 : index
      %150 = vector.load %arg8[%c7_94, %c0_95, %c0_96] : memref<16x64x64xf32, #tpu.memory_space<vmem>>, vector<1x64x64xf32>
      %151 = vector.shape_cast %150 : vector<1x64x64xf32> to vector<64x64xf32>
      %cst_97 = arith.constant dense<0.000000e+00> : vector<8x64xf32>
      %152 = tpu.matmul %48, %151, %cst_97 {dimension_numbers = #tpu.dot_dimension_numbers<[1], [0], [0], [1], [0, 0, 1, 1], [], []>} : vector<8x64xf32>, vector<64x64xf32>, vector<8x64xf32> -> vector<8x64xf32>
      %cst_98 = arith.constant 0.000000e+00 : f32
      %153 = vector.broadcast %cst_98 : f32 to vector<8x64xf32>
      %154 = arith.maximumf %152, %153 : vector<8x64xf32>
      %155 = arith.subf %154, %48 : vector<8x64xf32>
      %156 = arith.mulf %149, %155 : vector<8x64xf32>
      %157 = arith.addf %48, %156 : vector<8x64xf32>
      %158 = arith.addf %48, %64 : vector<8x64xf32>
      %159 = arith.addf %158, %79 : vector<8x64xf32>
      %160 = arith.addf %159, %95 : vector<8x64xf32>
      %161 = arith.addf %160, %111 : vector<8x64xf32>
      %162 = arith.addf %161, %125 : vector<8x64xf32>
      %163 = arith.addf %162, %141 : vector<8x64xf32>
      %164 = arith.addf %163, %157 : vector<8x64xf32>
      %cst_99 = arith.constant 1.250000e-01 : f32
      %165 = vector.broadcast %cst_99 : f32 to vector<8x64xf32>
      %166 = arith.mulf %164, %165 : vector<8x64xf32>
      %167 = arith.index_cast %arg13 : i32 to index
      %c0_100 = arith.constant 0 : index
      %c0_101 = arith.constant 0 : index
      %168 = vector.load %arg12[%167, %c0_100, %c0_101] : memref<10x8x64xf32, #tpu.memory_space<vmem>>, vector<1x8x64xf32>
      %169 = vector.shape_cast %168 : vector<1x8x64xf32> to vector<8x64xf32>
      %170 = vector.shape_cast %166 : vector<8x64xf32> to vector<1x8x64xf32>
      tpu.vector_store %arg12[%167, %c0_100, %c0_101], %170 {strides = array<i32>} : memref<10x8x64xf32, #tpu.memory_space<vmem>>, vector<1x8x64xf32>,
      scf.yield %166 : vector<8x64xf32>
    }
    %c10_i32_1 = arith.constant 10 : i32
    %c0_2 = arith.constant 0 : index
    %c0_3 = arith.constant 0 : index
    %3 = vector.load %arg10[%c0_2, %c0_3] : memref<8x64xf32, #tpu.memory_space<vmem>>, vector<8x64xf32>
    tpu.vector_store %arg10[%c0_2, %c0_3], %2 {strides = array<i32>} : memref<8x64xf32, #tpu.memory_space<vmem>>, vector<8x64xf32>,
    %c0_i32_4 = arith.constant 0 : i32
    %c10_i32_5 = arith.constant 10 : i32
    %4 = arith.addi %c0_i32_4, %c10_i32_5 : i32
    %c1_i32_6 = arith.constant 1 : i32
    %5 = scf.for %arg13 = %c0_i32_4 to %4 step %c1_i32_6 iter_args(%arg14 = %2) -> (vector<8x64xf32>)  : i32 {
      %7 = arith.index_cast %arg13 : i32 to index
      %c0_10 = arith.constant 0 : index
      %c0_11 = arith.constant 0 : index
      %8 = vector.load %arg12[%7, %c0_10, %c0_11] : memref<10x8x64xf32, #tpu.memory_space<vmem>>, vector<1x8x64xf32>
      %9 = vector.shape_cast %8 : vector<1x8x64xf32> to vector<8x64xf32>
      %c1 = arith.constant 1 : index
      %c0_12 = arith.constant 0 : index
      %c0_13 = arith.constant 0 : index
      %10 = vector.load %arg3[%c1, %c0_12, %c0_13] : memref<2x64x64xf32, #tpu.memory_space<vmem>>, vector<1x64x64xf32>
      %11 = vector.shape_cast %10 : vector<1x64x64xf32> to vector<64x64xf32>
      %cst = arith.constant dense<0.000000e+00> : vector<8x64xf32>
      %12 = tpu.matmul %9, %11, %cst {dimension_numbers = #tpu.dot_dimension_numbers<[1], [0], [0], [1], [0, 0, 1, 1], [], []>} : vector<8x64xf32>, vector<64x64xf32>, vector<8x64xf32> -> vector<8x64xf32>
      %c1_14 = arith.constant 1 : index
      %c0_15 = arith.constant 0 : index
      %c0_16 = arith.constant 0 : index
      %13 = vector.load %arg5[%c1_14, %c0_15, %c0_16] : memref<2x64x64xf32, #tpu.memory_space<vmem>>, vector<1x64x64xf32>
      %14 = vector.shape_cast %13 : vector<1x64x64xf32> to vector<64x64xf32>
      %cst_17 = arith.constant dense<0.000000e+00> : vector<8x64xf32>
      %15 = tpu.matmul %arg14, %14, %cst_17 {dimension_numbers = #tpu.dot_dimension_numbers<[1], [0], [0], [1], [0, 0, 1, 1], [], []>} : vector<8x64xf32>, vector<64x64xf32>, vector<8x64xf32> -> vector<8x64xf32>
      %16 = arith.addf %12, %15 : vector<8x64xf32>
      %17 = arith.negf %16 : vector<8x64xf32>
      %18 = math.exp %17 : vector<8x64xf32>
      %cst_18 = arith.constant 1.000000e+00 : f32
      %19 = vector.broadcast %cst_18 : f32 to vector<8x64xf32>
      %20 = arith.addf %19, %18 : vector<8x64xf32>
      %21 = arith.divf %19, %20 : vector<8x64xf32>
      %c1_19 = arith.constant 1 : index
      %c0_20 = arith.constant 0 : index
      %c0_21 = arith.constant 0 : index
      %22 = vector.load %arg4[%c1_19, %c0_20, %c0_21] : memref<2x64x64xf32, #tpu.memory_space<vmem>>, vector<1x64x64xf32>
      %23 = vector.shape_cast %22 : vector<1x64x64xf32> to vector<64x64xf32>
      %cst_22 = arith.constant dense<0.000000e+00> : vector<8x64xf32>
      %24 = tpu.matmul %9, %23, %cst_22 {dimension_numbers = #tpu.dot_dimension_numbers<[1], [0], [0], [1], [0, 0, 1, 1], [], []>} : vector<8x64xf32>, vector<64x64xf32>, vector<8x64xf32> -> vector<8x64xf32>
      %c1_23 = arith.constant 1 : index
      %c0_24 = arith.constant 0 : index
      %c0_25 = arith.constant 0 : index
      %25 = vector.load %arg6[%c1_23, %c0_24, %c0_25] : memref<2x64x64xf32, #tpu.memory_space<vmem>>, vector<1x64x64xf32>
      %26 = vector.shape_cast %25 : vector<1x64x64xf32> to vector<64x64xf32>
      %cst_26 = arith.constant dense<0.000000e+00> : vector<8x64xf32>
      %27 = tpu.matmul %arg14, %26, %cst_26 {dimension_numbers = #tpu.dot_dimension_numbers<[1], [0], [0], [1], [0, 0, 1, 1], [], []>} : vector<8x64xf32>, vector<64x64xf32>, vector<8x64xf32> -> vector<8x64xf32>
      %28 = arith.addf %24, %27 : vector<8x64xf32>
      %29 = math.tanh %28 : vector<8x64xf32>
      %30 = arith.subf %29, %arg14 : vector<8x64xf32>
      %31 = arith.mulf %21, %30 : vector<8x64xf32>
      %32 = arith.addf %arg14, %31 : vector<8x64xf32>
      %c8 = arith.constant 8 : index
      %c0_27 = arith.constant 0 : index
      %c0_28 = arith.constant 0 : index
      %33 = vector.load %arg7[%c8, %c0_27, %c0_28] : memref<16x64x64xf32, #tpu.memory_space<vmem>>, vector<1x64x64xf32>
      %34 = vector.shape_cast %33 : vector<1x64x64xf32> to vector<64x64xf32>
      %cst_29 = arith.constant dense<0.000000e+00> : vector<8x64xf32>
      %35 = tpu.matmul %32, %34, %cst_29 {dimension_numbers = #tpu.dot_dimension_numbers<[1], [0], [0], [1], [0, 0, 1, 1], [], []>} : vector<8x64xf32>, vector<64x64xf32>, vector<8x64xf32> -> vector<8x64xf32>
      %36 = arith.negf %35 : vector<8x64xf32>
      %37 = math.exp %36 : vector<8x64xf32>
      %cst_30 = arith.constant 1.000000e+00 : f32
      %38 = vector.broadcast %cst_30 : f32 to vector<8x64xf32>
      %39 = arith.addf %38, %37 : vector<8x64xf32>
      %40 = arith.divf %38, %39 : vector<8x64xf32>
      %c8_31 = arith.constant 8 : index
      %c0_32 = arith.constant 0 : index
      %c0_33 = arith.constant 0 : index
      %41 = vector.load %arg8[%c8_31, %c0_32, %c0_33] : memref<16x64x64xf32, #tpu.memory_space<vmem>>, vector<1x64x64xf32>
      %42 = vector.shape_cast %41 : vector<1x64x64xf32> to vector<64x64xf32>
      %cst_34 = arith.constant dense<0.000000e+00> : vector<8x64xf32>
      %43 = tpu.matmul %32, %42, %cst_34 {dimension_numbers = #tpu.dot_dimension_numbers<[1], [0], [0], [1], [0, 0, 1, 1], [], []>} : vector<8x64xf32>, vector<64x64xf32>, vector<8x64xf32> -> vector<8x64xf32>
      %cst_35 = arith.constant 0.000000e+00 : f32
      %44 = vector.broadcast %cst_35 : f32 to vector<8x64xf32>
      %45 = arith.maximumf %43, %44 : vector<8x64xf32>
      %46 = arith.subf %45, %32 : vector<8x64xf32>
      %47 = arith.mulf %40, %46 : vector<8x64xf32>
      %48 = arith.addf %32, %47 : vector<8x64xf32>
      %c9 = arith.constant 9 : index
      %c0_36 = arith.constant 0 : index
      %c0_37 = arith.constant 0 : index
      %49 = vector.load %arg7[%c9, %c0_36, %c0_37] : memref<16x64x64xf32, #tpu.memory_space<vmem>>, vector<1x64x64xf32>
      %50 = vector.shape_cast %49 : vector<1x64x64xf32> to vector<64x64xf32>
      %cst_38 = arith.constant dense<0.000000e+00> : vector<8x64xf32>
      %51 = tpu.matmul %48, %50, %cst_38 {dimension_numbers = #tpu.dot_dimension_numbers<[1], [0], [0], [1], [0, 0, 1, 1], [], []>} : vector<8x64xf32>, vector<64x64xf32>, vector<8x64xf32> -> vector<8x64xf32>
      %52 = arith.negf %51 : vector<8x64xf32>
      %53 = math.exp %52 : vector<8x64xf32>
      %cst_39 = arith.constant 1.000000e+00 : f32
      %54 = vector.broadcast %cst_39 : f32 to vector<8x64xf32>
      %55 = arith.addf %54, %53 : vector<8x64xf32>
      %56 = arith.divf %54, %55 : vector<8x64xf32>
      %c9_40 = arith.constant 9 : index
      %c0_41 = arith.constant 0 : index
      %c0_42 = arith.constant 0 : index
      %57 = vector.load %arg8[%c9_40, %c0_41, %c0_42] : memref<16x64x64xf32, #tpu.memory_space<vmem>>, vector<1x64x64xf32>
      %58 = vector.shape_cast %57 : vector<1x64x64xf32> to vector<64x64xf32>
      %cst_43 = arith.constant dense<0.000000e+00> : vector<8x64xf32>
      %59 = tpu.matmul %48, %58, %cst_43 {dimension_numbers = #tpu.dot_dimension_numbers<[1], [0], [0], [1], [0, 0, 1, 1], [], []>} : vector<8x64xf32>, vector<64x64xf32>, vector<8x64xf32> -> vector<8x64xf32>
      %cst_44 = arith.constant 0.000000e+00 : f32
      %60 = vector.broadcast %cst_44 : f32 to vector<8x64xf32>
      %61 = arith.maximumf %59, %60 : vector<8x64xf32>
      %62 = arith.subf %61, %48 : vector<8x64xf32>
      %63 = arith.mulf %56, %62 : vector<8x64xf32>
      %64 = arith.addf %48, %63 : vector<8x64xf32>
      %c10 = arith.constant 10 : index
      %c0_45 = arith.constant 0 : index
      %c0_46 = arith.constant 0 : index
      %65 = vector.load %arg7[%c10, %c0_45, %c0_46] : memref<16x64x64xf32, #tpu.memory_space<vmem>>, vector<1x64x64xf32>
      %66 = vector.shape_cast %65 : vector<1x64x64xf32> to vector<64x64xf32>
      %cst_47 = arith.constant dense<0.000000e+00> : vector<8x64xf32>
      %67 = tpu.matmul %64, %66, %cst_47 {dimension_numbers = #tpu.dot_dimension_numbers<[1], [0], [0], [1], [0, 0, 1, 1], [], []>} : vector<8x64xf32>, vector<64x64xf32>, vector<8x64xf32> -> vector<8x64xf32>
      %68 = arith.negf %67 : vector<8x64xf32>
      %69 = math.exp %68 : vector<8x64xf32>
      %cst_48 = arith.constant 1.000000e+00 : f32
      %70 = vector.broadcast %cst_48 : f32 to vector<8x64xf32>
      %71 = arith.addf %70, %69 : vector<8x64xf32>
      %72 = arith.divf %70, %71 : vector<8x64xf32>
      %c10_49 = arith.constant 10 : index
      %c0_50 = arith.constant 0 : index
      %c0_51 = arith.constant 0 : index
      %73 = vector.load %arg8[%c10_49, %c0_50, %c0_51] : memref<16x64x64xf32, #tpu.memory_space<vmem>>, vector<1x64x64xf32>
      %74 = vector.shape_cast %73 : vector<1x64x64xf32> to vector<64x64xf32>
      %cst_52 = arith.constant dense<0.000000e+00> : vector<8x64xf32>
      %75 = tpu.matmul %64, %74, %cst_52 {dimension_numbers = #tpu.dot_dimension_numbers<[1], [0], [0], [1], [0, 0, 1, 1], [], []>} : vector<8x64xf32>, vector<64x64xf32>, vector<8x64xf32> -> vector<8x64xf32>
      %76 = math.tanh %75 : vector<8x64xf32>
      %77 = arith.subf %76, %64 : vector<8x64xf32>
      %78 = arith.mulf %72, %77 : vector<8x64xf32>
      %79 = arith.addf %64, %78 : vector<8x64xf32>
      %c11 = arith.constant 11 : index
      %c0_53 = arith.constant 0 : index
      %c0_54 = arith.constant 0 : index
      %80 = vector.load %arg7[%c11, %c0_53, %c0_54] : memref<16x64x64xf32, #tpu.memory_space<vmem>>, vector<1x64x64xf32>
      %81 = vector.shape_cast %80 : vector<1x64x64xf32> to vector<64x64xf32>
      %cst_55 = arith.constant dense<0.000000e+00> : vector<8x64xf32>
      %82 = tpu.matmul %79, %81, %cst_55 {dimension_numbers = #tpu.dot_dimension_numbers<[1], [0], [0], [1], [0, 0, 1, 1], [], []>} : vector<8x64xf32>, vector<64x64xf32>, vector<8x64xf32> -> vector<8x64xf32>
      %83 = arith.negf %82 : vector<8x64xf32>
      %84 = math.exp %83 : vector<8x64xf32>
      %cst_56 = arith.constant 1.000000e+00 : f32
      %85 = vector.broadcast %cst_56 : f32 to vector<8x64xf32>
      %86 = arith.addf %85, %84 : vector<8x64xf32>
      %87 = arith.divf %85, %86 : vector<8x64xf32>
      %c11_57 = arith.constant 11 : index
      %c0_58 = arith.constant 0 : index
      %c0_59 = arith.constant 0 : index
      %88 = vector.load %arg8[%c11_57, %c0_58, %c0_59] : memref<16x64x64xf32, #tpu.memory_space<vmem>>, vector<1x64x64xf32>
      %89 = vector.shape_cast %88 : vector<1x64x64xf32> to vector<64x64xf32>
      %cst_60 = arith.constant dense<0.000000e+00> : vector<8x64xf32>
      %90 = tpu.matmul %79, %89, %cst_60 {dimension_numbers = #tpu.dot_dimension_numbers<[1], [0], [0], [1], [0, 0, 1, 1], [], []>} : vector<8x64xf32>, vector<64x64xf32>, vector<8x64xf32> -> vector<8x64xf32>
      %cst_61 = arith.constant 0.000000e+00 : f32
      %91 = vector.broadcast %cst_61 : f32 to vector<8x64xf32>
      %92 = arith.maximumf %90, %91 : vector<8x64xf32>
      %93 = arith.subf %92, %79 : vector<8x64xf32>
      %94 = arith.mulf %87, %93 : vector<8x64xf32>
      %95 = arith.addf %79, %94 : vector<8x64xf32>
      %c12 = arith.constant 12 : index
      %c0_62 = arith.constant 0 : index
      %c0_63 = arith.constant 0 : index
      %96 = vector.load %arg7[%c12, %c0_62, %c0_63] : memref<16x64x64xf32, #tpu.memory_space<vmem>>, vector<1x64x64xf32>
      %97 = vector.shape_cast %96 : vector<1x64x64xf32> to vector<64x64xf32>
      %cst_64 = arith.constant dense<0.000000e+00> : vector<8x64xf32>
      %98 = tpu.matmul %95, %97, %cst_64 {dimension_numbers = #tpu.dot_dimension_numbers<[1], [0], [0], [1], [0, 0, 1, 1], [], []>} : vector<8x64xf32>, vector<64x64xf32>, vector<8x64xf32> -> vector<8x64xf32>
      %99 = arith.negf %98 : vector<8x64xf32>
      %100 = math.exp %99 : vector<8x64xf32>
      %cst_65 = arith.constant 1.000000e+00 : f32
      %101 = vector.broadcast %cst_65 : f32 to vector<8x64xf32>
      %102 = arith.addf %101, %100 : vector<8x64xf32>
      %103 = arith.divf %101, %102 : vector<8x64xf32>
      %c12_66 = arith.constant 12 : index
      %c0_67 = arith.constant 0 : index
      %c0_68 = arith.constant 0 : index
      %104 = vector.load %arg8[%c12_66, %c0_67, %c0_68] : memref<16x64x64xf32, #tpu.memory_space<vmem>>, vector<1x64x64xf32>
      %105 = vector.shape_cast %104 : vector<1x64x64xf32> to vector<64x64xf32>
      %cst_69 = arith.constant dense<0.000000e+00> : vector<8x64xf32>
      %106 = tpu.matmul %95, %105, %cst_69 {dimension_numbers = #tpu.dot_dimension_numbers<[1], [0], [0], [1], [0, 0, 1, 1], [], []>} : vector<8x64xf32>, vector<64x64xf32>, vector<8x64xf32> -> vector<8x64xf32>
      %cst_70 = arith.constant 0.000000e+00 : f32
      %107 = vector.broadcast %cst_70 : f32 to vector<8x64xf32>
      %108 = arith.maximumf %106, %107 : vector<8x64xf32>
      %109 = arith.subf %108, %95 : vector<8x64xf32>
      %110 = arith.mulf %103, %109 : vector<8x64xf32>
      %111 = arith.addf %95, %110 : vector<8x64xf32>
      %c13 = arith.constant 13 : index
      %c0_71 = arith.constant 0 : index
      %c0_72 = arith.constant 0 : index
      %112 = vector.load %arg7[%c13, %c0_71, %c0_72] : memref<16x64x64xf32, #tpu.memory_space<vmem>>, vector<1x64x64xf32>
      %113 = vector.shape_cast %112 : vector<1x64x64xf32> to vector<64x64xf32>
      %cst_73 = arith.constant dense<0.000000e+00> : vector<8x64xf32>
      %114 = tpu.matmul %48, %113, %cst_73 {dimension_numbers = #tpu.dot_dimension_numbers<[1], [0], [0], [1], [0, 0, 1, 1], [], []>} : vector<8x64xf32>, vector<64x64xf32>, vector<8x64xf32> -> vector<8x64xf32>
      %115 = arith.negf %114 : vector<8x64xf32>
      %116 = math.exp %115 : vector<8x64xf32>
      %cst_74 = arith.constant 1.000000e+00 : f32
      %117 = vector.broadcast %cst_74 : f32 to vector<8x64xf32>
      %118 = arith.addf %117, %116 : vector<8x64xf32>
      %119 = arith.divf %117, %118 : vector<8x64xf32>
      %c13_75 = arith.constant 13 : index
      %c0_76 = arith.constant 0 : index
      %c0_77 = arith.constant 0 : index
      %120 = vector.load %arg8[%c13_75, %c0_76, %c0_77] : memref<16x64x64xf32, #tpu.memory_space<vmem>>, vector<1x64x64xf32>
      %121 = vector.shape_cast %120 : vector<1x64x64xf32> to vector<64x64xf32>
      %cst_78 = arith.constant dense<0.000000e+00> : vector<8x64xf32>
      %122 = tpu.matmul %48, %121, %cst_78 {dimension_numbers = #tpu.dot_dimension_numbers<[1], [0], [0], [1], [0, 0, 1, 1], [], []>} : vector<8x64xf32>, vector<64x64xf32>, vector<8x64xf32> -> vector<8x64xf32>
      %123 = arith.subf %122, %48 : vector<8x64xf32>
      %124 = arith.mulf %119, %123 : vector<8x64xf32>
      %125 = arith.addf %48, %124 : vector<8x64xf32>
      %c14 = arith.constant 14 : index
      %c0_79 = arith.constant 0 : index
      %c0_80 = arith.constant 0 : index
      %126 = vector.load %arg7[%c14, %c0_79, %c0_80] : memref<16x64x64xf32, #tpu.memory_space<vmem>>, vector<1x64x64xf32>
      %127 = vector.shape_cast %126 : vector<1x64x64xf32> to vector<64x64xf32>
      %cst_81 = arith.constant dense<0.000000e+00> : vector<8x64xf32>
      %128 = tpu.matmul %111, %127, %cst_81 {dimension_numbers = #tpu.dot_dimension_numbers<[1], [0], [0], [1], [0, 0, 1, 1], [], []>} : vector<8x64xf32>, vector<64x64xf32>, vector<8x64xf32> -> vector<8x64xf32>
      %129 = arith.negf %128 : vector<8x64xf32>
      %130 = math.exp %129 : vector<8x64xf32>
      %cst_82 = arith.constant 1.000000e+00 : f32
      %131 = vector.broadcast %cst_82 : f32 to vector<8x64xf32>
      %132 = arith.addf %131, %130 : vector<8x64xf32>
      %133 = arith.divf %131, %132 : vector<8x64xf32>
      %c14_83 = arith.constant 14 : index
      %c0_84 = arith.constant 0 : index
      %c0_85 = arith.constant 0 : index
      %134 = vector.load %arg8[%c14_83, %c0_84, %c0_85] : memref<16x64x64xf32, #tpu.memory_space<vmem>>, vector<1x64x64xf32>
      %135 = vector.shape_cast %134 : vector<1x64x64xf32> to vector<64x64xf32>
      %cst_86 = arith.constant dense<0.000000e+00> : vector<8x64xf32>
      %136 = tpu.matmul %111, %135, %cst_86 {dimension_numbers = #tpu.dot_dimension_numbers<[1], [0], [0], [1], [0, 0, 1, 1], [], []>} : vector<8x64xf32>, vector<64x64xf32>, vector<8x64xf32> -> vector<8x64xf32>
      %cst_87 = arith.constant 0.000000e+00 : f32
      %137 = vector.broadcast %cst_87 : f32 to vector<8x64xf32>
      %138 = arith.maximumf %136, %137 : vector<8x64xf32>
      %139 = arith.subf %138, %111 : vector<8x64xf32>
      %140 = arith.mulf %133, %139 : vector<8x64xf32>
      %141 = arith.addf %111, %140 : vector<8x64xf32>
      %c15 = arith.constant 15 : index
      %c0_88 = arith.constant 0 : index
      %c0_89 = arith.constant 0 : index
      %142 = vector.load %arg7[%c15, %c0_88, %c0_89] : memref<16x64x64xf32, #tpu.memory_space<vmem>>, vector<1x64x64xf32>
      %143 = vector.shape_cast %142 : vector<1x64x64xf32> to vector<64x64xf32>
      %cst_90 = arith.constant dense<0.000000e+00> : vector<8x64xf32>
      %144 = tpu.matmul %48, %143, %cst_90 {dimension_numbers = #tpu.dot_dimension_numbers<[1], [0], [0], [1], [0, 0, 1, 1], [], []>} : vector<8x64xf32>, vector<64x64xf32>, vector<8x64xf32> -> vector<8x64xf32>
      %145 = arith.negf %144 : vector<8x64xf32>
      %146 = math.exp %145 : vector<8x64xf32>
      %cst_91 = arith.constant 1.000000e+00 : f32
      %147 = vector.broadcast %cst_91 : f32 to vector<8x64xf32>
      %148 = arith.addf %147, %146 : vector<8x64xf32>
      %149 = arith.divf %147, %148 : vector<8x64xf32>
      %c15_92 = arith.constant 15 : index
      %c0_93 = arith.constant 0 : index
      %c0_94 = arith.constant 0 : index
      %150 = vector.load %arg8[%c15_92, %c0_93, %c0_94] : memref<16x64x64xf32, #tpu.memory_space<vmem>>, vector<1x64x64xf32>
      %151 = vector.shape_cast %150 : vector<1x64x64xf32> to vector<64x64xf32>
      %cst_95 = arith.constant dense<0.000000e+00> : vector<8x64xf32>
      %152 = tpu.matmul %48, %151, %cst_95 {dimension_numbers = #tpu.dot_dimension_numbers<[1], [0], [0], [1], [0, 0, 1, 1], [], []>} : vector<8x64xf32>, vector<64x64xf32>, vector<8x64xf32> -> vector<8x64xf32>
      %cst_96 = arith.constant 0.000000e+00 : f32
      %153 = vector.broadcast %cst_96 : f32 to vector<8x64xf32>
      %154 = arith.maximumf %152, %153 : vector<8x64xf32>
      %155 = arith.subf %154, %48 : vector<8x64xf32>
      %156 = arith.mulf %149, %155 : vector<8x64xf32>
      %157 = arith.addf %48, %156 : vector<8x64xf32>
      %158 = arith.addf %48, %64 : vector<8x64xf32>
      %159 = arith.addf %158, %79 : vector<8x64xf32>
      %160 = arith.addf %159, %95 : vector<8x64xf32>
      %161 = arith.addf %160, %111 : vector<8x64xf32>
      %162 = arith.addf %161, %125 : vector<8x64xf32>
      %163 = arith.addf %162, %141 : vector<8x64xf32>
      %164 = arith.addf %163, %157 : vector<8x64xf32>
      %cst_97 = arith.constant 1.250000e-01 : f32
      %165 = vector.broadcast %cst_97 : f32 to vector<8x64xf32>
      %166 = arith.mulf %164, %165 : vector<8x64xf32>
      %167 = arith.index_cast %arg13 : i32 to index
      %c0_98 = arith.constant 0 : index
      %c0_99 = arith.constant 0 : index
      %168 = vector.load %arg9[%167, %c0_98, %c0_99] : memref<10x8x64xf32, #tpu.memory_space<vmem>>, vector<1x8x64xf32>
      %169 = vector.shape_cast %168 : vector<1x8x64xf32> to vector<8x64xf32>
      %170 = vector.shape_cast %166 : vector<8x64xf32> to vector<1x8x64xf32>
      tpu.vector_store %arg9[%167, %c0_98, %c0_99], %170 {strides = array<i32>} : memref<10x8x64xf32, #tpu.memory_space<vmem>>, vector<1x8x64xf32>,
      scf.yield %166 : vector<8x64xf32>
    }
    %c10_i32_7 = arith.constant 10 : i32
    %c0_8 = arith.constant 0 : index
    %c0_9 = arith.constant 0 : index
    %6 = vector.load %arg11[%c0_8, %c0_9] : memref<8x64xf32, #tpu.memory_space<vmem>>, vector<8x64xf32>
    tpu.vector_store %arg11[%c0_8, %c0_9], %5 {strides = array<i32>} : memref<8x64xf32, #tpu.memory_space<vmem>>, vector<8x64xf32>,
    return
  }
  func.func @transform_0(%arg0: i32) -> (i32, i32, i32) {
    %c0_i32 = arith.constant 0 : i32
    %c0_i32_0 = arith.constant 0 : i32
    %c0_i32_1 = arith.constant 0 : i32
    %c0_i32_2 = arith.constant 0 : i32
    return %c0_i32, %c0_i32_0, %c0_i32_1 : i32, i32, i32
  }
  func.func @transform_1(%arg0: i32) -> (i32, i32) {
    %c0_i32 = arith.constant 0 : i32
    %c0_i32_0 = arith.constant 0 : i32
    %c0_i32_1 = arith.constant 0 : i32
    return %c0_i32, %c0_i32_0 : i32, i32
  }
  func.func @transform_2(%arg0: i32) -> (i32, i32, i32) {
    %c0_i32 = arith.constant 0 : i32
    %c0_i32_0 = arith.constant 0 : i32
    %c0_i32_1 = arith.constant 0 : i32
    %c0_i32_2 = arith.constant 0 : i32
    return %c0_i32, %c0_i32_0, %c0_i32_1 : i32, i32, i32
  }
  func.func @transform_3(%arg0: i32) -> (i32, i32, i32) {
    %c0_i32 = arith.constant 0 : i32
    %c0_i32_0 = arith.constant 0 : i32
    %c0_i32_1 = arith.constant 0 : i32
    %c0_i32_2 = arith.constant 0 : i32
    return %c0_i32, %c0_i32_0, %c0_i32_1 : i32, i32, i32
  }
  func.func @transform_4(%arg0: i32) -> (i32, i32, i32) {
    %c0_i32 = arith.constant 0 : i32
    %c0_i32_0 = arith.constant 0 : i32
    %c0_i32_1 = arith.constant 0 : i32
    %c0_i32_2 = arith.constant 0 : i32
    return %c0_i32, %c0_i32_0, %c0_i32_1 : i32, i32, i32
  }
  func.func @transform_5(%arg0: i32) -> (i32, i32, i32) {
    %c0_i32 = arith.constant 0 : i32
    %c0_i32_0 = arith.constant 0 : i32
    %c0_i32_1 = arith.constant 0 : i32
    %c0_i32_2 = arith.constant 0 : i32
    return %c0_i32, %c0_i32_0, %c0_i32_1 : i32, i32, i32
  }
  func.func @transform_6(%arg0: i32) -> (i32, i32, i32) {
    %c0_i32 = arith.constant 0 : i32
    %c0_i32_0 = arith.constant 0 : i32
    %c0_i32_1 = arith.constant 0 : i32
    %c0_i32_2 = arith.constant 0 : i32
    return %c0_i32, %c0_i32_0, %c0_i32_1 : i32, i32, i32
  }
  func.func @transform_7(%arg0: i32) -> (i32, i32, i32) {
    %c0_i32 = arith.constant 0 : i32
    %c0_i32_0 = arith.constant 0 : i32
    %c0_i32_1 = arith.constant 0 : i32
    %c0_i32_2 = arith.constant 0 : i32
    return %c0_i32, %c0_i32_0, %c0_i32_1 : i32, i32, i32
  }
  func.func @transform_8(%arg0: i32) -> (i32, i32, i32) {
    %c0_i32 = arith.constant 0 : i32
    %c0_i32_0 = arith.constant 0 : i32
    %c0_i32_1 = arith.constant 0 : i32
    %c0_i32_2 = arith.constant 0 : i32
    return %c0_i32, %c0_i32_0, %c0_i32_1 : i32, i32, i32
  }
  func.func @transform_9(%arg0: i32) -> (i32, i32) {
    %c0_i32 = arith.constant 0 : i32
    %c0_i32_0 = arith.constant 0 : i32
    %c0_i32_1 = arith.constant 0 : i32
    return %c0_i32, %c0_i32_0 : i32, i32
  }
  func.func @transform_10(%arg0: i32) -> (i32, i32) {
    %c0_i32 = arith.constant 0 : i32
    %c0_i32_0 = arith.constant 0 : i32
    %c0_i32_1 = arith.constant 0 : i32
    return %c0_i32, %c0_i32_0 : i32, i32
  }
}

</mosaic_0001>

<bundles_post_ra>
// kernel: tpu_custom_call.1
= control target key start
LH: loop header
LB: loop body
LE: loop exit
PB: predicated region body
PF: predicated region fallthrough
CT: control target
= control target key end

     0   :  { %16 = vsyncpa [#allocation4], 0  ;;  %s6380_s0 = inlined_call_operand.hbm [shape: f32[10,8,64], index: 0, kind: input, shape index: {}]   ;;  %s6381_s1 = inlined_call_operand.hbm [shape: f32[8,64], index: 1, kind: input, shape index: {}]   ;;  %s6382_s2 = inlined_call_operand.hbm [shape: f32[2,64,64], index: 2, kind: input, shape index: {}]   ;;  %s6383_s3 = inlined_call_operand.hbm [shape: f32[2,64,64], index: 3, kind: input, shape index: {}]   ;;  %s6384_s4 = inlined_call_operand.hbm [shape: f32[2,64,64], index: 4, kind: input, shape index: {}]   ;;  %s6385_s5 = inlined_call_operand.hbm [shape: f32[2,64,64], index: 5, kind: input, shape index: {}]   ;;  %s6386_s6 = inlined_call_operand.hbm [shape: f32[16,64,64], index: 6, kind: input, shape index: {}]   ;;  %s6387_s7 = inlined_call_operand.hbm [shape: f32[16,64,64], index: 7, kind: input, shape index: {}]   ;;  %s6388_s8 = inlined_call_operand.hbm [shape: f32[10,8,64], index: 8, kind: output, shape index: {0}]   ;;  %s6389_s9 = inlined_call_operand.hbm [shape: f32[8,64], index: 9, kind: output, shape index: {1}]   ;;  %s6390_s10 = inlined_call_operand.hbm [shape: f32[8,64], index: 10, kind: output, shape index: {2}]  }
   0x1   :  { %17 = vsyncpa [#allocation7], 0 }
   0x2   :  { %18 = vsyncpa [#allocation10], 0 }
   0x3   :  { %19 = vsyncpa [#allocation13], 0 }
   0x4   :  { %20 = vsyncpa [#allocation16], 0 }
   0x5   :  { %21 = vsyncpa [#allocation5], 0 }
   0x6   :  { %22 = vsyncpa [#allocation19], 0  ;;  %s5725_s13 = smov [#allocation6]   ;;  %s5437_s17 = scalar_lea.hbm %s6381_s1, 128 }
   0x7   :  { %s41_s14 = sshll.u32 %s5725_s13, 4  ;;  %p5438_p0 = scmp.ne.s32.totalorder %s6381_s1, %s5437_s17  ;;  %s42_s14 = int_to_ptr.vmem [resolvable:$true] %s41_s14 }
   0x8   :  { %p5441_p1 = scmp.lt.u32.totalorder %s5437_s17, %s6381_s1 }
   0xa   :  { %p5443_p2 = pnand %p5441_p1, %p5438_p0 }
   0xc   :  { %5446 = shalt.err (!%p5443_p2)
}
   0xd   :  { %s5447_s22 = scalar_lea.vmem %s42_s14, 128  ;;  %p5452_p4 = scmp.lt.s32.totalorder %s42_s14, %s42_s14 }
   0xe   :  { %p5448_p3 = scmp.ne.s32.totalorder %s42_s14, %s5447_s22  ;;  %p5453_p5 = scmp.lt.s32.totalorder %s5447_s22, %s5447_s22 }
  0x10   :  { %p5454_p6 = por %p5453_p5, %p5452_p4 }
  0x12   :  { %p5455_p7 = pnand %p5454_p6, %p5448_p3 }
  0x14   :  { %5458 = shalt.err (!%p5455_p7)
}
  0x15   :  { %44 = dma.hbm_to_vmem [thread:$0]  %s6381_s1, 128, %s42_s14, [#allocation7]  }
  0x16   :  { %s5726_s25 = smov [#allocation9]   ;;  %s5727_s27 = smov [#allocation12]  }
  0x17   :  { %s62_s26 = sshll.u32 %s5726_s25, 4  ;;  %s86_s28 = sshll.u32 %s5727_s27, 4  ;;  %s63_s26 = int_to_ptr.vmem [resolvable:$true] %s62_s26  ;;  %s87_s28 = int_to_ptr.vmem [resolvable:$true] %s86_s28 }
  0x18   :  { %s5459_s11 = scalar_lea.hbm %s6383_s3, 2048 }
  0x19   :  { %p5460_p8 = scmp.ne.s32.totalorder %s6383_s3, %s5459_s11  ;;  %p5463_p9 = scmp.lt.u32.totalorder %s5459_s11, %s6383_s3 }
  0x1b   :  { %p5465_p10 = pnand %p5463_p9, %p5460_p8 }
  0x1d   :  { %5468 = shalt.err (!%p5465_p10)
}
  0x1e   :  { %s5469_s1 = scalar_lea.vmem %s63_s26, 2048  ;;  %p5474_p12 = scmp.lt.s32.totalorder %s63_s26, %s63_s26 }
  0x1f   :  { %p5470_p11 = scmp.ne.s32.totalorder %s63_s26, %s5469_s1  ;;  %p5475_p13 = scmp.lt.s32.totalorder %s5469_s1, %s5469_s1 }
  0x21   :  { %p5476_p0 = por %p5475_p13, %p5474_p12 }
  0x23   :  { %p5477_p1 = pnand %p5476_p0, %p5470_p11 }
  0x25   :  { %5480 = shalt.err (!%p5477_p1)
}
  0x26   :  { %s5728_s14 = smov 128   ;;  %s5729_s17 = smov 8  }
  0x27   :  { %68 = dma.hbm_to_vmem [thread:$0]  %s6383_s3, 2048, %s63_s26, [#allocation10], %s5728_s14, %s5728_s14, %s5729_s17  }
  0x28   :  { %s5481_s22 = scalar_lea.hbm %s6385_s5, 2048 }
  0x29   :  { %p5482_p2 = scmp.ne.s32.totalorder %s6385_s5, %s5481_s22  ;;  %p5485_p3 = scmp.lt.u32.totalorder %s5481_s22, %s6385_s5 }
  0x2b   :  { %p5487_p4 = pnand %p5485_p3, %p5482_p2 }
  0x2d   :  { %5490 = shalt.err (!%p5487_p4)
}
  0x2e   :  { %s5491_s29 = scalar_lea.vmem %s87_s28, 2048  ;;  %p5496_p6 = scmp.lt.s32.totalorder %s87_s28, %s87_s28 }
  0x2f   :  { %p5492_p5 = scmp.ne.s32.totalorder %s87_s28, %s5491_s29  ;;  %p5497_p7 = scmp.lt.s32.totalorder %s5491_s29, %s5491_s29 }
  0x31   :  { %p5498_p8 = por %p5497_p7, %p5496_p6 }
  0x33   :  { %p5499_p9 = pnand %p5498_p8, %p5492_p5 }
  0x35   :  { %5502 = shalt.err (!%p5499_p9)
}
  0x36   :  { %92 = dma.hbm_to_vmem [thread:$0]  %s6385_s5, 2048, %s87_s28, [#allocation13], %s5728_s14, %s5728_s14, %s5729_s17  }
  0x37   :  { %s5730_s30 = smov [#allocation3]   ;;  %s5731_s12 = smov [#allocation8]  }
  0x38   :  { %s28_s11 = sshll.u32 %s5730_s30, 4  ;;  %s50_s13 = sshll.u32 %s5731_s12, 4  ;;  %s29_s11 = int_to_ptr.vmem [resolvable:$true] %s28_s11  ;;  %s51_s13 = int_to_ptr.vmem [resolvable:$true] %s50_s13 }
  0x39   :  { %s5503_s1 = scalar_lea.hbm %s6380_s0, 1280 }
  0x3a   :  { %p5504_p10 = scmp.ne.s32.totalorder %s6380_s0, %s5503_s1  ;;  %p5507_p11 = scmp.lt.u32.totalorder %s5503_s1, %s6380_s0 }
  0x3c   :  { %p5509_p12 = pnand %p5507_p11, %p5504_p10 }
  0x3e   :  { %5512 = shalt.err (!%p5509_p12)
}
  0x3f   :  { %s5513_s5 = scalar_lea.vmem %s29_s11, 1280  ;;  %p5518_p0 = scmp.lt.s32.totalorder %s29_s11, %s29_s11 }
  0x40   :  { %p5514_p13 = scmp.ne.s32.totalorder %s29_s11, %s5513_s5  ;;  %p5519_p1 = scmp.lt.s32.totalorder %s5513_s5, %s5513_s5 }
  0x42   :  { %p5520_p2 = por %p5519_p1, %p5518_p0 }
  0x44   :  { %p5521_p3 = pnand %p5520_p2, %p5514_p13 }
  0x46   :  { %5524 = shalt.err (!%p5521_p3)
}
  0x47   :  { %34 = dma.hbm_to_vmem [thread:$0]  %s6380_s0, 1280, %s29_s11, [#allocation4], %s5728_s14, %s5728_s14, %s5729_s17  }
  0x48   :  { %s5525_s25 = scalar_lea.hbm %s6382_s2, 2048 }
  0x49   :  { %p5526_p4 = scmp.ne.s32.totalorder %s6382_s2, %s5525_s25  ;;  %p5529_p5 = scmp.lt.u32.totalorder %s5525_s25, %s6382_s2 }
  0x4b   :  { %p5531_p6 = pnand %p5529_p5, %p5526_p4 }
  0x4d   :  { %5534 = shalt.err (!%p5531_p6)
}
  0x4e   :  { %s5535_s30 = scalar_lea.vmem %s51_s13, 2048  ;;  %p5540_p8 = scmp.lt.s32.totalorder %s51_s13, %s51_s13 }
  0x4f   :  { %p5536_p7 = scmp.ne.s32.totalorder %s51_s13, %s5535_s30  ;;  %p5541_p9 = scmp.lt.s32.totalorder %s5535_s30, %s5535_s30 }
  0x51   :  { %p5542_p10 = por %p5541_p9, %p5540_p8 }
  0x53   :  { %p5543_p11 = pnand %p5542_p10, %p5536_p7 }
  0x55   :  { %5546 = shalt.err (!%p5543_p11)
}
  0x56   :  { %56 = dma.hbm_to_vmem [thread:$0]  %s6382_s2, 2048, %s51_s13, [#allocation7], %s5728_s14, %s5728_s14, %s5729_s17  }
  0x57   :  { %s5732_s12 = smov [#allocation11]   ;;  %s5733_s16 = smov [#allocation14]  }
  0x58   :  { %s74_s15 = sshll.u32 %s5732_s12, 4  ;;  %s98_s1 = sshll.u32 %s5733_s16, 4  ;;  %s75_s15 = int_to_ptr.vmem [resolvable:$true] %s74_s15  ;;  %s99_s1 = int_to_ptr.vmem [resolvable:$true] %s98_s1 }
  0x59   :  { %s5547_s20 = scalar_lea.hbm %s6384_s4, 2048 }
  0x5a   :  { %p5548_p12 = scmp.ne.s32.totalorder %s6384_s4, %s5547_s20  ;;  %p5551_p13 = scmp.lt.u32.totalorder %s5547_s20, %s6384_s4 }
  0x5c   :  { %p5553_p0 = pnand %p5551_p13, %p5548_p12 }
  0x5e   :  { %5556 = shalt.err (!%p5553_p0)
}
  0x5f   :  { %s5557_s2 = scalar_lea.vmem %s75_s15, 2048  ;;  %p5562_p2 = scmp.lt.s32.totalorder %s75_s15, %s75_s15 }
  0x60   :  { %p5558_p1 = scmp.ne.s32.totalorder %s75_s15, %s5557_s2  ;;  %p5563_p3 = scmp.lt.s32.totalorder %s5557_s2, %s5557_s2 }
  0x62   :  { %p5564_p4 = por %p5563_p3, %p5562_p2 }
  0x64   :  { %p5565_p5 = pnand %p5564_p4, %p5558_p1 }
  0x66   :  { %5568 = shalt.err (!%p5565_p5)
}
  0x67   :  { %80 = dma.hbm_to_vmem [thread:$0]  %s6384_s4, 2048, %s75_s15, [#allocation10], %s5728_s14, %s5728_s14, %s5729_s17  }
  0x68   :  { %s5569_s27 = scalar_lea.hbm %s6386_s6, 16384 }
  0x69   :  { %p5570_p6 = scmp.ne.s32.totalorder %s6386_s6, %s5569_s27  ;;  %p5573_p7 = scmp.lt.u32.totalorder %s5569_s27, %s6386_s6 }
  0x6b   :  { %p5575_p8 = pnand %p5573_p7, %p5570_p6 }
  0x6d   :  { %5578 = shalt.err (!%p5575_p8)
}
  0x6e   :  { %s5579_s0 = scalar_lea.vmem %s99_s1, 16384  ;;  %p5584_p10 = scmp.lt.s32.totalorder %s99_s1, %s99_s1 }
  0x6f   :  { %p5580_p9 = scmp.ne.s32.totalorder %s99_s1, %s5579_s0  ;;  %p5585_p11 = scmp.lt.s32.totalorder %s5579_s0, %s5579_s0 }
  0x71   :  { %p5586_p12 = por %p5585_p11, %p5584_p10 }
  0x73   :  { %p5587_p13 = pnand %p5586_p12, %p5580_p9 }
  0x75   :  { %5590 = shalt.err (!%p5587_p13)
}
  0x76   :  { %104 = dma.hbm_to_vmem [thread:$0]  %s6386_s6, 16384, %s99_s1, [#allocation13], %s5728_s14, %s5728_s14, %s5729_s17  }
  0x77   :  { %s5734_s12 = smov [#allocation15]   ;;  %s5591_s19 = scalar_lea.hbm %s6387_s7, 16384 }
  0x78   :  { %s110_s15 = sshll.u32 %s5734_s12, 4  ;;  %p5592_p0 = scmp.ne.s32.totalorder %s6387_s7, %s5591_s19  ;;  %s111_s15 = int_to_ptr.vmem [resolvable:$true] %s110_s15 }
  0x79   :  { %p5595_p1 = scmp.lt.u32.totalorder %s5591_s19, %s6387_s7 }
  0x7b   :  { %p5597_p2 = pnand %p5595_p1, %p5592_p0 }
  0x7d   :  { %5600 = shalt.err (!%p5597_p2)
}
  0x7e   :  { %s5601_s22 = scalar_lea.vmem %s111_s15, 16384  ;;  %p5606_p4 = scmp.lt.s32.totalorder %s111_s15, %s111_s15 }
  0x7f   :  { %p5602_p3 = scmp.ne.s32.totalorder %s111_s15, %s5601_s22  ;;  %p5607_p5 = scmp.lt.s32.totalorder %s5601_s22, %s5601_s22 }
  0x81   :  { %p5608_p6 = por %p5607_p5, %p5606_p4 }
  0x83   :  { %p5609_p7 = pnand %p5608_p6, %p5602_p3 }
  0x85   :  { %5612 = shalt.err (!%p5609_p7)
}
  0x86   :  { %116 = dma.hbm_to_vmem [thread:$0]  %s6387_s7, 16384, %s111_s15, [#allocation16], %s5728_s14, %s5728_s14, %s5729_s17  }
  0x87   :  { %5695 = dma.done.wait [#allocation4], 1280  }
  0x88   :  { %5696 = vsyncadd [#allocation4], 4294966016 }
  0x89   :  { %5697 = dma.done.wait [#allocation7], 2176  }
  0x8a   :  { %5698 = vsyncadd [#allocation7], 4294965120 }
  0x8b   :  { %5699 = dma.done.wait [#allocation10], 4096  }
  0x8c   :  { %5700 = vsyncadd [#allocation10], 4294963200 }
  0x8d   :  { %5701 = dma.done.wait [#allocation13], 18432  }
  0x8e   :  { %5702 = vsyncadd [#allocation13], 4294948864 }
  0x8f   :  { %5703 = dma.done.wait [#allocation16], 16384  }
  0x90   :  { %5704 = vsyncadd [#allocation16], 4294950912  ;;  %v141_v0 = vld [vmem:[#allocation6] sm:$0xff]   ;;  %s5918_s2 = smov 0  }
  0x91 LB: > { %v160_v1 = vld [vmem:[#allocation11] sm:$0xff]  ;;  %v161_v2 = vld [vmem:[#allocation11 + $0x8] sm:$0xff]  ;;  %v5735_v4 = vmov 0.0|0.0   ;;  %v162_v7 = vld [vmem:[#allocation11 + $0x10] sm:$0xff]  ;;  %vm5736_vm0 = vmmov 0   ;;  %v5737_v12 = vmov 0.0   ;;  %s5715_s2 = sphi %s5918_s2, %s147_s2   ;;  %v5711_v0 = vphi %v141_v0, %v6391_v0  }
  0x92   : > { %v329_v3 = vld [vmem:[#allocation12] sm:$0xff]  ;;  %4818 = vmatprep.subr.bf16.mxu0 %v5735_v4  ;;  %4842 = vmatprep.subr.bf16.mxu1 %v5735_v4  ;;  %v4819_v5 = vpack.c.bf16 %v161_v2, %v160_v1  ;;  %v330_v6 = vld [vmem:[#allocation12 + $0x8] sm:$0xff]  ;;  %v163_v8 = vld [vmem:[#allocation11 + $0x18] sm:$0xff]  ;;  %vm168_vm1 = vcmask 523264   ;;  %s3638_s7 = sshll.u32 %s5715_s2, 3  ;;  %s147_s2 = sadd.s32 1, %s5715_s2  }
  0x93   : > { %v4843_v9 = vpack.c.bf16 %v330_v6, %v329_v3  ;;  %v331_v10 = vld [vmem:[#allocation12 + $0x10] sm:$0xff]  ;;  %v332_v11 = vld [vmem:[#allocation12 + $0x18] sm:$0xff]  ;;  %4074 = vmatprep.mubr.msk.f32.mxu0 %vm5736_vm0, %v5737_v12  ;;  %4112 = vmatprep.mubr.msk.f32.mxu1 %vm5736_vm0, %v5737_v12  ;;  %v4822_v13 = vpack.c.bf16 %v163_v8, %v162_v7  ;;  %v164_v15 = vld [vmem:[#allocation11 + $0x20] sm:$0xff]  ;;  %s150_s13 = scalar_lea.vmem [#allocation3], %s3638_s7  ;;  %s1848_s23 = scalar_lea.vmem [#allocation2], %s3638_s7 }
  0x94   : > { %4820 = vmatpush3.bf16.msra.mxu0 %v4819_v5  ;;  %v4846_v14 = vpack.c.bf16 %v332_v11, %v331_v10  ;;  %v165_v16 = vld [vmem:[#allocation11 + $0x28] sm:$0xff]  ;;  %v333_v17 = vld [vmem:[#allocation12 + $0x20] sm:$0xff]  ;;  %v166_v21 = vld [vmem:[#allocation11 + $0x30] sm:$0xff]  ;;  %p144_p8 = scmp.ge.s32.totalorder %s147_s2, 10  }
  0x95   : > { %4844 = vmatpush3.bf16.msra.mxu1 %v4843_v9  ;;  %4821 = vmatprep.subr.bf16.mxu0 %v5735_v4  ;;  %v334_v18 = vld [vmem:[#allocation12 + $0x28] sm:$0xff]  ;;  %v4825_v19 = vpack.c.bf16 %v165_v16, %v164_v15  ;;  %v167_v22 = vld [vmem:[#allocation11 + $0x38] sm:$0xff]  ;;  %v335_v23 = vld [vmem:[#allocation12 + $0x30] sm:$0xff]  ;;  %s6127_s24 = smov (%p144_p8), 0  }
  0x96   : > { %4845 = vmatprep.subr.bf16.mxu1 %v5735_v4  ;;  %v4849_v20 = vpack.c.bf16 %v334_v18, %v333_v17  ;;  %v336_v24 = vld [vmem:[#allocation12 + $0x38] sm:$0xff]  ;;  %v4828_v25 = vpack.c.bf16 %v167_v22, %v166_v21  ;;  %v152_v27 = vld [vmem:[#allocation8] sm:$0xff]  ;;  %v153_v28 = vld [vmem:[#allocation8 + $0x8] sm:$0xff] }
  0x97   : > { %v4852_v26 = vpack.c.bf16 %v336_v24, %v335_v23  ;;  %v321_v29 = vld [vmem:[#allocation9] sm:$0xff]  ;;  %v322_v30 = vld [vmem:[#allocation9 + $0x8] sm:$0xff]  ;;  %v4831_v31 = vpack.c.bf16 %v153_v28, %v152_v27  ;;  %v154_v33 = vld [vmem:[#allocation8 + $0x10] sm:$0xff] }
  0x98   : > { %4823 = vmatpush3.bf16.msra.mxu0 %v4822_v13  ;;  %v4855_v32 = vpack.c.bf16 %v322_v30, %v321_v29  ;;  %v155_v34 = vld [vmem:[#allocation8 + $0x18] sm:$0xff]  ;;  %v323_v35 = vld [vmem:[#allocation9 + $0x10] sm:$0xff]  ;;  %v156_v39 = vld [vmem:[#allocation8 + $0x20] sm:$0xff] }
  0x99   : > { %4847 = vmatpush3.bf16.msra.mxu1 %v4846_v14  ;;  %4824 = vmatprep.subr.bf16.mxu0 %v5735_v4  ;;  %v324_v36 = vld [vmem:[#allocation9 + $0x18] sm:$0xff]  ;;  %v4834_v37 = vpack.c.bf16 %v155_v34, %v154_v33  ;;  %v157_v40 = vld [vmem:[#allocation8 + $0x28] sm:$0xff]  ;;  %v325_v41 = vld [vmem:[#allocation9 + $0x20] sm:$0xff] }
  0x9a   : > { %4848 = vmatprep.subr.bf16.mxu1 %v5735_v4  ;;  %v4858_v38 = vpack.c.bf16 %v324_v36, %v323_v35  ;;  %v326_v42 = vld [vmem:[#allocation9 + $0x28] sm:$0xff]  ;;  %v4837_v43 = vpack.c.bf16 %v157_v40, %v156_v39  ;;  %v158_v45 = vld [vmem:[#allocation8 + $0x30] sm:$0xff]  ;;  %v159_v46 = vld [vmem:[#allocation8 + $0x38] sm:$0xff] }
  0x9b   : > { %v4861_v44 = vpack.c.bf16 %v326_v42, %v325_v41  ;;  %v327_v47 = vld [vmem:[#allocation9 + $0x30] sm:$0xff]  ;;  %v328_v48 = vld [vmem:[#allocation9 + $0x38] sm:$0xff]  ;;  %v4840_v49 = vpack.c.bf16 %v159_v46, %v158_v45  ;;  %v481_v52 = vld [vmem:[#allocation14] sm:$0xff] }
  0x9c   : > { %4826 = vmatpush3.bf16.msra.mxu0 %v4825_v19  ;;  %v4864_v50 = vpack.c.bf16 %v328_v48, %v327_v47  ;;  %v151_v51 = vld [vmem:[%s150_s13] sm:$0xff]  ;;  %v482_v53 = vld [vmem:[#allocation14 + $0x8] sm:$0xff]  ;;  %v568_v54 = vld [vmem:[#allocation15] sm:$0xff] }
  0x9d   : > { %4850 = vmatpush3.bf16.msra.mxu1 %v4849_v20  ;;  %4827 = vmatprep.subr.bf16.mxu0 %v5735_v4  ;;  %v4867_v55 = vpack.c.bf16 %v482_v53, %v481_v52  ;;  %v569_v56 = vld [vmem:[#allocation15 + $0x8] sm:$0xff]  ;;  %v483_v58 = vld [vmem:[#allocation14 + $0x10] sm:$0xff]  ;;  %v484_v59 = vld [vmem:[#allocation14 + $0x18] sm:$0xff] }
  0x9e   : > { %4851 = vmatprep.subr.bf16.mxu1 %v5735_v4  ;;  %v4879_v57 = vpack.c.bf16 %v569_v56, %v568_v54  ;;  %v570_v60 = vld [vmem:[#allocation15 + $0x10] sm:$0xff]  ;;  %v4870_v61 = vpack.c.bf16 %v484_v59, %v483_v58  ;;  %v571_v62 = vld [vmem:[#allocation15 + $0x18] sm:$0xff]  ;;  %v485_v1 = vld [vmem:[#allocation14 + $0x20] sm:$0xff] }
  0x9f   : > { %v4882_v63 = vpack.c.bf16 %v571_v62, %v570_v60  ;;  %v486_v2 = vld [vmem:[#allocation14 + $0x28] sm:$0xff]  ;;  %v572_v3 = vld [vmem:[#allocation15 + $0x20] sm:$0xff]  ;;  %v487_v8 = vld [vmem:[#allocation14 + $0x30] sm:$0xff] }
  0xa0   : > { %4829 = vmatpush3.bf16.msra.mxu0 %v4828_v25  ;;  %v4873_v5 = vpack.c.bf16 %v486_v2, %v485_v1  ;;  %v573_v6 = vld [vmem:[#allocation15 + $0x28] sm:$0xff]  ;;  %v488_v9 = vld [vmem:[#allocation14 + $0x38] sm:$0xff]  ;;  %v574_v10 = vld [vmem:[#allocation15 + $0x30] sm:$0xff] }
  0xa1   : > { %4853 = vmatpush3.bf16.msra.mxu1 %v4852_v26  ;;  %4830 = vmatprep.subr.bf16.mxu0 %v5735_v4  ;;  %v4885_v7 = vpack.c.bf16 %v573_v6, %v572_v3  ;;  %v4876_v11 = vpack.c.bf16 %v488_v9, %v487_v8  ;;  %v575_v13 = vld [vmem:[#allocation15 + $0x38] sm:$0xff]  ;;  %v651_v27 = vld [vmem:[#allocation14 + $0x40] sm:$0xff]  ;;  %v652_v28 = vld [vmem:[#allocation14 + $0x48] sm:$0xff] }
  0xa2   : > { %4854 = vmatprep.subr.bf16.mxu1 %v5735_v4  ;;  %v4888_v14 = vpack.c.bf16 %v575_v13, %v574_v10  ;;  %v739_v29 = vld [vmem:[#allocation15 + $0x40] sm:$0xff]  ;;  %v4891_v30 = vpack.c.bf16 %v652_v28, %v651_v27  ;;  %v654_v33 = vld [vmem:[#allocation14 + $0x58] sm:$0xff]  ;;  %v741_v34 = vld [vmem:[#allocation15 + $0x50] sm:$0xff] }
  0xa3   : > { %4075 = vmatmul.mubr.msk.f32.vlgmr.msra.gmra.mrb[0].mxu0 %vm168_vm1, %v5711_v0  ;;  %v742_v36 = vld [vmem:[#allocation15 + $0x58] sm:$0xff]  ;;  %v656_v39 = vld [vmem:[#allocation14 + $0x68] sm:$0xff]  ;;  %v743_v40 = vld [vmem:[#allocation15 + $0x60] sm:$0xff] }
  0xa4   : > { %4832 = vmatpush3.bf16.msra.mxu0 %v4831_v31  ;;  %4113 = vmatmul.mubr.msk.f32.vlgmr.msra.gmra.mrb[0].mxu1 %vm168_vm1, %v5711_v0  ;;  %v740_v31 = vld [vmem:[#allocation15 + $0x48] sm:$0xff]  ;;  %v658_v45 = vld [vmem:[#allocation14 + $0x78] sm:$0xff]  ;;  %v745_v46 = vld [vmem:[#allocation15 + $0x70] sm:$0xff] }
  0xa5   : > { %4856 = vmatpush3.bf16.msra.mxu1 %v4855_v32  ;;  %4833 = vmatprep.subr.bf16.mxu0 %v5735_v4  ;;  %v4903_v32 = vpack.c.bf16 %v740_v31, %v739_v29  ;;  %v744_v42 = vld [vmem:[#allocation15 + $0x68] sm:$0xff]  ;;  %v746_v48 = vld [vmem:[#allocation15 + $0x78] sm:$0xff]  ;;  %v822_v62 = vld [vmem:[#allocation14 + $0x80] sm:$0xff] }
  0xa6   : > { %4857 = vmatprep.subr.bf16.mxu1 %v5735_v4  ;;  %4093 = vmatprep.mubr.msk.f32.mxu0 %vm5736_vm0, %v5737_v12  ;;  %v910_v1 = vld [vmem:[#allocation15 + $0x80] sm:$0xff]  ;;  %v911_v3 = vld [vmem:[#allocation15 + $0x88] sm:$0xff]  ;;  %v824_v6 = vld [vmem:[#allocation14 + $0x90] sm:$0xff] }
  0xa7   : > { %4131 = vmatprep.mubr.msk.f32.mxu1 %vm5736_vm0, %v5737_v12  ;;  %v912_v8 = vld [vmem:[#allocation15 + $0x90] sm:$0xff]  ;;  %v913_v10 = vld [vmem:[#allocation15 + $0x98] sm:$0xff]  ;;  %v826_v13 = vld [vmem:[#allocation14 + $0xa0] sm:$0xff] }
  0xa8   : > { %4835 = vmatpush3.bf16.msra.mxu0 %v4834_v37  ;;  %v4906_v37 = vpack.c.bf16 %v742_v36, %v741_v34  ;;  %v993_v36 = vld [vmem:[#allocation14 + $0xc0] sm:$0xff] }
  0xa9   : > { %4859 = vmatpush3.bf16.msra.mxu1 %v4858_v38  ;;  %4836 = vmatprep.subr.bf16.mxu0 %v5735_v4  ;;  %v655_v38 = vld [vmem:[#allocation14 + $0x60] sm:$0xff] }
  0xaa   : > { %4860 = vmatprep.subr.bf16.mxu1 %v5735_v4  ;;  %v4897_v41 = vpack.c.bf16 %v656_v39, %v655_v38  ;;  %v1081_v38 = vld [vmem:[#allocation15 + $0xc0] sm:$0xff] }
  0xac   : > { %4838 = vmatpush3.bf16.msra.mxu0 %v4837_v43  ;;  %v4909_v43 = vpack.c.bf16 %v744_v42, %v743_v40  ;;  %v1082_v40 = vld [vmem:[#allocation15 + $0xc8] sm:$0xff]  ;;  %v995_v42 = vld [vmem:[#allocation14 + $0xd0] sm:$0xff] }
  0xad   : > { %4862 = vmatpush3.bf16.msra.mxu1 %v4861_v44  ;;  %4839 = vmatprep.subr.bf16.mxu0 %v5735_v4  ;;  %v657_v44 = vld [vmem:[#allocation14 + $0x70] sm:$0xff] }
  0xae   : > { %4863 = vmatprep.subr.bf16.mxu1 %v5735_v4  ;;  %v4900_v47 = vpack.c.bf16 %v658_v45, %v657_v44  ;;  %v1083_v44 = vld [vmem:[#allocation15 + $0xd0] sm:$0xff] }
  0xb0   : > { %4841 = vmatpush3.bf16.msra.mxu0 %v4840_v49  ;;  %v4912_v49 = vpack.c.bf16 %v746_v48, %v745_v46  ;;  %v1084_v46 = vld [vmem:[#allocation15 + $0xd8] sm:$0xff]  ;;  %v997_v48 = vld [vmem:[#allocation14 + $0xe0] sm:$0xff] }
  0xb1   : > { %4865 = vmatpush3.bf16.msra.mxu1 %v4864_v50  ;;  %4866 = vmatprep.subr.bf16.mxu0 %v5735_v4 }
  0xb2   : > { %4878 = vmatprep.subr.bf16.mxu1 %v5735_v4 }
  0xb3   : > { %4094 = vmatmul.mubr.msk.f32.vlgmr.msra.gmra.mrb[0].mxu0 %vm168_vm1, %v151_v51 }
  0xb4   : > { %4132 = vmatmul.mubr.msk.f32.vlgmr.msra.gmra.mrb[0].mxu1 %vm168_vm1, %v151_v51  ;;  %4150 = vmatprep.mubr.msk.f32.mxu0 %vm5736_vm0, %v5737_v12 }
  0xb5   : > { %4169 = vmatprep.mubr.msk.f32.mxu1 %vm5736_vm0, %v5737_v12  ;;  %4868 = vmatpush3.bf16.msra.mxu0 %v4867_v55 }
  0xb6   : > { %4880 = vmatpush3.bf16.msra.mxu1 %v4879_v57  ;;  %4869 = vmatprep.subr.bf16.mxu0 %v5735_v4 }
  0xb7   : > { %4881 = vmatprep.subr.bf16.mxu1 %v5735_v4 }
  0xb9   : > { %4871 = vmatpush3.bf16.msra.mxu0 %v4870_v61 }
  0xba   : > { %4883 = vmatpush3.bf16.msra.mxu1 %v4882_v63  ;;  %4872 = vmatprep.subr.bf16.mxu0 %v5735_v4  ;;  %v823_v63 = vld [vmem:[#allocation14 + $0x88] sm:$0xff] }
  0xbb   : > { %4884 = vmatprep.subr.bf16.mxu1 %v5735_v4  ;;  %v4915_v2 = vpack.c.bf16 %v823_v63, %v822_v62 }
  0xbd   : > { %4874 = vmatpush3.bf16.msra.mxu0 %v4873_v5  ;;  %v4927_v5 = vpack.c.bf16 %v911_v3, %v910_v1 }
  0xbe   : > { %4886 = vmatpush3.bf16.msra.mxu1 %v4885_v7  ;;  %4875 = vmatprep.subr.bf16.mxu0 %v5735_v4  ;;  %v825_v7 = vld [vmem:[#allocation14 + $0x98] sm:$0xff] }
  0xbf   : > { %4887 = vmatprep.subr.bf16.mxu1 %v5735_v4  ;;  %v4918_v9 = vpack.c.bf16 %v825_v7, %v824_v6 }
  0xc1   : > { %4877 = vmatpush3.bf16.msra.mxu0 %v4876_v11  ;;  %v4930_v11 = vpack.c.bf16 %v913_v10, %v912_v8 }
  0xc2   : > { %4889 = vmatpush3.bf16.msra.mxu1 %v4888_v14  ;;  %4890 = vmatprep.subr.bf16.mxu0 %v5735_v4  ;;  %v827_v14 = vld [vmem:[#allocation14 + $0xa8] sm:$0xff] }
  0xc3   : > { %4902 = vmatprep.subr.bf16.mxu1 %v5735_v4 }
 0x186   : > { %v311_v15 = vpop.f32.mrb[0].mxu0 }
 0x187   : > { %v3641_v16 = vmul.f32 -1.442695, %v311_v15  ;;  %v473_v17 = vpop.f32.mrb[0].mxu1  ;;  %v4095_v18 = vpop.f32.mrb[1].mxu0  ;;  %v914_v15 = vld [vmem:[#allocation15 + $0xa0] sm:$0xff] }
 0x188   : > { %v4133_v19 = vpop.f32.mrb[1].mxu1 }
 0x189   : > { %5357 = vpow2.f32 %v3641_v16  ;;  %v4921_v16 = vpack.c.bf16 %v827_v14, %v826_v13  ;;  %v828_v19 = vld [vmem:[#allocation14 + $0xb0] sm:$0xff]  ;;  %v1165_v13 = vld [vmem:[#allocation14 + $0x108] sm:$0xff]  ;;  %v1252_v14 = vld [vmem:[#allocation15 + $0x100] sm:$0xff] }
 0x18a   : > { %5359 = vtanh.f32 %v473_v17  ;;  %v915_v17 = vld [vmem:[#allocation15 + $0xa8] sm:$0xff] }
 0x18b   : > { %v4933_v18 = vpack.c.bf16 %v915_v17, %v914_v15 }
 0x193   : > { %v5358_v20 = vpop.eup %5357 }
 0x194   : > { %v318_v21 = vadd.f32 1.0, %v5358_v20  ;;  %v5360_v22 = vpop.eup %5359  ;;  %v829_v20 = vld [vmem:[#allocation14 + $0xb8] sm:$0xff] }
 0x195   : > { %v478_v23 = vsub.f32 %v5360_v22, %v5711_v0  ;;  %v4924_v22 = vpack.c.bf16 %v829_v20, %v828_v19  ;;  %v1167_v19 = vld [vmem:[#allocation14 + $0x118] sm:$0xff]  ;;  %v1254_v20 = vld [vmem:[#allocation15 + $0x110] sm:$0xff] }
 0x196   : > { %5361 = vrcp.f32 %v318_v21  ;;  %v916_v21 = vld [vmem:[#allocation15 + $0xb0] sm:$0xff] }
 0x1a0   : > { %v5362_v24 = vpop.eup %5361 }
 0x1a1   : > { %v479_v25 = vmul.f32 %v5362_v24, %v478_v23  ;;  %v917_v23 = vld [vmem:[#allocation15 + $0xb8] sm:$0xff] }
 0x1a2   : > { %v4936_v24 = vpack.c.bf16 %v917_v23, %v916_v21 }
 0x1a3   : > { %v480_v26 = vadd.f32 %v5711_v0, %v479_v25  ;;  %v653_v0 = vld [vmem:[#allocation14 + $0x50] sm:$0xff] }
 0x1a4   : > { %v4894_v35 = vpack.c.bf16 %v654_v33, %v653_v0 }
 0x1a5   : > { %4151 = vmatmul.mubr.msk.f32.vlgmr.msra.gmra.mrb[2].mxu0 %vm168_vm1, %v480_v26  ;;  %4170 = vmatmul.mubr.msk.f32.vlgmr.msra.gmra.mrb[2].mxu1 %vm168_vm1, %v480_v26 }
 0x1a6   : > { %4188 = vmatprep.mubr.msk.f32.mxu0 %vm5736_vm0, %v5737_v12  ;;  %4207 = vmatprep.mubr.msk.f32.mxu1 %vm5736_vm0, %v5737_v12 }
 0x1a7   : > { %4892 = vmatpush3.bf16.msra.mxu0 %v4891_v30  ;;  %4904 = vmatpush3.bf16.msra.mxu1 %v4903_v32 }
 0x1a8   : > { %4893 = vmatprep.subr.bf16.mxu0 %v5735_v4  ;;  %4905 = vmatprep.subr.bf16.mxu1 %v5735_v4 }
 0x1ab   : > { %4895 = vmatpush3.bf16.msra.mxu0 %v4894_v35  ;;  %4907 = vmatpush3.bf16.msra.mxu1 %v4906_v37  ;;  %v994_v37 = vld [vmem:[#allocation14 + $0xc8] sm:$0xff] }
 0x1ac   : > { %4896 = vmatprep.subr.bf16.mxu0 %v5735_v4  ;;  %4908 = vmatprep.subr.bf16.mxu1 %v5735_v4  ;;  %v4939_v39 = vpack.c.bf16 %v994_v37, %v993_v36 }
 0x1af   : > { %4898 = vmatpush3.bf16.msra.mxu0 %v4897_v41  ;;  %4910 = vmatpush3.bf16.msra.mxu1 %v4909_v43  ;;  %v4951_v41 = vpack.c.bf16 %v1082_v40, %v1081_v38  ;;  %v996_v43 = vld [vmem:[#allocation14 + $0xd8] sm:$0xff] }
 0x1b0   : > { %4899 = vmatprep.subr.bf16.mxu0 %v5735_v4  ;;  %4911 = vmatprep.subr.bf16.mxu1 %v5735_v4  ;;  %v4942_v45 = vpack.c.bf16 %v996_v43, %v995_v42 }
 0x1b3   : > { %4901 = vmatpush3.bf16.msra.mxu0 %v4900_v47  ;;  %4913 = vmatpush3.bf16.msra.mxu1 %v4912_v49  ;;  %v4954_v47 = vpack.c.bf16 %v1084_v46, %v1083_v44  ;;  %v998_v49 = vld [vmem:[#allocation14 + $0xe8] sm:$0xff]  ;;  %v1335_v44 = vld [vmem:[#allocation14 + $0x140] sm:$0xff] }
 0x1b4   : > { %4914 = vmatprep.subr.bf16.mxu0 %v5735_v4  ;;  %4926 = vmatprep.subr.bf16.mxu1 %v5735_v4  ;;  %v1336_v46 = vld [vmem:[#allocation14 + $0x148] sm:$0xff] }
 0x278   : > { %v558_v50 = vpop.f32.mrb[2].mxu0  ;;  %v642_v51 = vpop.f32.mrb[2].mxu1 }
 0x279   : > { %v3645_v52 = vmul.f32 -1.442695, %v558_v50  ;;  %v4152_v53 = vpop.f32.mrb[3].mxu0  ;;  %v4171_v54 = vpop.f32.mrb[3].mxu1  ;;  %v646_v57 = vmax.f32 %v642_v51, 0.0  ;;  %v1085_v50 = vld [vmem:[#allocation15 + $0xe0] sm:$0xff]  ;;  %v4945_v51 = vpack.c.bf16 %v998_v49, %v997_v48 }
 0x27a   : > { %v999_v54 = vld [vmem:[#allocation14 + $0xf0] sm:$0xff]  ;;  %v1421_v48 = vld [vmem:[#allocation15 + $0x148] sm:$0xff] }
 0x27b   : > { %5363 = vpow2.f32 %v3645_v52  ;;  %v647_v58 = vsub.f32 %v646_v57, %v480_v26  ;;  %v1086_v52 = vld [vmem:[#allocation15 + $0xe8] sm:$0xff] }
 0x27c   : > { %v4957_v53 = vpack.c.bf16 %v1086_v52, %v1085_v50 }
 0x285   : > { %v5364_v55 = vpop.eup %5363 }
 0x286   : > { %v565_v56 = vadd.f32 1.0, %v5364_v55  ;;  %v1000_v55 = vld [vmem:[#allocation14 + $0xf8] sm:$0xff] }
 0x287   : > { %v4948_v57 = vpack.c.bf16 %v1000_v55, %v999_v54  ;;  %v1338_v55 = vld [vmem:[#allocation14 + $0x158] sm:$0xff] }
 0x288   : > { %5365 = vrcp.f32 %v565_v56  ;;  %v1087_v56 = vld [vmem:[#allocation15 + $0xf0] sm:$0xff] }
 0x292   : > { %v5366_v59 = vpop.eup %5365 }
 0x293   : > { %v648_v60 = vmul.f32 %v5366_v59, %v647_v58  ;;  %v1088_v58 = vld [vmem:[#allocation15 + $0xf8] sm:$0xff] }
 0x294   : > { %v4960_v59 = vpack.c.bf16 %v1088_v58, %v1087_v56  ;;  %v1422_v56 = vld [vmem:[#allocation15 + $0x150] sm:$0xff] }
 0x295   : > { %v5989_v61 = vadd.f32 %v648_v60, %v480_v26 }
 0x297   : > { %4189 = vmatmul.mubr.msk.f32.vlgmr.msra.gmra.mrb[4].mxu0 %vm168_vm1, %v5989_v61  ;;  %4208 = vmatmul.mubr.msk.f32.vlgmr.msra.gmra.mrb[4].mxu1 %vm168_vm1, %v5989_v61 }
 0x298   : > { %4226 = vmatprep.mubr.msk.f32.mxu0 %vm5736_vm0, %v5737_v12  ;;  %4245 = vmatprep.mubr.msk.f32.mxu1 %vm5736_vm0, %v5737_v12 }
 0x299   : > { %4916 = vmatpush3.bf16.msra.mxu0 %v4915_v2  ;;  %4928 = vmatpush3.bf16.msra.mxu1 %v4927_v5 }
 0x29a   : > { %4917 = vmatprep.subr.bf16.mxu0 %v5735_v4  ;;  %4929 = vmatprep.subr.bf16.mxu1 %v5735_v4 }
 0x29d   : > { %4919 = vmatpush3.bf16.msra.mxu0 %v4918_v9  ;;  %4931 = vmatpush3.bf16.msra.mxu1 %v4930_v11  ;;  %v1164_v11 = vld [vmem:[#allocation14 + $0x100] sm:$0xff] }
 0x29e   : > { %4920 = vmatprep.subr.bf16.mxu0 %v5735_v4  ;;  %4932 = vmatprep.subr.bf16.mxu1 %v5735_v4  ;;  %v4963_v15 = vpack.c.bf16 %v1165_v13, %v1164_v11  ;;  %v1502_v13 = vld [vmem:[#allocation14 + $0x180] sm:$0xff] }
 0x2a1   : > { %4922 = vmatpush3.bf16.msra.mxu0 %v4921_v16  ;;  %4934 = vmatpush3.bf16.msra.mxu1 %v4933_v18  ;;  %v1253_v16 = vld [vmem:[#allocation15 + $0x108] sm:$0xff]  ;;  %v1166_v18 = vld [vmem:[#allocation14 + $0x110] sm:$0xff] }
 0x2a2   : > { %4923 = vmatprep.subr.bf16.mxu0 %v5735_v4  ;;  %4935 = vmatprep.subr.bf16.mxu1 %v5735_v4  ;;  %v4975_v17 = vpack.c.bf16 %v1253_v16, %v1252_v14  ;;  %v4966_v21 = vpack.c.bf16 %v1167_v19, %v1166_v18  ;;  %v1503_v14 = vld [vmem:[#allocation14 + $0x188] sm:$0xff]  ;;  %v1504_v19 = vld [vmem:[#allocation14 + $0x190] sm:$0xff] }
 0x2a3   : > { %v5011_v16 = vpack.c.bf16 %v1503_v14, %v1502_v13  ;;  %v1763_v13 = vld [vmem:[#allocation15 + $0x1e8] sm:$0xff] }
 0x2a5   : > { %4925 = vmatpush3.bf16.msra.mxu0 %v4924_v22  ;;  %4937 = vmatpush3.bf16.msra.mxu1 %v4936_v24  ;;  %v1255_v22 = vld [vmem:[#allocation15 + $0x118] sm:$0xff]  ;;  %v1168_v24 = vld [vmem:[#allocation14 + $0x120] sm:$0xff] }
 0x2a6   : > { %4938 = vmatprep.subr.bf16.mxu0 %v5735_v4  ;;  %4950 = vmatprep.subr.bf16.mxu1 %v5735_v4  ;;  %v4978_v23 = vpack.c.bf16 %v1255_v22, %v1254_v20  ;;  %v1505_v20 = vld [vmem:[#allocation14 + $0x198] sm:$0xff] }
 0x2a7   : > { %v5014_v22 = vpack.c.bf16 %v1505_v20, %v1504_v19  ;;  %v1765_v19 = vld [vmem:[#allocation15 + $0x1f8] sm:$0xff] }
 0x36a   : > { %v728_v25 = vpop.f32.mrb[4].mxu0  ;;  %v813_v26 = vpop.f32.mrb[4].mxu1 }
 0x36b   : > { %v3648_v27 = vmul.f32 -1.442695, %v728_v25  ;;  %v4190_v28 = vpop.f32.mrb[5].mxu0  ;;  %v4209_v29 = vpop.f32.mrb[5].mxu1  ;;  %v817_v32 = vmax.f32 %v813_v26, 0.0  ;;  %v1169_v25 = vld [vmem:[#allocation14 + $0x128] sm:$0xff] }
 0x36c   : > { %v1256_v26 = vld [vmem:[#allocation15 + $0x120] sm:$0xff]  ;;  %v1257_v28 = vld [vmem:[#allocation15 + $0x128] sm:$0xff] }
 0x36d   : > { %5367 = vpow2.f32 %v3648_v27  ;;  %v818_v0 = vsub.f32 %v817_v32, %v5989_v61  ;;  %v4969_v27 = vpack.c.bf16 %v1169_v25, %v1168_v24  ;;  %v4981_v29 = vpack.c.bf16 %v1257_v28, %v1256_v26  ;;  %v1258_v32 = vld [vmem:[#allocation15 + $0x130] sm:$0xff]  ;;  %v1506_v25 = vld [vmem:[#allocation14 + $0x1a0] sm:$0xff]  ;;  %v1507_v26 = vld [vmem:[#allocation14 + $0x1a8] sm:$0xff] }
 0x36e   : > { %v5017_v28 = vpack.c.bf16 %v1507_v26, %v1506_v25 }
 0x377   : > { %v5368_v30 = vpop.eup %5367 }
 0x378   : > { %v735_v31 = vadd.f32 1.0, %v5368_v30  ;;  %v1170_v30 = vld [vmem:[#allocation14 + $0x130] sm:$0xff] }
 0x37a   : > { %5369 = vrcp.f32 %v735_v31  ;;  %v1171_v31 = vld [vmem:[#allocation14 + $0x138] sm:$0xff] }
 0x384   : > { %v5370_v33 = vpop.eup %5369 }
 0x385   : > { %v819_v34 = vmul.f32 %v5370_v33, %v818_v0  ;;  %v4972_v0 = vpack.c.bf16 %v1171_v31, %v1170_v30  ;;  %v1259_v33 = vld [vmem:[#allocation15 + $0x138] sm:$0xff]  ;;  %v1508_v31 = vld [vmem:[#allocation14 + $0x1b0] sm:$0xff] }
 0x387   : > { %v6009_v35 = vadd.f32 %v819_v34, %v5989_v61  ;;  %v4984_v34 = vpack.c.bf16 %v1259_v33, %v1258_v32  ;;  %v1509_v32 = vld [vmem:[#allocation14 + $0x1b8] sm:$0xff] }
 0x388   : > { %v5020_v33 = vpack.c.bf16 %v1509_v32, %v1508_v31 }
 0x389   : > { %4227 = vmatmul.mubr.msk.f32.vlgmr.msra.gmra.mrb[6].mxu0 %vm168_vm1, %v6009_v35  ;;  %4246 = vmatmul.mubr.msk.f32.vlgmr.msra.gmra.mrb[6].mxu1 %vm168_vm1, %v6009_v35 }
 0x38a   : > { %4264 = vmatprep.mubr.msk.f32.mxu0 %vm5736_vm0, %v5737_v12  ;;  %4283 = vmatprep.mubr.msk.f32.mxu1 %vm5736_vm0, %v5737_v12 }
 0x38b   : > { %4940 = vmatpush3.bf16.msra.mxu0 %v4939_v39  ;;  %4952 = vmatpush3.bf16.msra.mxu1 %v4951_v41 }
 0x38c   : > { %4941 = vmatprep.subr.bf16.mxu0 %v5735_v4  ;;  %4953 = vmatprep.subr.bf16.mxu1 %v5735_v4 }
 0x38f   : > { %4943 = vmatpush3.bf16.msra.mxu0 %v4942_v45  ;;  %4955 = vmatpush3.bf16.msra.mxu1 %v4954_v47  ;;  %v1420_v47 = vld [vmem:[#allocation15 + $0x140] sm:$0xff] }
 0x390   : > { %4944 = vmatprep.subr.bf16.mxu0 %v5735_v4  ;;  %4956 = vmatprep.subr.bf16.mxu1 %v5735_v4  ;;  %v4999_v52 = vpack.c.bf16 %v1421_v48, %v1420_v47 }
 0x393   : > { %4946 = vmatpush3.bf16.msra.mxu0 %v4945_v51  ;;  %4958 = vmatpush3.bf16.msra.mxu1 %v4957_v53  ;;  %v4987_v51 = vpack.c.bf16 %v1336_v46, %v1335_v44  ;;  %v1337_v53 = vld [vmem:[#allocation14 + $0x150] sm:$0xff] }
 0x394   : > { %4947 = vmatprep.subr.bf16.mxu0 %v5735_v4  ;;  %4959 = vmatprep.subr.bf16.mxu1 %v5735_v4  ;;  %v4990_v58 = vpack.c.bf16 %v1338_v55, %v1337_v53  ;;  %v1758_v53 = vld [vmem:[#allocation15 + $0x1c0] sm:$0xff]  ;;  %v1759_v55 = vld [vmem:[#allocation15 + $0x1c8] sm:$0xff] }
 0x397   : > { %4949 = vmatpush3.bf16.msra.mxu0 %v4948_v57  ;;  %4961 = vmatpush3.bf16.msra.mxu1 %v4960_v59  ;;  %v1423_v57 = vld [vmem:[#allocation15 + $0x158] sm:$0xff] }
 0x398   : > { %4962 = vmatprep.subr.bf16.mxu0 %v5735_v4  ;;  %4974 = vmatprep.subr.bf16.mxu1 %v5735_v4  ;;  %v5002_v59 = vpack.c.bf16 %v1423_v57, %v1422_v56 }
 0x45c   : > { %v899_v60 = vpop.f32.mrb[6].mxu0  ;;  %v984_v62 = vpop.f32.mrb[6].mxu1 }
 0x45d   : > { %v3651_v63 = vmul.f32 -1.442695, %v899_v60  ;;  %v4228_v1 = vpop.f32.mrb[7].mxu0  ;;  %v4247_v2 = vpop.f32.mrb[7].mxu1  ;;  %v1339_v60 = vld [vmem:[#allocation14 + $0x160] sm:$0xff] }
 0x45e   : > { %v1425_v1 = vld [vmem:[#allocation15 + $0x168] sm:$0xff] }
 0x45f   : > { %5371 = vpow2.f32 %v3651_v63  ;;  %v1424_v63 = vld [vmem:[#allocation15 + $0x160] sm:$0xff] }
 0x460   : > { %5373 = vtanh.f32 %v984_v62  ;;  %v1340_v62 = vld [vmem:[#allocation14 + $0x168] sm:$0xff] }
 0x461   : > { %v4993_v2 = vpack.c.bf16 %v1340_v62, %v1339_v60  ;;  %v1675_v60 = vld [vmem:[#allocation14 + $0x1d0] sm:$0xff] }
 0x469   : > { %v5372_v3 = vpop.eup %5371 }
 0x46a   : > { %v906_v5 = vadd.f32 1.0, %v5372_v3  ;;  %v5374_v6 = vpop.eup %5373  ;;  %v5005_v3 = vpack.c.bf16 %v1425_v1, %v1424_v63  ;;  %v1676_v1 = vld [vmem:[#allocation14 + $0x1d8] sm:$0xff] }
 0x46b   : > { %v989_v7 = vsub.f32 %v5374_v6, %v6009_v35  ;;  %v1342_v6 = vld [vmem:[#allocation14 + $0x178] sm:$0xff] }
 0x46c   : > { %5375 = vrcp.f32 %v906_v5  ;;  %v1341_v5 = vld [vmem:[#allocation14 + $0x170] sm:$0xff] }
 0x476   : > { %v5376_v8 = vpop.eup %5375 }
 0x477   : > { %v990_v9 = vmul.f32 %v5376_v8, %v989_v7  ;;  %v1426_v7 = vld [vmem:[#allocation15 + $0x170] sm:$0xff]  ;;  %v1427_v8 = vld [vmem:[#allocation15 + $0x178] sm:$0xff] }
 0x478   : > { %v5008_v11 = vpack.c.bf16 %v1427_v8, %v1426_v7  ;;  %v1677_v8 = vld [vmem:[#allocation14 + $0x1e0] sm:$0xff] }
 0x479   : > { %v6029_v10 = vadd.f32 %v990_v9, %v6009_v35  ;;  %v4996_v9 = vpack.c.bf16 %v1342_v6, %v1341_v5  ;;  %v5038_v6 = vpack.c.bf16 %v1676_v1, %v1675_v60 }
 0x47b   : > { %4265 = vmatmul.mubr.msk.f32.vlgmr.msra.gmra.mrb[8].mxu0 %vm168_vm1, %v6029_v10  ;;  %4284 = vmatmul.mubr.msk.f32.vlgmr.msra.gmra.mrb[8].mxu1 %vm168_vm1, %v6029_v10 }
 0x47c   : > { %4302 = vmatprep.mubr.msk.f32.mxu0 %vm5736_vm0, %v5737_v12  ;;  %4321 = vmatprep.mubr.msk.f32.mxu1 %vm5736_vm0, %v5737_v12 }
 0x47d   : > { %4964 = vmatpush3.bf16.msra.mxu0 %v4963_v15  ;;  %4976 = vmatpush3.bf16.msra.mxu1 %v4975_v17  ;;  %v1590_v15 = vld [vmem:[#allocation15 + $0x180] sm:$0xff]  ;;  %v1591_v17 = vld [vmem:[#allocation15 + $0x188] sm:$0xff] }
 0x47e   : > { %4965 = vmatprep.subr.bf16.mxu0 %v5735_v4  ;;  %4977 = vmatprep.subr.bf16.mxu1 %v5735_v4  ;;  %v5023_v18 = vpack.c.bf16 %v1591_v17, %v1590_v15  ;;  %v1680_v17 = vld [vmem:[#allocation14 + $0x1f8] sm:$0xff] }
 0x481   : > { %4967 = vmatpush3.bf16.msra.mxu0 %v4966_v21  ;;  %4979 = vmatpush3.bf16.msra.mxu1 %v4978_v23  ;;  %v1592_v21 = vld [vmem:[#allocation15 + $0x190] sm:$0xff]  ;;  %v1593_v23 = vld [vmem:[#allocation15 + $0x198] sm:$0xff] }
 0x482   : > { %4968 = vmatprep.subr.bf16.mxu0 %v5735_v4  ;;  %4980 = vmatprep.subr.bf16.mxu1 %v5735_v4  ;;  %v5026_v24 = vpack.c.bf16 %v1593_v23, %v1592_v21 }
 0x485   : > { %4970 = vmatpush3.bf16.msra.mxu0 %v4969_v27  ;;  %4982 = vmatpush3.bf16.msra.mxu1 %v4981_v29  ;;  %v1594_v27 = vld [vmem:[#allocation15 + $0x1a0] sm:$0xff]  ;;  %v1595_v29 = vld [vmem:[#allocation15 + $0x1a8] sm:$0xff] }
 0x486   : > { %4971 = vmatprep.subr.bf16.mxu0 %v5735_v4  ;;  %4983 = vmatprep.subr.bf16.mxu1 %v5735_v4  ;;  %v5029_v30 = vpack.c.bf16 %v1595_v29, %v1594_v27 }
 0x489   : > { %4973 = vmatpush3.bf16.msra.mxu0 %v4972_v0  ;;  %4985 = vmatpush3.bf16.msra.mxu1 %v4984_v34  ;;  %v1596_v0 = vld [vmem:[#allocation15 + $0x1b0] sm:$0xff]  ;;  %v1597_v34 = vld [vmem:[#allocation15 + $0x1b8] sm:$0xff] }
 0x48a   : > { %4986 = vmatprep.subr.bf16.mxu0 %v5735_v4  ;;  %4998 = vmatprep.subr.bf16.mxu1 %v5735_v4 }
 0x54e   : > { %v1070_v36 = vpop.f32.mrb[8].mxu0  ;;  %v1155_v37 = vpop.f32.mrb[8].mxu1 }
 0x54f   : > { %v3654_v38 = vmul.f32 -1.442695, %v1070_v36  ;;  %v4266_v39 = vpop.f32.mrb[9].mxu0  ;;  %v4285_v40 = vpop.f32.mrb[9].mxu1  ;;  %v1159_v43 = vmax.f32 %v1155_v37, 0.0  ;;  %v5032_v36 = vpack.c.bf16 %v1597_v34, %v1596_v0  ;;  %v1840_v34 = vadd.f32 %v6009_v35, %v5989_v61 }
 0x551   : > { %5377 = vpow2.f32 %v3654_v38  ;;  %v1160_v45 = vsub.f32 %v1159_v43, %v6029_v10 }
 0x55b   : > { %v5378_v41 = vpop.eup %5377 }
 0x55c   : > { %v1077_v42 = vadd.f32 1.0, %v5378_v41 }
 0x55e   : > { %5379 = vrcp.f32 %v1077_v42 }
 0x568   : > { %v5380_v49 = vpop.eup %5379 }
 0x569   : > { %v1161_v50 = vmul.f32 %v5380_v49, %v1160_v45 }
 0x56b   : > { %v6049_v54 = vadd.f32 %v1161_v50, %v6029_v10  ;;  %v1673_v50 = vld [vmem:[#allocation14 + $0x1c0] sm:$0xff] }
 0x56d   : > { %4303 = vmatmul.mubr.msk.f32.vlgmr.msra.gmra.mrb[10].mxu0 %vm168_vm1, %v6049_v54  ;;  %4322 = vmatmul.mubr.msk.f32.vlgmr.msra.gmra.mrb[10].mxu1 %vm168_vm1, %v6049_v54 }
 0x56e   : > { %4988 = vmatpush3.bf16.msra.mxu0 %v4987_v51  ;;  %5000 = vmatpush3.bf16.msra.mxu1 %v4999_v52  ;;  %v1674_v52 = vld [vmem:[#allocation14 + $0x1c8] sm:$0xff] }
 0x56f   : > { %4989 = vmatprep.subr.bf16.mxu0 %v5735_v4  ;;  %5001 = vmatprep.subr.bf16.mxu1 %v5735_v4 }
 0x570   : > { %4340 = vmatprep.mubr.msk.f32.mxu0 %vm5736_vm0, %v5737_v12  ;;  %4359 = vmatprep.mubr.msk.f32.mxu1 %vm5736_vm0, %v5737_v12 }
 0x572   : > { %4991 = vmatpush3.bf16.msra.mxu0 %v4990_v58  ;;  %5003 = vmatpush3.bf16.msra.mxu1 %v5002_v59  ;;  %v5035_v58 = vpack.c.bf16 %v1674_v52, %v1673_v50  ;;  %v5047_v59 = vpack.c.bf16 %v1759_v55, %v1758_v53 }
 0x573   : > { %4992 = vmatprep.subr.bf16.mxu0 %v5735_v4  ;;  %5004 = vmatprep.subr.bf16.mxu1 %v5735_v4 }
 0x576   : > { %4994 = vmatpush3.bf16.msra.mxu0 %v4993_v2  ;;  %5006 = vmatpush3.bf16.msra.mxu1 %v5005_v3  ;;  %v1760_v2 = vld [vmem:[#allocation15 + $0x1d0] sm:$0xff]  ;;  %v1761_v3 = vld [vmem:[#allocation15 + $0x1d8] sm:$0xff] }
 0x577   : > { %4995 = vmatprep.subr.bf16.mxu0 %v5735_v4  ;;  %5007 = vmatprep.subr.bf16.mxu1 %v5735_v4  ;;  %v5050_v7 = vpack.c.bf16 %v1761_v3, %v1760_v2 }
 0x57a   : > { %4997 = vmatpush3.bf16.msra.mxu0 %v4996_v9  ;;  %5009 = vmatpush3.bf16.msra.mxu1 %v5008_v11  ;;  %v1678_v9 = vld [vmem:[#allocation14 + $0x1e8] sm:$0xff]  ;;  %v1762_v11 = vld [vmem:[#allocation15 + $0x1e0] sm:$0xff] }
 0x57b   : > { %5010 = vmatprep.subr.bf16.mxu0 %v5735_v4  ;;  %5022 = vmatprep.subr.bf16.mxu1 %v5735_v4  ;;  %v5041_v14 = vpack.c.bf16 %v1678_v9, %v1677_v8  ;;  %v5053_v15 = vpack.c.bf16 %v1763_v13, %v1762_v11 }
 0x57d   : > { %4341 = vmatmul.mubr.msk.f32.vlgmr.msra.gmra.mrb[12].mxu0 %vm168_vm1, %v5989_v61  ;;  %4360 = vmatmul.mubr.msk.f32.vlgmr.msra.gmra.mrb[12].mxu1 %vm168_vm1, %v5989_v61 }
 0x57e   : > { %4378 = vmatprep.mubr.msk.f32.mxu0 %vm5736_vm0, %v5737_v12  ;;  %4397 = vmatprep.mubr.msk.f32.mxu1 %vm5736_vm0, %v5737_v12 }
 0x57f   : > { %5012 = vmatpush3.bf16.msra.mxu0 %v5011_v16  ;;  %5024 = vmatpush3.bf16.msra.mxu1 %v5023_v18  ;;  %v1679_v16 = vld [vmem:[#allocation14 + $0x1f0] sm:$0xff] }
 0x580   : > { %5013 = vmatprep.subr.bf16.mxu0 %v5735_v4  ;;  %5025 = vmatprep.subr.bf16.mxu1 %v5735_v4  ;;  %v1764_v18 = vld [vmem:[#allocation15 + $0x1f0] sm:$0xff]  ;;  %v5044_v20 = vpack.c.bf16 %v1680_v17, %v1679_v16 }
 0x581   : > { %v5056_v21 = vpack.c.bf16 %v1765_v19, %v1764_v18 }
 0x583   : > { %5015 = vmatpush3.bf16.msra.mxu0 %v5014_v22  ;;  %5027 = vmatpush3.bf16.msra.mxu1 %v5026_v24 }
 0x584   : > { %5016 = vmatprep.subr.bf16.mxu0 %v5735_v4  ;;  %5028 = vmatprep.subr.bf16.mxu1 %v5735_v4 }
 0x587   : > { %5018 = vmatpush3.bf16.msra.mxu0 %v5017_v28  ;;  %5030 = vmatpush3.bf16.msra.mxu1 %v5029_v30 }
 0x588   : > { %5019 = vmatprep.subr.bf16.mxu0 %v5735_v4  ;;  %5031 = vmatprep.subr.bf16.mxu1 %v5735_v4 }
 0x58b   : > { %5021 = vmatpush3.bf16.msra.mxu0 %v5020_v33  ;;  %5033 = vmatpush3.bf16.msra.mxu1 %v5032_v36 }
 0x58c   : > { %5034 = vmatprep.subr.bf16.mxu0 %v5735_v4  ;;  %5046 = vmatprep.subr.bf16.mxu1 %v5735_v4 }
 0x640   : > { %v1241_v37 = vpop.f32.mrb[10].mxu0  ;;  %v1326_v38 = vpop.f32.mrb[10].mxu1 }
 0x641   : > { %v3657_v39 = vmul.f32 -1.442695, %v1241_v37  ;;  %v4304_v40 = vpop.f32.mrb[11].mxu0  ;;  %v4323_v41 = vpop.f32.mrb[11].mxu1  ;;  %v1330_v49 = vmax.f32 %v1326_v38, 0.0  ;;  %v1841_v37 = vadd.f32 %v1840_v34, %v6029_v10 }
 0x643   : > { %5381 = vpow2.f32 %v3657_v39  ;;  %v1331_v51 = vsub.f32 %v1330_v49, %v6049_v54  ;;  %v1842_v39 = vadd.f32 %v1841_v37, %v6049_v54 }
 0x64d   : > { %v5382_v42 = vpop.eup %5381 }
 0x64e   : > { %v1248_v43 = vadd.f32 1.0, %v5382_v42 }
 0x650   : > { %5383 = vrcp.f32 %v1248_v43  ;;  %v1409_v44 = vpop.f32.mrb[12].mxu0  ;;  %v1494_v45 = vpop.f32.mrb[12].mxu1 }
 0x651   : > { %v3660_v46 = vmul.f32 -1.442695, %v1409_v44  ;;  %v4342_v47 = vpop.f32.mrb[13].mxu0  ;;  %v4361_v48 = vpop.f32.mrb[13].mxu1  ;;  %v1498_v22 = vsub.f32 %v1494_v45, %v5989_v61 }
 0x653   : > { %5385 = vpow2.f32 %v3660_v46 }
 0x65a   : > { %v5384_v56 = vpop.eup %5383 }
 0x65b   : > { %v1332_v57 = vmul.f32 %v5384_v56, %v1331_v51 }
 0x65d   : > { %v5386_v62 = vpop.eup %5385  ;;  %v6085_v63 = vadd.f32 %v1332_v57, %v6049_v54 }
 0x65e   : > { %v1416_v5 = vadd.f32 1.0, %v5386_v62 }
 0x65f   : > { %4379 = vmatmul.mubr.msk.f32.vlgmr.msra.gmra.mrb[14].mxu0 %vm168_vm1, %v6085_v63  ;;  %4398 = vmatmul.mubr.msk.f32.vlgmr.msra.gmra.mrb[14].mxu1 %vm168_vm1, %v6085_v63  ;;  %v1843_v42 = vadd.f32 %v1842_v39, %v6085_v63 }
 0x660   : > { %5387 = vrcp.f32 %v1416_v5  ;;  %5036 = vmatpush3.bf16.msra.mxu0 %v5035_v58  ;;  %5048 = vmatpush3.bf16.msra.mxu1 %v5047_v59 }
 0x661   : > { %5037 = vmatprep.subr.bf16.mxu0 %v5735_v4  ;;  %5049 = vmatprep.subr.bf16.mxu1 %v5735_v4 }
 0x662   : > { %4416 = vmatprep.mubr.msk.f32.mxu0 %vm5736_vm0, %v5737_v12  ;;  %4435 = vmatprep.mubr.msk.f32.mxu1 %vm5736_vm0, %v5737_v12 }
 0x664   : > { %5039 = vmatpush3.bf16.msra.mxu0 %v5038_v6  ;;  %5051 = vmatpush3.bf16.msra.mxu1 %v5050_v7 }
 0x665   : > { %5040 = vmatprep.subr.bf16.mxu0 %v5735_v4  ;;  %5052 = vmatprep.subr.bf16.mxu1 %v5735_v4 }
 0x668   : > { %5042 = vmatpush3.bf16.msra.mxu0 %v5041_v14  ;;  %5054 = vmatpush3.bf16.msra.mxu1 %v5053_v15 }
 0x669   : > { %5043 = vmatprep.subr.bf16.mxu0 %v5735_v4  ;;  %5055 = vmatprep.subr.bf16.mxu1 %v5735_v4 }
 0x66a   : > { %v5388_v12 = vpop.eup %5387 }
 0x66b   : > { %v1499_v23 = vmul.f32 %v5388_v12, %v1498_v22 }
 0x66c   : > { %5045 = vmatpush3.bf16.msra.mxu0 %v5044_v20  ;;  %5057 = vmatpush3.bf16.msra.mxu1 %v5056_v21 }
 0x66d   : > { %v1500_v38 = vadd.f32 %v1499_v23, %v5989_v61 }
 0x66f   : > { %4417 = vmatmul.mubr.msk.f32.vlgmr.msra.gmra.mrb[16].mxu0 %vm168_vm1, %v5989_v61  ;;  %4436 = vmatmul.mubr.msk.f32.vlgmr.msra.gmra.mrb[16].mxu1 %vm168_vm1, %v5989_v61  ;;  %v1844_v45 = vadd.f32 %v1843_v42, %v1500_v38 }
 0x732   : > { %v1579_v24 = vpop.f32.mrb[14].mxu0  ;;  %v1664_v25 = vpop.f32.mrb[14].mxu1 }
 0x733   : > { %v3663_v26 = vmul.f32 -1.442695, %v1579_v24  ;;  %v4380_v27 = vpop.f32.mrb[15].mxu0  ;;  %v4399_v28 = vpop.f32.mrb[15].mxu1  ;;  %v1668_v36 = vmax.f32 %v1664_v25, 0.0 }
 0x735   : > { %5389 = vpow2.f32 %v3663_v26  ;;  %v1669_v40 = vsub.f32 %v1668_v36, %v6085_v63 }
 0x73f   : > { %v5390_v29 = vpop.eup %5389 }
 0x740   : > { %v1586_v30 = vadd.f32 1.0, %v5390_v29 }
 0x742   : > { %5391 = vrcp.f32 %v1586_v30  ;;  %v1747_v4 = vpop.f32.mrb[16].mxu0  ;;  %v1832_v31 = vpop.f32.mrb[16].mxu1 }
 0x743   : > { %v3666_v32 = vmul.f32 -1.442695, %v1747_v4  ;;  %v4418_v0 = vpop.f32.mrb[17].mxu0  ;;  %v4437_v33 = vpop.f32.mrb[17].mxu1  ;;  %v1836_v48 = vmax.f32 %v1832_v31, 0.0 }
 0x745   : > { %5393 = vpow2.f32 %v3666_v32  ;;  %v1837_v10 = vsub.f32 %v1836_v48, %v5989_v61 }
 0x74c   : > { %v5392_v41 = vpop.eup %5391 }
 0x74d   : > { %v1670_v43 = vmul.f32 %v5392_v41, %v1669_v40 }
 0x74f   : > { %v5394_v44 = vpop.eup %5393  ;;  %v1671_v46 = vadd.f32 %v1670_v43, %v6085_v63 }
 0x750   : > { %v1754_v47 = vadd.f32 1.0, %v5394_v44 }
 0x751   : > { %v1845_v35 = vadd.f32 %v1844_v45, %v1671_v46 }
 0x752   : > { %5395 = vrcp.f32 %v1754_v47 }
 0x75c   : > { %v5396_v49 = vpop.eup %5395 }
 0x75d   : > { %v1838_v50 = vmul.f32 %v5396_v49, %v1837_v10 }
 0x75f   : > { %v1839_v54 = vadd.f32 %v1838_v50, %v5989_v61  ;;  %146 = sbr.rel (!%p144_p8) target bundleno = 145 (0x91), region = 152 }
 0x761   : > { %v1846_v51 = vadd.f32 %v1845_v35, %v1839_v54 }
 0x763   : > { %v1847_v52 = vmul.f32 0.125, %v1846_v51  }
 0x765   : > { %1849 = vst.msk [vmem:[%s1848_s23] sm:$0xff] %vm168_vm1, %v1847_v52  ;;  %v6391_v0 = vmov %v1847_v52  ;;  %1851 = vst.msk [vmem:[#allocation18] sm:$0xff] (%p144_p8), %vm168_vm1, %v1847_v52 }
 0x766 LB: > { %v1872_v61 = vld [vmem:[#allocation11 + $0x40] sm:$0xff]  ;;  %v1873_v53 = vld [vmem:[#allocation11 + $0x48] sm:$0xff]  ;;  %v5738_v56 = vmov 0.0|0.0   ;;  %v1874_v59 = vld [vmem:[#allocation11 + $0x50] sm:$0xff]  ;;  %vm5739_vm2 = vmmov 0   ;;  %v5740_v2 = vmov 0.0   ;;  %s5723_s24 = sphi %s6127_s24, %s1857_s24   ;;  %v5719_v52 = vphi %v1847_v52, %v6392_v52  }
 0x767   : > { %v2042_v55 = vld [vmem:[#allocation12 + $0x40] sm:$0xff]  ;;  %5058 = vmatprep.subr.bf16.mxu0 %v5738_v56  ;;  %5082 = vmatprep.subr.bf16.mxu1 %v5738_v56  ;;  %v5059_v57 = vpack.c.bf16 %v1873_v53, %v1872_v61  ;;  %v2043_v58 = vld [vmem:[#allocation12 + $0x48] sm:$0xff]  ;;  %v1875_v60 = vld [vmem:[#allocation11 + $0x58] sm:$0xff]  ;;  %s3668_s25 = sshll.u32 %s5723_s24, 3  ;;  %s1857_s24 = sadd.s32 1, %s5723_s24  }
 0x768   : > { %v5083_v62 = vpack.c.bf16 %v2043_v58, %v2042_v55  ;;  %v2044_v63 = vld [vmem:[#allocation12 + $0x50] sm:$0xff]  ;;  %v2045_v1 = vld [vmem:[#allocation12 + $0x58] sm:$0xff]  ;;  %4454 = vmatprep.mubr.msk.f32.mxu0 %vm5739_vm2, %v5740_v2  ;;  %4492 = vmatprep.mubr.msk.f32.mxu1 %vm5739_vm2, %v5740_v2  ;;  %v5062_v3 = vpack.c.bf16 %v1875_v60, %v1874_v59  ;;  %v1876_v6 = vld [vmem:[#allocation11 + $0x60] sm:$0xff]  ;;  %s1860_s27 = scalar_lea.vmem [#allocation2], %s3668_s25  ;;  %s3563_s29 = scalar_lea.vmem [#allocation17], %s3668_s25 }
 0x769   : > { %5060 = vmatpush3.bf16.msra.mxu0 %v5059_v57  ;;  %v5086_v5 = vpack.c.bf16 %v2045_v1, %v2044_v63  ;;  %v1877_v7 = vld [vmem:[#allocation11 + $0x68] sm:$0xff]  ;;  %v2046_v8 = vld [vmem:[#allocation12 + $0x60] sm:$0xff]  ;;  %v1878_v14 = vld [vmem:[#allocation11 + $0x70] sm:$0xff]  ;;  %p1854_p9 = scmp.ge.s32.totalorder %s1857_s24, 10  }
 0x76a   : > { %5084 = vmatpush3.bf16.msra.mxu1 %v5083_v62  ;;  %5061 = vmatprep.subr.bf16.mxu0 %v5738_v56  ;;  %v2047_v9 = vld [vmem:[#allocation12 + $0x68] sm:$0xff]  ;;  %v5065_v11 = vpack.c.bf16 %v1877_v7, %v1876_v6  ;;  %v1879_v15 = vld [vmem:[#allocation11 + $0x78] sm:$0xff]  ;;  %v2048_v16 = vld [vmem:[#allocation12 + $0x70] sm:$0xff]  ;;  %s5741_s3 = smov (%p1854_p9), [#allocation18]   ;;  %s5742_s30 = smov (%p1854_p9), [#allocation17]  }
 0x76b   : > { %5085 = vmatprep.subr.bf16.mxu1 %v5738_v56  ;;  %v5089_v13 = vpack.c.bf16 %v2047_v9, %v2046_v8  ;;  %v2049_v17 = vld [vmem:[#allocation12 + $0x78] sm:$0xff]  ;;  %v5068_v18 = vpack.c.bf16 %v1879_v15, %v1878_v14  ;;  %v1863_v20 = vld [vmem:[#allocation8 + $0x40] sm:$0xff]  ;;  %v1864_v21 = vld [vmem:[#allocation8 + $0x48] sm:$0xff]  ;;  %s3584_s26 = sshll.u32 (%p1854_p9), %s5741_s3, 4  ;;  %s3571_s0 = sshll.u32 (%p1854_p9), %s5742_s30, 4  ;;  %s3585_s26 = int_to_ptr.vmem [resolvable:$true] %s3584_s26  ;;  %s6334_s0 = int_to_ptr.vmem [resolvable:$true] %s3571_s0 }
 0x76c   : > { %v5092_v19 = vpack.c.bf16 %v2049_v17, %v2048_v16  ;;  %v2033_v22 = vld [vmem:[#allocation9 + $0x40] sm:$0xff]  ;;  %v2034_v12 = vld [vmem:[#allocation9 + $0x48] sm:$0xff]  ;;  %v5071_v23 = vpack.c.bf16 %v1864_v21, %v1863_v20  ;;  %v1865_v25 = vld [vmem:[#allocation8 + $0x50] sm:$0xff]  ;;  %s5613_s4 = scalar_lea.vmem (%p1854_p9), %s3585_s26, 128  ;;  %p5618_p11 = scmp.lt.s32.totalorder (%p1854_p9), %s3585_s26, %s3585_s26 }
 0x76d   : > { %5063 = vmatpush3.bf16.msra.mxu0 %v5062_v3  ;;  %v5095_v24 = vpack.c.bf16 %v2034_v12, %v2033_v22  ;;  %v1866_v26 = vld [vmem:[#allocation8 + $0x58] sm:$0xff]  ;;  %v2035_v27 = vld [vmem:[#allocation9 + $0x50] sm:$0xff]  ;;  %v1867_v4 = vld [vmem:[#allocation8 + $0x60] sm:$0xff]  ;;  %p5614_p10 = scmp.ne.s32.totalorder (%p1854_p9), %s3585_s26, %s5613_s4  ;;  %p5619_p12 = scmp.lt.s32.totalorder (%p1854_p9), %s5613_s4, %s5613_s4 }
 0x76e   : > { %5087 = vmatpush3.bf16.msra.mxu1 %v5086_v5  ;;  %5064 = vmatprep.subr.bf16.mxu0 %v5738_v56  ;;  %v2036_v28 = vld [vmem:[#allocation9 + $0x58] sm:$0xff]  ;;  %v5074_v29 = vpack.c.bf16 %v1866_v26, %v1865_v25  ;;  %v1868_v31 = vld [vmem:[#allocation8 + $0x68] sm:$0xff]  ;;  %v2037_v32 = vld [vmem:[#allocation9 + $0x60] sm:$0xff] }
 0x76f   : > { %5088 = vmatprep.subr.bf16.mxu1 %v5738_v56  ;;  %v5098_v30 = vpack.c.bf16 %v2036_v28, %v2035_v27  ;;  %v2038_v0 = vld [vmem:[#allocation9 + $0x68] sm:$0xff]  ;;  %v5077_v33 = vpack.c.bf16 %v1868_v31, %v1867_v4  ;;  %v1869_v36 = vld [vmem:[#allocation8 + $0x70] sm:$0xff]  ;;  %v1870_v37 = vld [vmem:[#allocation8 + $0x78] sm:$0xff]  ;;  %p5620_p13 = por (%p1854_p9), %p5619_p12, %p5618_p11 }
 0x770   : > { %v5101_v34 = vpack.c.bf16 %v2038_v0, %v2037_v32  ;;  %v2039_v38 = vld [vmem:[#allocation9 + $0x70] sm:$0xff]  ;;  %v2040_v39 = vld [vmem:[#allocation9 + $0x78] sm:$0xff]  ;;  %v5080_v40 = vpack.c.bf16 %v1870_v37, %v1869_v36  ;;  %v2195_v43 = vld [vmem:[#allocation14 + $0x200] sm:$0xff] }
 0x771   : > { %5066 = vmatpush3.bf16.msra.mxu0 %v5065_v11  ;;  %v5104_v41 = vpack.c.bf16 %v2040_v39, %v2039_v38  ;;  %v1861_v42 = vld [vmem:[%s1860_s27] sm:$0xff]  ;;  %v2196_v44 = vld [vmem:[#allocation14 + $0x208] sm:$0xff]  ;;  %v2283_v45 = vld [vmem:[#allocation15 + $0x200] sm:$0xff]  ;;  %p5621_p0 = pnand (%p1854_p9), %p5620_p13, %p5614_p10 }
 0x772   : > { %5090 = vmatpush3.bf16.msra.mxu1 %v5089_v13  ;;  %5067 = vmatprep.subr.bf16.mxu0 %v5738_v56  ;;  %v5107_v46 = vpack.c.bf16 %v2196_v44, %v2195_v43  ;;  %v2284_v47 = vld [vmem:[#allocation15 + $0x208] sm:$0xff]  ;;  %v2197_v48 = vld [vmem:[#allocation14 + $0x210] sm:$0xff]  ;;  %v2198_v10 = vld [vmem:[#allocation14 + $0x218] sm:$0xff] }
 0x773   : > { %5091 = vmatprep.subr.bf16.mxu1 %v5738_v56  ;;  %v5119_v35 = vpack.c.bf16 %v2284_v47, %v2283_v45  ;;  %v2285_v49 = vld [vmem:[#allocation15 + $0x210] sm:$0xff]  ;;  %v5110_v50 = vpack.c.bf16 %v2198_v10, %v2197_v48  ;;  %v2286_v54 = vld [vmem:[#allocation15 + $0x218] sm:$0xff]  ;;  %v2199_v61 = vld [vmem:[#allocation14 + $0x220] sm:$0xff] }
 0x774   : > { %v5122_v51 = vpack.c.bf16 %v2286_v54, %v2285_v49  ;;  %v2200_v53 = vld [vmem:[#allocation14 + $0x228] sm:$0xff]  ;;  %v2287_v55 = vld [vmem:[#allocation15 + $0x220] sm:$0xff]  ;;  %v2201_v60 = vld [vmem:[#allocation14 + $0x230] sm:$0xff] }
 0x775   : > { %5069 = vmatpush3.bf16.msra.mxu0 %v5068_v18  ;;  %v2288_v57 = vld [vmem:[#allocation15 + $0x228] sm:$0xff]  ;;  %v5113_v58 = vpack.c.bf16 %v2200_v53, %v2199_v61  ;;  %v2202_v62 = vld [vmem:[#allocation14 + $0x238] sm:$0xff]  ;;  %v2289_v63 = vld [vmem:[#allocation15 + $0x230] sm:$0xff] }
 0x776   : > { %5093 = vmatpush3.bf16.msra.mxu1 %v5092_v19  ;;  %5070 = vmatprep.subr.bf16.mxu0 %v5738_v56  ;;  %v5125_v59 = vpack.c.bf16 %v2288_v57, %v2287_v55  ;;  %v2290_v1 = vld [vmem:[#allocation15 + $0x238] sm:$0xff]  ;;  %v5116_v3 = vpack.c.bf16 %v2202_v62, %v2201_v60  ;;  %v2366_v20 = vld [vmem:[#allocation14 + $0x240] sm:$0xff]  ;;  %v2367_v21 = vld [vmem:[#allocation14 + $0x248] sm:$0xff] }
 0x777   : > { %5094 = vmatprep.subr.bf16.mxu1 %v5738_v56  ;;  %v5128_v5 = vpack.c.bf16 %v2290_v1, %v2289_v63  ;;  %v2454_v22 = vld [vmem:[#allocation15 + $0x240] sm:$0xff]  ;;  %v5131_v12 = vpack.c.bf16 %v2367_v21, %v2366_v20  ;;  %v2369_v25 = vld [vmem:[#allocation14 + $0x258] sm:$0xff]  ;;  %v2456_v26 = vld [vmem:[#allocation15 + $0x250] sm:$0xff] }
 0x778   : > { %4455 = vmatmul.mubr.msk.f32.vlgmr.msra.gmra.mrb[0].mxu0 %vm168_vm1, %v5719_v52  ;;  %v2457_v28 = vld [vmem:[#allocation15 + $0x258] sm:$0xff]  ;;  %v2371_v4 = vld [vmem:[#allocation14 + $0x268] sm:$0xff]  ;;  %v2458_v31 = vld [vmem:[#allocation15 + $0x260] sm:$0xff] }
 0x779   : > { %5072 = vmatpush3.bf16.msra.mxu0 %v5071_v23  ;;  %4493 = vmatmul.mubr.msk.f32.vlgmr.msra.gmra.mrb[0].mxu1 %vm168_vm1, %v5719_v52  ;;  %v2455_v23 = vld [vmem:[#allocation15 + $0x248] sm:$0xff]  ;;  %v2373_v36 = vld [vmem:[#allocation14 + $0x278] sm:$0xff]  ;;  %v2460_v37 = vld [vmem:[#allocation15 + $0x270] sm:$0xff] }
 0x77a   : > { %5096 = vmatpush3.bf16.msra.mxu1 %v5095_v24  ;;  %5073 = vmatprep.subr.bf16.mxu0 %v5738_v56  ;;  %v5143_v24 = vpack.c.bf16 %v2455_v23, %v2454_v22  ;;  %v2459_v0 = vld [vmem:[#allocation15 + $0x268] sm:$0xff]  ;;  %v2461_v39 = vld [vmem:[#allocation15 + $0x278] sm:$0xff]  ;;  %v2537_v54 = vld [vmem:[#allocation14 + $0x280] sm:$0xff] }
 0x77b   : > { %5097 = vmatprep.subr.bf16.mxu1 %v5738_v56  ;;  %4473 = vmatprep.mubr.msk.f32.mxu0 %vm5739_vm2, %v5740_v2  ;;  %v2625_v61 = vld [vmem:[#allocation15 + $0x280] sm:$0xff]  ;;  %v2626_v55 = vld [vmem:[#allocation15 + $0x288] sm:$0xff]  ;;  %v2627_v60 = vld [vmem:[#allocation15 + $0x290] sm:$0xff] }
 0x77c   : > { %4511 = vmatprep.mubr.msk.f32.mxu1 %vm5739_vm2, %v5740_v2  ;;  %v5167_v57 = vpack.c.bf16 %v2626_v55, %v2625_v61  ;;  %v2628_v63 = vld [vmem:[#allocation15 + $0x298] sm:$0xff] }
 0x77d   : > { %5075 = vmatpush3.bf16.msra.mxu0 %v5074_v29  ;;  %v5146_v29 = vpack.c.bf16 %v2457_v28, %v2456_v26  ;;  %v5170_v1 = vpack.c.bf16 %v2628_v63, %v2627_v60  ;;  %v2708_v28 = vld [vmem:[#allocation14 + $0x2c0] sm:$0xff] }
 0x77e   : > { %5099 = vmatpush3.bf16.msra.mxu1 %v5098_v30  ;;  %5076 = vmatprep.subr.bf16.mxu0 %v5738_v56  ;;  %v2370_v30 = vld [vmem:[#allocation14 + $0x260] sm:$0xff] }
 0x77f   : > { %5100 = vmatprep.subr.bf16.mxu1 %v5738_v56  ;;  %v5137_v32 = vpack.c.bf16 %v2371_v4, %v2370_v30  ;;  %v2796_v30 = vld [vmem:[#allocation15 + $0x2c0] sm:$0xff] }
 0x781   : > { %5078 = vmatpush3.bf16.msra.mxu0 %v5077_v33  ;;  %v5149_v33 = vpack.c.bf16 %v2459_v0, %v2458_v31  ;;  %v2797_v31 = vld [vmem:[#allocation15 + $0x2c8] sm:$0xff]  ;;  %v2710_v0 = vld [vmem:[#allocation14 + $0x2d0] sm:$0xff] }
 0x782   : > { %5102 = vmatpush3.bf16.msra.mxu1 %v5101_v34  ;;  %5079 = vmatprep.subr.bf16.mxu0 %v5738_v56  ;;  %v2372_v34 = vld [vmem:[#allocation14 + $0x270] sm:$0xff] }
 0x783   : > { %5103 = vmatprep.subr.bf16.mxu1 %v5738_v56  ;;  %v5140_v38 = vpack.c.bf16 %v2373_v36, %v2372_v34  ;;  %v2798_v34 = vld [vmem:[#allocation15 + $0x2d0] sm:$0xff] }
 0x785   : > { %5081 = vmatpush3.bf16.msra.mxu0 %v5080_v40  ;;  %v5152_v40 = vpack.c.bf16 %v2461_v39, %v2460_v37  ;;  %v2799_v37 = vld [vmem:[#allocation15 + $0x2d8] sm:$0xff]  ;;  %v2712_v39 = vld [vmem:[#allocation14 + $0x2e0] sm:$0xff] }
 0x786   : > { %5105 = vmatpush3.bf16.msra.mxu1 %v5104_v41  ;;  %5106 = vmatprep.subr.bf16.mxu0 %v5738_v56 }
 0x787   : > { %5118 = vmatprep.subr.bf16.mxu1 %v5738_v56 }
 0x788   : > { %4474 = vmatmul.mubr.msk.f32.vlgmr.msra.gmra.mrb[0].mxu0 %vm168_vm1, %v1861_v42 }
 0x789   : > { %4512 = vmatmul.mubr.msk.f32.vlgmr.msra.gmra.mrb[0].mxu1 %vm168_vm1, %v1861_v42  ;;  %4530 = vmatprep.mubr.msk.f32.mxu0 %vm5739_vm2, %v5740_v2 }
 0x78a   : > { %4549 = vmatprep.mubr.msk.f32.mxu1 %vm5739_vm2, %v5740_v2  ;;  %5108 = vmatpush3.bf16.msra.mxu0 %v5107_v46 }
 0x78b   : > { %5120 = vmatpush3.bf16.msra.mxu1 %v5119_v35  ;;  %5109 = vmatprep.subr.bf16.mxu0 %v5738_v56 }
 0x78c   : > { %5121 = vmatprep.subr.bf16.mxu1 %v5738_v56 }
 0x78e   : > { %5111 = vmatpush3.bf16.msra.mxu0 %v5110_v50 }
 0x78f   : > { %5123 = vmatpush3.bf16.msra.mxu1 %v5122_v51  ;;  %5112 = vmatprep.subr.bf16.mxu0 %v5738_v56  ;;  %v2538_v51 = vld [vmem:[#allocation14 + $0x288] sm:$0xff] }
 0x790   : > { %5124 = vmatprep.subr.bf16.mxu1 %v5738_v56  ;;  %v5155_v53 = vpack.c.bf16 %v2538_v51, %v2537_v54 }
 0x792   : > { %5114 = vmatpush3.bf16.msra.mxu0 %v5113_v58  ;;  %v2539_v58 = vld [vmem:[#allocation14 + $0x290] sm:$0xff] }
 0x793   : > { %5126 = vmatpush3.bf16.msra.mxu1 %v5125_v59  ;;  %5115 = vmatprep.subr.bf16.mxu0 %v5738_v56  ;;  %v2540_v59 = vld [vmem:[#allocation14 + $0x298] sm:$0xff] }
 0x794   : > { %5127 = vmatprep.subr.bf16.mxu1 %v5738_v56  ;;  %v5158_v62 = vpack.c.bf16 %v2540_v59, %v2539_v58 }
 0x796   : > { %5117 = vmatpush3.bf16.msra.mxu0 %v5116_v3  ;;  %v2541_v3 = vld [vmem:[#allocation14 + $0x2a0] sm:$0xff] }
 0x797   : > { %5129 = vmatpush3.bf16.msra.mxu1 %v5128_v5  ;;  %5130 = vmatprep.subr.bf16.mxu0 %v5738_v56  ;;  %v2542_v5 = vld [vmem:[#allocation14 + $0x2a8] sm:$0xff] }
 0x798   : > { %5142 = vmatprep.subr.bf16.mxu1 %v5738_v56 }
 0x85b   : > { %v2022_v6 = vpop.f32.mrb[0].mxu0 }
 0x85c   : > { %v3671_v7 = vmul.f32 -1.442695, %v2022_v6  ;;  %v2186_v8 = vpop.f32.mrb[0].mxu1  ;;  %v4475_v9 = vpop.f32.mrb[1].mxu0  ;;  %v2629_v6 = vld [vmem:[#allocation15 + $0x2a0] sm:$0xff] }
 0x85d   : > { %v4513_v11 = vpop.f32.mrb[1].mxu1 }
 0x85e   : > { %5397 = vpow2.f32 %v3671_v7  ;;  %v5161_v7 = vpack.c.bf16 %v2542_v5, %v2541_v3  ;;  %v2543_v11 = vld [vmem:[#allocation14 + $0x2b0] sm:$0xff]  ;;  %v2880_v3 = vld [vmem:[#allocation14 + $0x308] sm:$0xff]  ;;  %v2967_v5 = vld [vmem:[#allocation15 + $0x300] sm:$0xff] }
 0x85f   : > { %5399 = vtanh.f32 %v2186_v8  ;;  %v2630_v8 = vld [vmem:[#allocation15 + $0x2a8] sm:$0xff] }
 0x860   : > { %v5173_v9 = vpack.c.bf16 %v2630_v8, %v2629_v6 }
 0x868   : > { %v5398_v13 = vpop.eup %5397 }
 0x869   : > { %v2029_v14 = vadd.f32 1.0, %v5398_v13  ;;  %v5400_v15 = vpop.eup %5399  ;;  %v2544_v13 = vld [vmem:[#allocation14 + $0x2b8] sm:$0xff] }
 0x86a   : > { %v2191_v16 = vsub.f32 %v5400_v15, %v5719_v52  ;;  %v5164_v15 = vpack.c.bf16 %v2544_v13, %v2543_v11  ;;  %v2882_v11 = vld [vmem:[#allocation14 + $0x318] sm:$0xff]  ;;  %v2969_v13 = vld [vmem:[#allocation15 + $0x310] sm:$0xff] }
 0x86b   : > { %5401 = vrcp.f32 %v2029_v14  ;;  %v2631_v14 = vld [vmem:[#allocation15 + $0x2b0] sm:$0xff] }
 0x875   : > { %v5402_v17 = vpop.eup %5401 }
 0x876   : > { %v2192_v18 = vmul.f32 %v5402_v17, %v2191_v16  ;;  %v2632_v16 = vld [vmem:[#allocation15 + $0x2b8] sm:$0xff] }
 0x877   : > { %v5176_v17 = vpack.c.bf16 %v2632_v16, %v2631_v14 }
 0x878   : > { %v2193_v19 = vadd.f32 %v5719_v52, %v2192_v18  ;;  %v2368_v52 = vld [vmem:[#allocation14 + $0x250] sm:$0xff] }
 0x879   : > { %v5134_v27 = vpack.c.bf16 %v2369_v25, %v2368_v52 }
 0x87a   : > { %4531 = vmatmul.mubr.msk.f32.vlgmr.msra.gmra.mrb[2].mxu0 %vm168_vm1, %v2193_v19  ;;  %4550 = vmatmul.mubr.msk.f32.vlgmr.msra.gmra.mrb[2].mxu1 %vm168_vm1, %v2193_v19 }
 0x87b   : > { %4568 = vmatprep.mubr.msk.f32.mxu0 %vm5739_vm2, %v5740_v2  ;;  %4587 = vmatprep.mubr.msk.f32.mxu1 %vm5739_vm2, %v5740_v2 }
 0x87c   : > { %5132 = vmatpush3.bf16.msra.mxu0 %v5131_v12  ;;  %5144 = vmatpush3.bf16.msra.mxu1 %v5143_v24 }
 0x87d   : > { %5133 = vmatprep.subr.bf16.mxu0 %v5738_v56  ;;  %5145 = vmatprep.subr.bf16.mxu1 %v5738_v56 }
 0x880   : > { %5135 = vmatpush3.bf16.msra.mxu0 %v5134_v27  ;;  %5147 = vmatpush3.bf16.msra.mxu1 %v5146_v29  ;;  %v2709_v29 = vld [vmem:[#allocation14 + $0x2c8] sm:$0xff] }
 0x881   : > { %5136 = vmatprep.subr.bf16.mxu0 %v5738_v56  ;;  %5148 = vmatprep.subr.bf16.mxu1 %v5738_v56  ;;  %v5179_v4 = vpack.c.bf16 %v2709_v29, %v2708_v28 }
 0x884   : > { %5138 = vmatpush3.bf16.msra.mxu0 %v5137_v32  ;;  %5150 = vmatpush3.bf16.msra.mxu1 %v5149_v33  ;;  %v5191_v32 = vpack.c.bf16 %v2797_v31, %v2796_v30  ;;  %v2711_v33 = vld [vmem:[#allocation14 + $0x2d8] sm:$0xff] }
 0x885   : > { %5139 = vmatprep.subr.bf16.mxu0 %v5738_v56  ;;  %5151 = vmatprep.subr.bf16.mxu1 %v5738_v56  ;;  %v5182_v36 = vpack.c.bf16 %v2711_v33, %v2710_v0 }
 0x888   : > { %5141 = vmatpush3.bf16.msra.mxu0 %v5140_v38  ;;  %5153 = vmatpush3.bf16.msra.mxu1 %v5152_v40  ;;  %v5194_v38 = vpack.c.bf16 %v2799_v37, %v2798_v34  ;;  %v2713_v40 = vld [vmem:[#allocation14 + $0x2e8] sm:$0xff]  ;;  %v3050_v34 = vld [vmem:[#allocation14 + $0x340] sm:$0xff] }
 0x889   : > { %5154 = vmatprep.subr.bf16.mxu0 %v5738_v56  ;;  %5166 = vmatprep.subr.bf16.mxu1 %v5738_v56  ;;  %v3051_v37 = vld [vmem:[#allocation14 + $0x348] sm:$0xff] }
 0x94d   : > { %v2272_v41 = vpop.f32.mrb[2].mxu0  ;;  %v2357_v42 = vpop.f32.mrb[2].mxu1 }
 0x94e   : > { %v3675_v43 = vmul.f32 -1.442695, %v2272_v41  ;;  %v4532_v44 = vpop.f32.mrb[3].mxu0  ;;  %v4551_v45 = vpop.f32.mrb[3].mxu1  ;;  %v2361_v35 = vmax.f32 %v2357_v42, 0.0  ;;  %v2800_v41 = vld [vmem:[#allocation15 + $0x2e0] sm:$0xff]  ;;  %v5185_v42 = vpack.c.bf16 %v2713_v40, %v2712_v39 }
 0x94f   : > { %v2714_v45 = vld [vmem:[#allocation14 + $0x2f0] sm:$0xff]  ;;  %v3136_v39 = vld [vmem:[#allocation15 + $0x348] sm:$0xff] }
 0x950   : > { %5403 = vpow2.f32 %v3675_v43  ;;  %v2362_v48 = vsub.f32 %v2361_v35, %v2193_v19  ;;  %v2801_v43 = vld [vmem:[#allocation15 + $0x2e8] sm:$0xff] }
 0x951   : > { %v5197_v44 = vpack.c.bf16 %v2801_v43, %v2800_v41 }
 0x95a   : > { %v5404_v46 = vpop.eup %5403 }
 0x95b   : > { %v2279_v47 = vadd.f32 1.0, %v5404_v46  ;;  %v2715_v46 = vld [vmem:[#allocation14 + $0x2f8] sm:$0xff] }
 0x95c   : > { %v5188_v35 = vpack.c.bf16 %v2715_v46, %v2714_v45  ;;  %v3053_v46 = vld [vmem:[#allocation14 + $0x358] sm:$0xff] }
 0x95d   : > { %5405 = vrcp.f32 %v2279_v47  ;;  %v2802_v47 = vld [vmem:[#allocation15 + $0x2f0] sm:$0xff] }
 0x967   : > { %v5406_v10 = vpop.eup %5405 }
 0x968   : > { %v2363_v49 = vmul.f32 %v5406_v10, %v2362_v48  ;;  %v2803_v48 = vld [vmem:[#allocation15 + $0x2f8] sm:$0xff] }
 0x969   : > { %v5200_v10 = vpack.c.bf16 %v2803_v48, %v2802_v47  ;;  %v3137_v47 = vld [vmem:[#allocation15 + $0x350] sm:$0xff] }
 0x96a   : > { %v6198_v50 = vadd.f32 %v2363_v49, %v2193_v19 }
 0x96c   : > { %4569 = vmatmul.mubr.msk.f32.vlgmr.msra.gmra.mrb[4].mxu0 %vm168_vm1, %v6198_v50  ;;  %4588 = vmatmul.mubr.msk.f32.vlgmr.msra.gmra.mrb[4].mxu1 %vm168_vm1, %v6198_v50 }
 0x96d   : > { %4606 = vmatprep.mubr.msk.f32.mxu0 %vm5739_vm2, %v5740_v2  ;;  %4625 = vmatprep.mubr.msk.f32.mxu1 %vm5739_vm2, %v5740_v2 }
 0x96e   : > { %5156 = vmatpush3.bf16.msra.mxu0 %v5155_v53  ;;  %5168 = vmatpush3.bf16.msra.mxu1 %v5167_v57 }
 0x96f   : > { %5157 = vmatprep.subr.bf16.mxu0 %v5738_v56  ;;  %5169 = vmatprep.subr.bf16.mxu1 %v5738_v56 }
 0x972   : > { %5159 = vmatpush3.bf16.msra.mxu0 %v5158_v62  ;;  %5171 = vmatpush3.bf16.msra.mxu1 %v5170_v1  ;;  %v2879_v1 = vld [vmem:[#allocation14 + $0x300] sm:$0xff] }
 0x973   : > { %5160 = vmatprep.subr.bf16.mxu0 %v5738_v56  ;;  %5172 = vmatprep.subr.bf16.mxu1 %v5738_v56  ;;  %v5203_v6 = vpack.c.bf16 %v2880_v3, %v2879_v1  ;;  %v3217_v3 = vld [vmem:[#allocation14 + $0x380] sm:$0xff] }
 0x976   : > { %5162 = vmatpush3.bf16.msra.mxu0 %v5161_v7  ;;  %5174 = vmatpush3.bf16.msra.mxu1 %v5173_v9  ;;  %v2968_v7 = vld [vmem:[#allocation15 + $0x308] sm:$0xff]  ;;  %v2881_v9 = vld [vmem:[#allocation14 + $0x310] sm:$0xff] }
 0x977   : > { %5163 = vmatprep.subr.bf16.mxu0 %v5738_v56  ;;  %5175 = vmatprep.subr.bf16.mxu1 %v5738_v56  ;;  %v5215_v8 = vpack.c.bf16 %v2968_v7, %v2967_v5  ;;  %v5206_v14 = vpack.c.bf16 %v2882_v11, %v2881_v9  ;;  %v3218_v5 = vld [vmem:[#allocation14 + $0x388] sm:$0xff]  ;;  %v3219_v11 = vld [vmem:[#allocation14 + $0x390] sm:$0xff] }
 0x978   : > { %v5251_v7 = vpack.c.bf16 %v3218_v5, %v3217_v3  ;;  %v3478_v3 = vld [vmem:[#allocation15 + $0x3e8] sm:$0xff] }
 0x97a   : > { %5165 = vmatpush3.bf16.msra.mxu0 %v5164_v15  ;;  %5177 = vmatpush3.bf16.msra.mxu1 %v5176_v17  ;;  %v2970_v15 = vld [vmem:[#allocation15 + $0x318] sm:$0xff]  ;;  %v2883_v17 = vld [vmem:[#allocation14 + $0x320] sm:$0xff] }
 0x97b   : > { %5178 = vmatprep.subr.bf16.mxu0 %v5738_v56  ;;  %5190 = vmatprep.subr.bf16.mxu1 %v5738_v56  ;;  %v5218_v16 = vpack.c.bf16 %v2970_v15, %v2969_v13  ;;  %v3220_v13 = vld [vmem:[#allocation14 + $0x398] sm:$0xff] }
 0x97c   : > { %v5254_v15 = vpack.c.bf16 %v3220_v13, %v3219_v11  ;;  %v3480_v11 = vld [vmem:[#allocation15 + $0x3f8] sm:$0xff] }
 0xa3f   : > { %v2443_v18 = vpop.f32.mrb[4].mxu0  ;;  %v2528_v19 = vpop.f32.mrb[4].mxu1 }
 0xa40   : > { %v3678_v20 = vmul.f32 -1.442695, %v2443_v18  ;;  %v4570_v21 = vpop.f32.mrb[5].mxu0  ;;  %v4589_v22 = vpop.f32.mrb[5].mxu1  ;;  %v2532_v24 = vmax.f32 %v2528_v19, 0.0  ;;  %v2884_v18 = vld [vmem:[#allocation14 + $0x328] sm:$0xff] }
 0xa41   : > { %v2971_v19 = vld [vmem:[#allocation15 + $0x320] sm:$0xff]  ;;  %v2972_v21 = vld [vmem:[#allocation15 + $0x328] sm:$0xff] }
 0xa42   : > { %5407 = vpow2.f32 %v3678_v20  ;;  %v2533_v52 = vsub.f32 %v2532_v24, %v6198_v50  ;;  %v5209_v20 = vpack.c.bf16 %v2884_v18, %v2883_v17  ;;  %v5221_v22 = vpack.c.bf16 %v2972_v21, %v2971_v19  ;;  %v2973_v24 = vld [vmem:[#allocation15 + $0x330] sm:$0xff]  ;;  %v3221_v18 = vld [vmem:[#allocation14 + $0x3a0] sm:$0xff]  ;;  %v3222_v19 = vld [vmem:[#allocation14 + $0x3a8] sm:$0xff] }
 0xa43   : > { %v5257_v21 = vpack.c.bf16 %v3222_v19, %v3221_v18 }
 0xa4c   : > { %v5408_v12 = vpop.eup %5407 }
 0xa4d   : > { %v2450_v23 = vadd.f32 1.0, %v5408_v12  ;;  %v2885_v12 = vld [vmem:[#allocation14 + $0x330] sm:$0xff] }
 0xa4f   : > { %5409 = vrcp.f32 %v2450_v23  ;;  %v2886_v23 = vld [vmem:[#allocation14 + $0x338] sm:$0xff] }
 0xa59   : > { %v5410_v25 = vpop.eup %5409 }
 0xa5a   : > { %v2534_v26 = vmul.f32 %v5410_v25, %v2533_v52  ;;  %v5212_v52 = vpack.c.bf16 %v2886_v23, %v2885_v12  ;;  %v2974_v25 = vld [vmem:[#allocation15 + $0x338] sm:$0xff]  ;;  %v3223_v23 = vld [vmem:[#allocation14 + $0x3b0] sm:$0xff] }
 0xa5c   : > { %v6218_v27 = vadd.f32 %v2534_v26, %v6198_v50  ;;  %v5224_v26 = vpack.c.bf16 %v2974_v25, %v2973_v24  ;;  %v3224_v24 = vld [vmem:[#allocation14 + $0x3b8] sm:$0xff] }
 0xa5d   : > { %v5260_v25 = vpack.c.bf16 %v3224_v24, %v3223_v23 }
 0xa5e   : > { %4607 = vmatmul.mubr.msk.f32.vlgmr.msra.gmra.mrb[6].mxu0 %vm168_vm1, %v6218_v27  ;;  %4626 = vmatmul.mubr.msk.f32.vlgmr.msra.gmra.mrb[6].mxu1 %vm168_vm1, %v6218_v27 }
 0xa5f   : > { %4644 = vmatprep.mubr.msk.f32.mxu0 %vm5739_vm2, %v5740_v2  ;;  %4663 = vmatprep.mubr.msk.f32.mxu1 %vm5739_vm2, %v5740_v2 }
 0xa60   : > { %5180 = vmatpush3.bf16.msra.mxu0 %v5179_v4  ;;  %5192 = vmatpush3.bf16.msra.mxu1 %v5191_v32 }
 0xa61   : > { %5181 = vmatprep.subr.bf16.mxu0 %v5738_v56  ;;  %5193 = vmatprep.subr.bf16.mxu1 %v5738_v56 }
 0xa64   : > { %5183 = vmatpush3.bf16.msra.mxu0 %v5182_v36  ;;  %5195 = vmatpush3.bf16.msra.mxu1 %v5194_v38  ;;  %v3135_v38 = vld [vmem:[#allocation15 + $0x340] sm:$0xff] }
 0xa65   : > { %5184 = vmatprep.subr.bf16.mxu0 %v5738_v56  ;;  %5196 = vmatprep.subr.bf16.mxu1 %v5738_v56  ;;  %v5239_v43 = vpack.c.bf16 %v3136_v39, %v3135_v38 }
 0xa68   : > { %5186 = vmatpush3.bf16.msra.mxu0 %v5185_v42  ;;  %5198 = vmatpush3.bf16.msra.mxu1 %v5197_v44  ;;  %v5227_v42 = vpack.c.bf16 %v3051_v37, %v3050_v34  ;;  %v3052_v44 = vld [vmem:[#allocation14 + $0x350] sm:$0xff] }
 0xa69   : > { %5187 = vmatprep.subr.bf16.mxu0 %v5738_v56  ;;  %5199 = vmatprep.subr.bf16.mxu1 %v5738_v56  ;;  %v5230_v48 = vpack.c.bf16 %v3053_v46, %v3052_v44  ;;  %v3473_v44 = vld [vmem:[#allocation15 + $0x3c0] sm:$0xff]  ;;  %v3474_v46 = vld [vmem:[#allocation15 + $0x3c8] sm:$0xff] }
 0xa6c   : > { %5189 = vmatpush3.bf16.msra.mxu0 %v5188_v35  ;;  %5201 = vmatpush3.bf16.msra.mxu1 %v5200_v10  ;;  %v3138_v35 = vld [vmem:[#allocation15 + $0x358] sm:$0xff] }
 0xa6d   : > { %5202 = vmatprep.subr.bf16.mxu0 %v5738_v56  ;;  %5214 = vmatprep.subr.bf16.mxu1 %v5738_v56  ;;  %v5242_v10 = vpack.c.bf16 %v3138_v35, %v3137_v47 }
 0xb31   : > { %v2614_v49 = vpop.f32.mrb[6].mxu0  ;;  %v2699_v54 = vpop.f32.mrb[6].mxu1 }
 0xb32   : > { %v3681_v51 = vmul.f32 -1.442695, %v2614_v49  ;;  %v4608_v61 = vpop.f32.mrb[7].mxu0  ;;  %v4627_v53 = vpop.f32.mrb[7].mxu1  ;;  %v3054_v49 = vld [vmem:[#allocation14 + $0x360] sm:$0xff] }
 0xb33   : > { %v3140_v61 = vld [vmem:[#allocation15 + $0x368] sm:$0xff] }
 0xb34   : > { %5411 = vpow2.f32 %v3681_v51  ;;  %v3139_v51 = vld [vmem:[#allocation15 + $0x360] sm:$0xff] }
 0xb35   : > { %5413 = vtanh.f32 %v2699_v54  ;;  %v3055_v54 = vld [vmem:[#allocation14 + $0x368] sm:$0xff] }
 0xb36   : > { %v5233_v53 = vpack.c.bf16 %v3055_v54, %v3054_v49  ;;  %v3390_v49 = vld [vmem:[#allocation14 + $0x3d0] sm:$0xff] }
 0xb3e   : > { %v5412_v55 = vpop.eup %5411 }
 0xb3f   : > { %v2621_v57 = vadd.f32 1.0, %v5412_v55  ;;  %v5414_v58 = vpop.eup %5413  ;;  %v5245_v55 = vpack.c.bf16 %v3140_v61, %v3139_v51  ;;  %v3391_v61 = vld [vmem:[#allocation14 + $0x3d8] sm:$0xff] }
 0xb40   : > { %v2704_v59 = vsub.f32 %v5414_v58, %v6218_v27  ;;  %v3057_v58 = vld [vmem:[#allocation14 + $0x378] sm:$0xff] }
 0xb41   : > { %5415 = vrcp.f32 %v2621_v57  ;;  %v3056_v57 = vld [vmem:[#allocation14 + $0x370] sm:$0xff] }
 0xb4b   : > { %v5416_v60 = vpop.eup %5415 }
 0xb4c   : > { %v2705_v62 = vmul.f32 %v5416_v60, %v2704_v59  ;;  %v3141_v59 = vld [vmem:[#allocation15 + $0x370] sm:$0xff]  ;;  %v3142_v60 = vld [vmem:[#allocation15 + $0x378] sm:$0xff] }
 0xb4d   : > { %v5248_v1 = vpack.c.bf16 %v3142_v60, %v3141_v59  ;;  %v3392_v60 = vld [vmem:[#allocation14 + $0x3e0] sm:$0xff] }
 0xb4e   : > { %v6238_v63 = vadd.f32 %v2705_v62, %v6218_v27  ;;  %v5236_v62 = vpack.c.bf16 %v3057_v58, %v3056_v57  ;;  %v5278_v58 = vpack.c.bf16 %v3391_v61, %v3390_v49 }
 0xb50   : > { %4645 = vmatmul.mubr.msk.f32.vlgmr.msra.gmra.mrb[8].mxu0 %vm168_vm1, %v6238_v63  ;;  %4664 = vmatmul.mubr.msk.f32.vlgmr.msra.gmra.mrb[8].mxu1 %vm168_vm1, %v6238_v63 }
 0xb51   : > { %4682 = vmatprep.mubr.msk.f32.mxu0 %vm5739_vm2, %v5740_v2  ;;  %4701 = vmatprep.mubr.msk.f32.mxu1 %vm5739_vm2, %v5740_v2 }
 0xb52   : > { %5204 = vmatpush3.bf16.msra.mxu0 %v5203_v6  ;;  %5216 = vmatpush3.bf16.msra.mxu1 %v5215_v8  ;;  %v3305_v6 = vld [vmem:[#allocation15 + $0x380] sm:$0xff]  ;;  %v3306_v8 = vld [vmem:[#allocation15 + $0x388] sm:$0xff] }
 0xb53   : > { %5205 = vmatprep.subr.bf16.mxu0 %v5738_v56  ;;  %5217 = vmatprep.subr.bf16.mxu1 %v5738_v56  ;;  %v5263_v9 = vpack.c.bf16 %v3306_v8, %v3305_v6  ;;  %v3395_v8 = vld [vmem:[#allocation14 + $0x3f8] sm:$0xff] }
 0xb56   : > { %5207 = vmatpush3.bf16.msra.mxu0 %v5206_v14  ;;  %5219 = vmatpush3.bf16.msra.mxu1 %v5218_v16  ;;  %v3307_v14 = vld [vmem:[#allocation15 + $0x390] sm:$0xff]  ;;  %v3308_v16 = vld [vmem:[#allocation15 + $0x398] sm:$0xff] }
 0xb57   : > { %5208 = vmatprep.subr.bf16.mxu0 %v5738_v56  ;;  %5220 = vmatprep.subr.bf16.mxu1 %v5738_v56  ;;  %v5266_v17 = vpack.c.bf16 %v3308_v16, %v3307_v14 }
 0xb5a   : > { %5210 = vmatpush3.bf16.msra.mxu0 %v5209_v20  ;;  %5222 = vmatpush3.bf16.msra.mxu1 %v5221_v22  ;;  %v3309_v20 = vld [vmem:[#allocation15 + $0x3a0] sm:$0xff]  ;;  %v3310_v22 = vld [vmem:[#allocation15 + $0x3a8] sm:$0xff] }
 0xb5b   : > { %5211 = vmatprep.subr.bf16.mxu0 %v5738_v56  ;;  %5223 = vmatprep.subr.bf16.mxu1 %v5738_v56  ;;  %v5269_v12 = vpack.c.bf16 %v3310_v22, %v3309_v20 }
 0xb5e   : > { %5213 = vmatpush3.bf16.msra.mxu0 %v5212_v52  ;;  %5225 = vmatpush3.bf16.msra.mxu1 %v5224_v26  ;;  %v3311_v52 = vld [vmem:[#allocation15 + $0x3b0] sm:$0xff]  ;;  %v3312_v26 = vld [vmem:[#allocation15 + $0x3b8] sm:$0xff] }
 0xb5f   : > { %5226 = vmatprep.subr.bf16.mxu0 %v5738_v56  ;;  %5238 = vmatprep.subr.bf16.mxu1 %v5738_v56 }
 0xc23   : > { %v2785_v28 = vpop.f32.mrb[8].mxu0  ;;  %v2870_v29 = vpop.f32.mrb[8].mxu1 }
 0xc24   : > { %v3684_v30 = vmul.f32 -1.442695, %v2785_v28  ;;  %v4646_v4 = vpop.f32.mrb[9].mxu0  ;;  %v4665_v31 = vpop.f32.mrb[9].mxu1  ;;  %v2874_v33 = vmax.f32 %v2870_v29, 0.0  ;;  %v5272_v28 = vpack.c.bf16 %v3312_v26, %v3311_v52  ;;  %v3555_v26 = vadd.f32 %v6218_v27, %v6198_v50 }
 0xc26   : > { %5417 = vpow2.f32 %v3684_v30  ;;  %v2875_v36 = vsub.f32 %v2874_v33, %v6238_v63 }
 0xc30   : > { %v5418_v32 = vpop.eup %5417 }
 0xc31   : > { %v2792_v0 = vadd.f32 1.0, %v5418_v32 }
 0xc33   : > { %5419 = vrcp.f32 %v2792_v0 }
 0xc3d   : > { %v5420_v40 = vpop.eup %5419 }
 0xc3e   : > { %v2876_v41 = vmul.f32 %v5420_v40, %v2875_v36 }
 0xc40   : > { %v6258_v45 = vadd.f32 %v2876_v41, %v6238_v63  ;;  %v3388_v41 = vld [vmem:[#allocation14 + $0x3c0] sm:$0xff] }
 0xc42   : > { %4683 = vmatmul.mubr.msk.f32.vlgmr.msra.gmra.mrb[10].mxu0 %vm168_vm1, %v6258_v45  ;;  %4702 = vmatmul.mubr.msk.f32.vlgmr.msra.gmra.mrb[10].mxu1 %vm168_vm1, %v6258_v45 }
 0xc43   : > { %5228 = vmatpush3.bf16.msra.mxu0 %v5227_v42  ;;  %5240 = vmatpush3.bf16.msra.mxu1 %v5239_v43  ;;  %v3389_v43 = vld [vmem:[#allocation14 + $0x3c8] sm:$0xff] }
 0xc44   : > { %5229 = vmatprep.subr.bf16.mxu0 %v5738_v56  ;;  %5241 = vmatprep.subr.bf16.mxu1 %v5738_v56 }
 0xc45   : > { %4720 = vmatprep.mubr.msk.f32.mxu0 %vm5739_vm2, %v5740_v2  ;;  %4739 = vmatprep.mubr.msk.f32.mxu1 %vm5739_vm2, %v5740_v2 }
 0xc47   : > { %5231 = vmatpush3.bf16.msra.mxu0 %v5230_v48  ;;  %5243 = vmatpush3.bf16.msra.mxu1 %v5242_v10  ;;  %v5275_v48 = vpack.c.bf16 %v3389_v43, %v3388_v41  ;;  %v5287_v10 = vpack.c.bf16 %v3474_v46, %v3473_v44 }
 0xc48   : > { %5232 = vmatprep.subr.bf16.mxu0 %v5738_v56  ;;  %5244 = vmatprep.subr.bf16.mxu1 %v5738_v56 }
 0xc4b   : > { %5234 = vmatpush3.bf16.msra.mxu0 %v5233_v53  ;;  %5246 = vmatpush3.bf16.msra.mxu1 %v5245_v55  ;;  %v3475_v53 = vld [vmem:[#allocation15 + $0x3d0] sm:$0xff]  ;;  %v3476_v55 = vld [vmem:[#allocation15 + $0x3d8] sm:$0xff] }
 0xc4c   : > { %5235 = vmatprep.subr.bf16.mxu0 %v5738_v56  ;;  %5247 = vmatprep.subr.bf16.mxu1 %v5738_v56  ;;  %v5290_v59 = vpack.c.bf16 %v3476_v55, %v3475_v53 }
 0xc4f   : > { %5237 = vmatpush3.bf16.msra.mxu0 %v5236_v62  ;;  %5249 = vmatpush3.bf16.msra.mxu1 %v5248_v1  ;;  %v3393_v62 = vld [vmem:[#allocation14 + $0x3e8] sm:$0xff]  ;;  %v3477_v1 = vld [vmem:[#allocation15 + $0x3e0] sm:$0xff] }
 0xc50   : > { %5250 = vmatprep.subr.bf16.mxu0 %v5738_v56  ;;  %5262 = vmatprep.subr.bf16.mxu1 %v5738_v56  ;;  %v5281_v5 = vpack.c.bf16 %v3393_v62, %v3392_v60  ;;  %v5293_v6 = vpack.c.bf16 %v3478_v3, %v3477_v1 }
 0xc52   : > { %4721 = vmatmul.mubr.msk.f32.vlgmr.msra.gmra.mrb[12].mxu0 %vm168_vm1, %v6198_v50  ;;  %4740 = vmatmul.mubr.msk.f32.vlgmr.msra.gmra.mrb[12].mxu1 %vm168_vm1, %v6198_v50 }
 0xc53   : > { %4758 = vmatprep.mubr.msk.f32.mxu0 %vm5739_vm2, %v5740_v2  ;;  %4777 = vmatprep.mubr.msk.f32.mxu1 %vm5739_vm2, %v5740_v2 }
 0xc54   : > { %5252 = vmatpush3.bf16.msra.mxu0 %v5251_v7  ;;  %5264 = vmatpush3.bf16.msra.mxu1 %v5263_v9  ;;  %v3394_v7 = vld [vmem:[#allocation14 + $0x3f0] sm:$0xff] }
 0xc55   : > { %5253 = vmatprep.subr.bf16.mxu0 %v5738_v56  ;;  %5265 = vmatprep.subr.bf16.mxu1 %v5738_v56  ;;  %v3479_v9 = vld [vmem:[#allocation15 + $0x3f0] sm:$0xff]  ;;  %v5284_v13 = vpack.c.bf16 %v3395_v8, %v3394_v7 }
 0xc56   : > { %v5296_v14 = vpack.c.bf16 %v3480_v11, %v3479_v9 }
 0xc58   : > { %5255 = vmatpush3.bf16.msra.mxu0 %v5254_v15  ;;  %5267 = vmatpush3.bf16.msra.mxu1 %v5266_v17 }
 0xc59   : > { %5256 = vmatprep.subr.bf16.mxu0 %v5738_v56  ;;  %5268 = vmatprep.subr.bf16.mxu1 %v5738_v56 }
 0xc5c   : > { %5258 = vmatpush3.bf16.msra.mxu0 %v5257_v21  ;;  %5270 = vmatpush3.bf16.msra.mxu1 %v5269_v12 }
 0xc5d   : > { %5259 = vmatprep.subr.bf16.mxu0 %v5738_v56  ;;  %5271 = vmatprep.subr.bf16.mxu1 %v5738_v56 }
 0xc60   : > { %5261 = vmatpush3.bf16.msra.mxu0 %v5260_v25  ;;  %5273 = vmatpush3.bf16.msra.mxu1 %v5272_v28 }
 0xc61   : > { %5274 = vmatprep.subr.bf16.mxu0 %v5738_v56  ;;  %5286 = vmatprep.subr.bf16.mxu1 %v5738_v56 }
 0xd15   : > { %v2956_v29 = vpop.f32.mrb[10].mxu0  ;;  %v3041_v30 = vpop.f32.mrb[10].mxu1 }
 0xd16   : > { %v3687_v4 = vmul.f32 -1.442695, %v2956_v29  ;;  %v4684_v31 = vpop.f32.mrb[11].mxu0  ;;  %v4703_v32 = vpop.f32.mrb[11].mxu1  ;;  %v3045_v40 = vmax.f32 %v3041_v30, 0.0  ;;  %v3556_v29 = vadd.f32 %v3555_v26, %v6238_v63 }
 0xd18   : > { %5421 = vpow2.f32 %v3687_v4  ;;  %v3046_v42 = vsub.f32 %v3045_v40, %v6258_v45  ;;  %v3557_v4 = vadd.f32 %v3556_v29, %v6258_v45 }
 0xd22   : > { %v5422_v0 = vpop.eup %5421 }
 0xd23   : > { %v2963_v33 = vadd.f32 1.0, %v5422_v0 }
 0xd25   : > { %5423 = vrcp.f32 %v2963_v33  ;;  %v3124_v34 = vpop.f32.mrb[12].mxu0  ;;  %v3209_v36 = vpop.f32.mrb[12].mxu1 }
 0xd26   : > { %v3690_v37 = vmul.f32 -1.442695, %v3124_v34  ;;  %v4722_v38 = vpop.f32.mrb[13].mxu0  ;;  %v4741_v39 = vpop.f32.mrb[13].mxu1  ;;  %v3213_v15 = vsub.f32 %v3209_v36, %v6198_v50 }
 0xd28   : > { %5425 = vpow2.f32 %v3690_v37 }
 0xd2f   : > { %v5424_v47 = vpop.eup %5423 }
 0xd30   : > { %v3047_v35 = vmul.f32 %v5424_v47, %v3046_v42 }
 0xd32   : > { %v5426_v54 = vpop.eup %5425  ;;  %v6294_v51 = vadd.f32 %v3047_v35, %v6258_v45 }
 0xd33   : > { %v3131_v57 = vadd.f32 1.0, %v5426_v54 }
 0xd34   : > { %4759 = vmatmul.mubr.msk.f32.vlgmr.msra.gmra.mrb[14].mxu0 %vm168_vm1, %v6294_v51  ;;  %4778 = vmatmul.mubr.msk.f32.vlgmr.msra.gmra.mrb[14].mxu1 %vm168_vm1, %v6294_v51  ;;  %v3558_v0 = vadd.f32 %v3557_v4, %v6294_v51 }
 0xd35   : > { %5427 = vrcp.f32 %v3131_v57  ;;  %5276 = vmatpush3.bf16.msra.mxu0 %v5275_v48  ;;  %5288 = vmatpush3.bf16.msra.mxu1 %v5287_v10 }
 0xd36   : > { %5277 = vmatprep.subr.bf16.mxu0 %v5738_v56  ;;  %5289 = vmatprep.subr.bf16.mxu1 %v5738_v56 }
 0xd37   : > { %4796 = vmatprep.mubr.msk.f32.mxu0 %vm5739_vm2, %v5740_v2  ;;  %4815 = vmatprep.mubr.msk.f32.mxu1 %vm5739_vm2, %v5740_v2 }
 0xd39   : > { %5279 = vmatpush3.bf16.msra.mxu0 %v5278_v58  ;;  %5291 = vmatpush3.bf16.msra.mxu1 %v5290_v59 }
 0xd3a   : > { %5280 = vmatprep.subr.bf16.mxu0 %v5738_v56  ;;  %5292 = vmatprep.subr.bf16.mxu1 %v5738_v56 }
 0xd3d   : > { %5282 = vmatpush3.bf16.msra.mxu0 %v5281_v5  ;;  %5294 = vmatpush3.bf16.msra.mxu1 %v5293_v6 }
 0xd3e   : > { %5283 = vmatprep.subr.bf16.mxu0 %v5738_v56  ;;  %5295 = vmatprep.subr.bf16.mxu1 %v5738_v56 }
 0xd3f   : > { %v5428_v2 = vpop.eup %5427 }
 0xd40   : > { %v3214_v16 = vmul.f32 %v5428_v2, %v3213_v15 }
 0xd41   : > { %5285 = vmatpush3.bf16.msra.mxu0 %v5284_v13  ;;  %5297 = vmatpush3.bf16.msra.mxu1 %v5296_v14 }
 0xd42   : > { %v3215_v30 = vadd.f32 %v3214_v16, %v6198_v50 }
 0xd44   : > { %4797 = vmatmul.mubr.msk.f32.vlgmr.msra.gmra.mrb[16].mxu0 %vm168_vm1, %v6198_v50  ;;  %4816 = vmatmul.mubr.msk.f32.vlgmr.msra.gmra.mrb[16].mxu1 %vm168_vm1, %v6198_v50  ;;  %v3559_v36 = vadd.f32 %v3558_v0, %v3215_v30 }
 0xe07   : > { %v3294_v17 = vpop.f32.mrb[14].mxu0  ;;  %v3379_v18 = vpop.f32.mrb[14].mxu1 }
 0xe08   : > { %v3693_v19 = vmul.f32 -1.442695, %v3294_v17  ;;  %v4760_v20 = vpop.f32.mrb[15].mxu0  ;;  %v4779_v21 = vpop.f32.mrb[15].mxu1  ;;  %v3383_v28 = vmax.f32 %v3379_v18, 0.0 }
 0xe0a   : > { %5429 = vpow2.f32 %v3693_v19  ;;  %v3384_v31 = vsub.f32 %v3383_v28, %v6294_v51 }
 0xe14   : > { %v5430_v22 = vpop.eup %5429 }
 0xe15   : > { %v3301_v12 = vadd.f32 1.0, %v5430_v22 }
 0xe17   : > { %5431 = vrcp.f32 %v3301_v12  ;;  %v3462_v56 = vpop.f32.mrb[16].mxu0  ;;  %v3547_v23 = vpop.f32.mrb[16].mxu1 }
 0xe18   : > { %v3696_v24 = vmul.f32 -1.442695, %v3462_v56  ;;  %v4798_v52 = vpop.f32.mrb[17].mxu0  ;;  %v4817_v25 = vpop.f32.mrb[17].mxu1  ;;  %v3551_v39 = vmax.f32 %v3547_v23, 0.0 }
 0xe1a   : > { %5433 = vpow2.f32 %v3696_v24  ;;  %v3552_v63 = vsub.f32 %v3551_v39, %v6198_v50 }
 0xe21   : > { %v5432_v32 = vpop.eup %5431 }
 0xe22   : > { %v3385_v33 = vmul.f32 %v5432_v32, %v3384_v31 }
 0xe24   : > { %v5434_v34 = vpop.eup %5433  ;;  %v3386_v37 = vadd.f32 %v3385_v33, %v6294_v51 }
 0xe25   : > { %v3469_v38 = vadd.f32 1.0, %v5434_v34 }
 0xe26   : > { %v3560_v27 = vadd.f32 %v3559_v36, %v3386_v37 }
 0xe27   : > { %5435 = vrcp.f32 %v3469_v38 }
 0xe31   : > { %v5436_v40 = vpop.eup %5435 }
 0xe32   : > { %v3553_v41 = vmul.f32 %v5436_v40, %v3552_v63 }
 0xe34   : > { %v3554_v45 = vadd.f32 %v3553_v41, %v6198_v50  ;;  %1856 = sbr.rel (!%p1854_p9) target bundleno = 1894 (0x766), region = 163 }
 0xe36   : > { %v3561_v42 = vadd.f32 %v3560_v27, %v3554_v45 }
 0xe38   : > { %v3562_v43 = vmul.f32 0.125, %v3561_v42  }
 0xe3a   : > { %3564 = vst.msk [vmem:[%s3563_s29] sm:$0xff] %vm168_vm1, %v3562_v43  ;;  %v6392_v52 = vmov %v3562_v43  ;;  %3565 = vst.msk [vmem:[#allocation20] sm:$0xff] (%p1854_p9), %vm168_vm1, %v3562_v43 }
 0xe3b   :  { %5624 = shalt.err (!%p5621_p0)
}
 0xe3c   :  { %s5625_s15 = scalar_lea.hbm %s6389_s9, 128 }
 0xe3d   :  { %p5626_p1 = scmp.ne.s32.totalorder %s6389_s9, %s5625_s15  ;;  %p5629_p2 = scmp.lt.u32.totalorder %s5625_s15, %s6389_s9 }
 0xe3f   :  { %p5631_p3 = pnand %p5629_p2, %p5626_p1 }
 0xe41   :  { %5634 = shalt.err (!%p5631_p3)
}
 0xe42   :  { %3587 = dma.vmem_to_hbm [thread:$0]  %s3585_s26, 128, %s6389_s9, [#allocation19]  }
 0xe43   :  { %s5635_s28 = scalar_lea.vmem %s6334_s0, 1280  ;;  %p5640_p5 = scmp.lt.s32.totalorder %s6334_s0, %s6334_s0 }
 0xe44   :  { %p5636_p4 = scmp.ne.s32.totalorder %s6334_s0, %s5635_s28  ;;  %p5641_p6 = scmp.lt.s32.totalorder %s5635_s28, %s5635_s28 }
 0xe46   :  { %p5642_p7 = por %p5641_p6, %p5640_p5 }
 0xe48   :  { %p5643_p8 = pnand %p5642_p7, %p5636_p4 }
 0xe4a   :  { %5646 = shalt.err (!%p5643_p8)
}
 0xe4b   :  { %s5647_s1 = scalar_lea.hbm %s6388_s8, 1280 }
 0xe4c   :  { %p5648_p9 = scmp.ne.s32.totalorder %s6388_s8, %s5647_s1  ;;  %p5651_p10 = scmp.lt.u32.totalorder %s5647_s1, %s6388_s8 }
 0xe4e   :  { %p5653_p11 = pnand %p5651_p10, %p5648_p9 }
 0xe50   :  { %5656 = shalt.err (!%p5653_p11)
}
 0xe51   :  { %3577 = dma.vmem_to_hbm [thread:$0]  %s6334_s0, 1280, %s6388_s8, [#allocation5], %s5728_s14, %s5728_s14, %s5729_s17  }
 0xe52   :  { %s5743_s25 = smov [#allocation20]  }
 0xe53   :  { %s3594_s27 = sshll.u32 %s5743_s25, 4  ;;  %s3595_s27 = int_to_ptr.vmem [resolvable:$true] %s3594_s27 }
 0xe54   :  { %s5657_s29 = scalar_lea.vmem %s3595_s27, 128  ;;  %p5662_p13 = scmp.lt.s32.totalorder %s3595_s27, %s3595_s27 }
 0xe55   :  { %p5658_p12 = scmp.ne.s32.totalorder %s3595_s27, %s5657_s29  ;;  %p5663_p0 = scmp.lt.s32.totalorder %s5657_s29, %s5657_s29 }
 0xe57   :  { %p5664_p1 = por %p5663_p0, %p5662_p13 }
 0xe59   :  { %p5665_p2 = pnand %p5664_p1, %p5658_p12 }
 0xe5b   :  { %5668 = shalt.err (!%p5665_p2)
}
 0xe5c   :  { %s5669_s30 = scalar_lea.hbm %s6390_s10, 128 }
 0xe5d   :  { %p5670_p3 = scmp.ne.s32.totalorder %s6390_s10, %s5669_s30  ;;  %p5673_p4 = scmp.lt.u32.totalorder %s5669_s30, %s6390_s10 }
 0xe5f   :  { %p5675_p5 = pnand %p5673_p4, %p5670_p3 }
 0xe61   :  { %5678 = shalt.err (!%p5675_p5)
}
 0xe62   :  { %3597 = dma.vmem_to_hbm [thread:$0]  %s3595_s27, 128, %s6390_s10, [#allocation19]  }
 0xe63   :  { %5705 = dma.done.wait [#allocation5], 1280  }
 0xe64   :  { %5706 = vsyncadd [#allocation5], 4294966016 }
 0xe65   :  { %5707 = dma.done.wait [#allocation19], 256  }
 0xe66   :  { %5708 = vsyncadd [#allocation19], 4294967040 }
 0xe67   :  { %3607 = vsyncpa [#allocation4], 1 }
 0xe68   :  { %3608 = vsyncpa [#allocation7], 1 }
 0xe69   :  { %3609 = vsyncpa [#allocation10], 1 }
 0xe6a   :  { %3610 = vsyncpa [#allocation13], 1 }
 0xe6b   :  { %3611 = vsyncpa [#allocation16], 1 }
 0xe6c   :  { %3612 = vsyncpa [#allocation5], 1 }
 0xe6d   :  { %3613 = vsyncpa [#allocation19], 1 }

</bundles_post_ra>
